<compile_context>
chip_gen: v7x
topology: tpu7x:2x2x1
jax: 0.10.0
libtpu: 0.0.40
codegen_flags: <defaults>
</compile_context>

<pallas_src>
import math

import numpy as np
import jax
import jax.numpy as jnp
from jax import lax
from jax.experimental import pallas as pl
from jax.experimental.pallas import tpu as pltpu

# ----------------------------- hyper-parameters ----------------------------
NUM_ENC_LAYERS = 2
D_MODEL = 32
D_FF = 64
NUM_HEADS = 4
NUM_CHANNELS = 4
SEQ_LEN = 16
PRED_LEN = 8
PATCH_DIM = 8
PATCH_STRIDE = 4
NUM_PATCHES = (SEQ_LEN - PATCH_DIM) // PATCH_STRIDE + 2  # = 4 (matches module)
HEAD_DIM = D_MODEL // NUM_HEADS                           # = 8
EPS_REVIN = 1e-5
EPS_BN = 1e-5
BATCH = 2

QKV_W = 3 * D_MODEL                # fused Q|K|V width
HEAD_W = NUM_PATCHES * PRED_LEN    # lane width of fused flatten-head output

# bias-row layout inside the weights slab (8 rows per layer + 2 global rows)
_B_QKV, _B_O, _B_BN1G, _B_BN1B, _B_FF1, _B_FF2, _B_BN2G, _B_BN2B = range(8)
_ROWS_PER_LAYER = 8
_B_EMB = NUM_ENC_LAYERS * _ROWS_PER_LAYER   # patch-embedding bias row (=16)
_B_HEAD = _B_EMB + 1                        # flatten-head bias row (=17)
_BIAS_ROWS = _B_HEAD + 1                    # = 18
_BIAS_ROWS_PAD = 24                         # padded to a multiple of 8

# weights-slab row offsets (width 128)
_WTS_ATTN_OFF = 0                                        # 2 x 32 rows: [wqkv|wo]
_WTS_FF_OFF = NUM_ENC_LAYERS * D_MODEL                   # 2 x 64 rows: [wff1|wff2]
_WTS_BIAS_OFF = _WTS_FF_OFF + NUM_ENC_LAYERS * D_FF      # 24 rows of bias vectors
_WTS_WP_OFF = _WTS_BIAS_OFF + _BIAS_ROWS_PAD             # 8 rows: patch embed
_WTS_WH_OFF = _WTS_WP_OFF + PATCH_DIM                    # 32 rows: flatten head
_WTS_ROWS = _WTS_WH_OFF + D_MODEL                        # = 256


def _ceil8(n):
    return ((n + 7) // 8) * 8


def _cst_layout(bc):
    """Row layout of the packed host-constant slab (shared by wrapper & kernel)."""
    r = bc * NUM_PATCHES
    hr = NUM_HEADS * r
    layout = {}
    off = 0

    def add(name, rows, cols):
        nonlocal off
        layout[name] = (off, rows, cols)
        off += _ceil8(rows)

    add('attn_bias', hr, r)        # additive block-diagonal group mask
    add('head_mask', hr, D_MODEL)  # head-lane selector for stacked heads
    add('rep', hr, r)              # row replication selector (R -> H*R)
    add('rept', r, hr)             # collapse selector (H*R -> R)
    add('hm_head', r, HEAD_W)      # flatten-head lane-block mask
    add('selT', r, bc)             # per-series stat broadcast (BC -> R rows)
    add('sel', bc, r)              # per-series row-group sum (R -> BC rows)
    add('lane_col', HEAD_W, PRED_LEN)  # lane-block collapse for flatten head
    width = max(128, hr)
    return layout, off, width


def _build_constants(bc):
    """All selector / mask constants, packed into one numpy slab (host-side)."""
    r_n = bc * NUM_PATCHES
    hr = NUM_HEADS * r_n
    layout, rows, width = _cst_layout(bc)
    slab = np.zeros((rows, width), np.float32)

    r = np.arange(r_n)
    h = np.arange(hr)
    bci = np.arange(bc)
    lane_d = np.arange(D_MODEL)
    lane_h = np.arange(HEAD_W)

    grp_row = (h % r_n) // NUM_PATCHES
    grp_col = r // NUM_PATCHES
    vals = {
        'attn_bias': np.where(grp_row[:, None] == grp_col[None, :],
                              0.0, -1e30).astype(np.float32),
        'head_mask': ((h // r_n)[:, None] ==
                      (lane_d // HEAD_DIM)[None, :]).astype(np.float32),
        'rep': ((h % r_n)[:, None] == r[None, :]).astype(np.float32),
        'rept': (r[:, None] == (h % r_n)[None, :]).astype(np.float32),
        'hm_head': ((r % NUM_PATCHES)[:, None] ==
                    (lane_h // PRED_LEN)[None, :]).astype(np.float32),
        'selT': ((r // NUM_PATCHES)[:, None] == bci[None, :]).astype(np.float32),
        'sel': (bci[:, None] == (r // NUM_PATCHES)[None, :]).astype(np.float32),
        'lane_col': ((lane_h % PRED_LEN)[:, None] ==
                     np.arange(PRED_LEN)[None, :]).astype(np.float32),
    }
    for name, arr in vals.items():
        o, nr, nc = layout[name]
        slab[o:o + nr, 0:nc] = arr
    return slab


# ------------------------------ kernel helpers ------------------------------
def _gelu_tanh(x):
    # TODO(synk): torch nn.GELU default is the exact erf GELU; tanh approximation
    # is used because erf has no guaranteed Pallas TPU lowering.
    c = math.sqrt(2.0 / math.pi)
    return 0.5 * x * (1.0 + jnp.tanh(c * (x + 0.044715 * x * x * x)))


def _batchnorm(z, gamma, beta):
    """Train-mode BatchNorm1d(d_model): batch stats over all token rows (fused)."""
    mu = jnp.mean(z, axis=0, keepdims=True)
    ms = jnp.mean(z * z, axis=0, keepdims=True)
    var = jnp.maximum(ms - mu * mu, 0.0)
    return (z - mu) * (lax.rsqrt(var + EPS_BN) * gamma) + beta


# --------------------------------- kernel -----------------------------------
def patchtst_kernel(xs_ref, tok_ref, cst_ref, wts_ref, out_ref):
    f32 = jnp.float32
    BC = xs_ref.shape[0]          # batch * channels series
    R = tok_ref.shape[0]          # BC * NUM_PATCHES token rows
    layout, _, _ = _cst_layout(BC)

    def cst(name):
        o, rows, cols = layout[name]
        return cst_ref[o:o + rows, 0:cols]

    attn_bias = cst('attn_bias')   # (H*R, R)
    head_mask = cst('head_mask')   # (H*R, D)
    rep = cst('rep')               # (H*R, R)
    rept = cst('rept')             # (R, H*R)
    hm_head = cst('hm_head')       # (R, NP*PRED)
    selT = cst('selT')             # (R, BC)
    sel = cst('sel')               # (BC, R)
    lane_col = cst('lane_col')     # (NP*PRED, PRED)

    ball = wts_ref[_WTS_BIAS_OFF:_WTS_BIAS_OFF + _BIAS_ROWS_PAD, :]  # (24,128)

    def bias_row(i, w):
        return ball[i:i + 1, 0:w]

    # ---------------- RevIN 'norm' statistics (per (batch, channel) row) ----
    xs = xs_ref[...]
    x = xs[:, 0:SEQ_LEN]                              # (BC, L)
    rg = xs[:, SEQ_LEN:SEQ_LEN + 1]                   # RevIN affine weight
    rb = xs[:, SEQ_LEN + 1:SEQ_LEN + 2]               # RevIN affine bias
    rig = xs[:, SEQ_LEN + 2:SEQ_LEN + 3]              # 1/(weight+eps^2), host-exact

    mean = jnp.mean(x, axis=1, keepdims=True)
    msq = jnp.mean(x * x, axis=1, keepdims=True)
    var = jnp.maximum(msq - mean * mean, 0.0)         # biased variance
    inv_std = lax.rsqrt(var + EPS_REVIN)
    stdev = (var + EPS_REVIN) * inv_std               # sqrt(var+eps)

    # fold norm into one multiply-add per patch element, broadcast BC -> R rows
    a_coef = inv_std * rg
    b_coef = rb - mean * a_coef
    coef = jnp.concatenate([a_coef, b_coef], axis=1)                  # (BC, 2)
    coef_r = jnp.dot(selT, coef, preferred_element_type=f32)          # (R, 2)

    # ---------------- patches: norm + affine + (blind) mask + embedding -----
    tok = tok_ref[...]
    patches = tok[:, 0:PATCH_DIM]
    maskb = tok[:, PATCH_DIM:2 * PATCH_DIM]           # ones => exact forward
    pos = tok[:, 2 * PATCH_DIM:2 * PATCH_DIM + D_MODEL]

    zp = (patches * coef_r[:, 0:1] + coef_r[:, 1:2]) * maskb
    wp = wts_ref[_WTS_WP_OFF:_WTS_WP_OFF + PATCH_DIM, 0:D_MODEL]
    z = (jnp.dot(zp, wp, preferred_element_type=f32)
         + bias_row(_B_EMB, D_MODEL) + pos)                            # (R, D)

    dn_t = (((1,), (1,)), ((), ()))   # contract dim 1 of both: A @ B^T
    prev_scores = None                # res_attention=True score carry (H*R, R)

    for l in range(NUM_ENC_LAYERS):
        arow = _WTS_ATTN_OFF + l * D_MODEL
        frow = _WTS_FF_OFF + l * D_FF
        brow = l * _ROWS_PER_LAYER

        wqkv = wts_ref[arow:arow + D_MODEL, 0:QKV_W]          # Q already scaled
        wo = wts_ref[arow:arow + D_MODEL, QKV_W:QKV_W + D_MODEL]
        wff1 = wts_ref[frow:frow + D_MODEL, 0:D_FF]
        wff2 = wts_ref[frow:frow + D_FF, D_FF:D_FF + D_MODEL]

        # fused Q|K|V projection: one (R,D)x(D,3D) matmul
        qkv = (jnp.dot(z, wqkv, preferred_element_type=f32)
               + bias_row(brow + _B_QKV, QKV_W))                       # (R,3D)
        q = qkv[:, 0:D_MODEL]
        k = qkv[:, D_MODEL:2 * D_MODEL]
        v = qkv[:, 2 * D_MODEL:3 * D_MODEL]

        # head-stacked, lane-block-diagonal Q: all heads' scores in one matmul
        q_blk = jnp.dot(rep, q, preferred_element_type=f32) * head_mask  # (HR,D)
        s = lax.dot_general(q_blk, k, dn_t, preferred_element_type=f32)  # (HR,R)
        if prev_scores is not None:
            s = s + prev_scores
        prev_scores = s                    # residual attention score carry

        sm = s + attn_bias                 # block-diagonal (b,c)-group mask
        m = jnp.max(sm, axis=-1, keepdims=True)
        p = jnp.exp(sm - m)
        denom = jnp.sum(p, axis=-1, keepdims=True)
        p = p * pl.reciprocal(denom, approx=True)

        o_wide = jnp.dot(p, v, preferred_element_type=f32)             # (HR, D)
        attn = jnp.dot(rept, o_wide * head_mask,
                       preferred_element_type=f32)                     # (R, D)
        attn = (jnp.dot(attn, wo, preferred_element_type=f32)
                + bias_row(brow + _B_O, D_MODEL))

        z = _batchnorm(z + attn,
                       bias_row(brow + _B_BN1G, D_MODEL),
                       bias_row(brow + _B_BN1B, D_MODEL))

        h1 = (jnp.dot(z, wff1, preferred_element_type=f32)
              + bias_row(brow + _B_FF1, D_FF))
        h1 = _gelu_tanh(h1)
        ff = (jnp.dot(h1, wff2, preferred_element_type=f32)
              + bias_row(brow + _B_FF2, D_MODEL))

        z = _batchnorm(z + ff,
                       bias_row(brow + _B_BN2G, D_MODEL),
                       bias_row(brow + _B_BN2B, D_MODEL))

    # ---------------- flatten head (fused): Linear(NP*D -> PRED) ------------
    wh_cat = wts_ref[_WTS_WH_OFF:_WTS_WH_OFF + D_MODEL, 0:HEAD_W]
    g_full = jnp.dot(z, wh_cat, preferred_element_type=f32)           # (R, NP*P)
    g_sel = jnp.dot(g_full * hm_head, lane_col,
                    preferred_element_type=f32)                       # (R, P)
    head = (jnp.dot(sel, g_sel, preferred_element_type=f32)
            + bias_row(_B_HEAD, PRED_LEN))                            # (BC, P)

    # ---------------- RevIN 'denorm' (exact reciprocal, host-folded) --------
    c1 = rig * stdev
    c0 = mean - rb * c1
    out_ref[...] = (head * c1 + c0).astype(out_ref.dtype)


# ------------------------------ parameter init ------------------------------
def init_params(key):
    keys = iter(jax.random.split(key, 16))

    def xavier(shape):
        fan_in, fan_out = shape[-2], shape[-1]
        bound = math.sqrt(6.0 / (fan_in + fan_out))
        return jax.random.uniform(next(keys), shape, jnp.float32, -bound, bound)

    p = {}
    p['revin_gamma'] = jnp.ones((NUM_CHANNELS,), jnp.float32)
    p['revin_beta'] = jnp.zeros((NUM_CHANNELS,), jnp.float32)
    p['wp'] = xavier((PATCH_DIM, D_MODEL))
    p['bp'] = jnp.zeros((D_MODEL,), jnp.float32)
    # pe='zeros', learn_pe=True -> U(-0.02, 0.02) init
    p['wpos'] = jax.random.uniform(next(keys), (NUM_PATCHES, D_MODEL),
                                   jnp.float32, -0.02, 0.02)
    p['wq'] = xavier((NUM_ENC_LAYERS, D_MODEL, D_MODEL))
    p['wk'] = xavier((NUM_ENC_LAYERS, D_MODEL, D_MODEL))
    p['wv'] = xavier((NUM_ENC_LAYERS, D_MODEL, D_MODEL))
    p['wo'] = xavier((NUM_ENC_LAYERS, D_MODEL, D_MODEL))
    p['bq'] = jnp.zeros((NUM_ENC_LAYERS, D_MODEL), jnp.float32)
    p['bk'] = jnp.zeros((NUM_ENC_LAYERS, D_MODEL), jnp.float32)
    p['bv'] = jnp.zeros((NUM_ENC_LAYERS, D_MODEL), jnp.float32)
    p['bo'] = jnp.zeros((NUM_ENC_LAYERS, D_MODEL), jnp.float32)
    p['bn1_g'] = jnp.ones((NUM_ENC_LAYERS, D_MODEL), jnp.float32)
    p['bn1_b'] = jnp.zeros((NUM_ENC_LAYERS, D_MODEL), jnp.float32)
    p['bn2_g'] = jnp.ones((NUM_ENC_LAYERS, D_MODEL), jnp.float32)
    p['bn2_b'] = jnp.zeros((NUM_ENC_LAYERS, D_MODEL), jnp.float32)
    p['wff1'] = xavier((NUM_ENC_LAYERS, D_MODEL, D_FF))
    p['bff1'] = jnp.zeros((NUM_ENC_LAYERS, D_FF), jnp.float32)
    p['wff2'] = xavier((NUM_ENC_LAYERS, D_FF, D_MODEL))
    p['bff2'] = jnp.zeros((NUM_ENC_LAYERS, D_MODEL), jnp.float32)
    # flatten head: torch Flatten(start_dim=-2) of (d_model, num_patches) =>
    # flattened feature index = d * NUM_PATCHES + n (d_model-major).
    p['wh'] = xavier((D_MODEL * NUM_PATCHES, PRED_LEN))
    p['bh'] = jnp.zeros((PRED_LEN,), jnp.float32)
    return p


# -------------------------------- wrapper ------------------------------------
def _pad_row(v):
    return jnp.pad(v, (0, 128 - v.shape[0]))


@jax.jit
def patchtst_forward(x, mask, params):
    """x: (B, C, L) f32, mask: (B, C, NUM_PATCHES) f32 -> (B, C, PRED_LEN).

    An all-ones mask reproduces the plain PatchTSTOG forward; a binary mask
    zeroes out normalized patches (blind-masked variant).
    """
    B, C, L = x.shape
    BC = B * C
    R = BC * NUM_PATCHES
    scale = 1.0 / math.sqrt(HEAD_DIM)

    # -- pure data rearrangement: replication pad + unfold patching ----------
    xpad = jnp.concatenate(
        [x, jnp.repeat(x[:, :, -1:], PATCH_STRIDE, axis=-1)], axis=-1)
    idx = (jnp.arange(NUM_PATCHES)[:, None] * PATCH_STRIDE
           + jnp.arange(PATCH_DIM)[None, :])
    patches = xpad[:, :, idx].reshape(R, PATCH_DIM)      # row = bc*NP + n

    # -- per-series slab: [ x | gamma | beta | 1/(gamma+eps^2) | pad ] -------
    g = jnp.tile(params['revin_gamma'], B)[:, None]
    b = jnp.tile(params['revin_beta'], B)[:, None]
    ig = (1.0 / (jnp.tile(params['revin_gamma'], B)
                 + EPS_REVIN * EPS_REVIN))[:, None]
    xs = jnp.concatenate([x.reshape(BC, L), g, b, ig,
                          jnp.zeros((BC, 5), jnp.float32)], axis=1)    # (BC, 24)

    # -- per-token slab: [ patches | mask | positional encoding ] -------------
    maskb = jnp.broadcast_to(mask.astype(jnp.float32).reshape(R, 1),
                             (R, PATCH_DIM))
    pos_r = jnp.tile(params['wpos'], (BC, 1))
    tok = jnp.concatenate([patches, maskb, pos_r], axis=1)             # (R, 48)

    # -- host-built selector / mask constants (one slab, one DMA) -------------
    cst = jnp.asarray(_build_constants(BC))

    # -- weights slab (parameter rearrangement only; one DMA) -----------------
    wts = jnp.zeros((_WTS_ROWS, 128), jnp.float32)
    for l in range(NUM_ENC_LAYERS):
        a0 = _WTS_ATTN_OFF + l * D_MODEL
        f0 = _WTS_FF_OFF + l * D_FF
        wqkv = jnp.concatenate([params['wq'][l] * scale,   # fold 1/sqrt(d_k)
                                params['wk'][l], params['wv'][l]], axis=1)
        wts = wts.at[a0:a0 + D_MODEL, 0:QKV_W].set(wqkv)
        wts = wts.at[a0:a0 + D_MODEL, QKV_W:QKV_W + D_MODEL].set(params['wo'][l])
        wts = wts.at[f0:f0 + D_MODEL, 0:D_FF].set(params['wff1'][l])
        wts = wts.at[f0:f0 + D_FF, D_FF:D_FF + D_MODEL].set(params['wff2'][l])
    bias_rows = []
    for l in range(NUM_ENC_LAYERS):
        bias_rows += [
            _pad_row(jnp.concatenate([params['bq'][l] * scale,
                                      params['bk'][l], params['bv'][l]])),
            _pad_row(params['bo'][l]),
            _pad_row(params['bn1_g'][l]), _pad_row(params['bn1_b'][l]),
            _pad_row(params['bff1'][l]), _pad_row(params['bff2'][l]),
            _pad_row(params['bn2_g'][l]), _pad_row(params['bn2_b'][l]),
        ]
    bias_rows += [_pad_row(params['bp']), _pad_row(params['bh'])]
    biases = jnp.stack(bias_rows, axis=0)                               # (18,128)
    wts = wts.at[_WTS_BIAS_OFF:_WTS_BIAS_OFF + _BIAS_ROWS, :].set(biases)
    wts = wts.at[_WTS_WP_OFF:_WTS_WP_OFF + PATCH_DIM, 0:D_MODEL].set(params['wp'])
    wts = wts.at[_WTS_WH_OFF:_WTS_WH_OFF + D_MODEL, 0:HEAD_W].set(
        params['wh'].reshape(D_MODEL, HEAD_W))

    vmem = pl.BlockSpec(memory_space=pltpu.MemorySpace.VMEM)
    out = pl.pallas_call(
        patchtst_kernel,
        out_shape=jax.ShapeDtypeStruct((BC, PRED_LEN), jnp.float32),
        in_specs=[vmem, vmem, vmem, vmem],
        out_specs=vmem,
    )(xs, tok, cst, wts)
    return out.reshape(B, C, PRED_LEN)


if __name__ == "__main__":
    key = jax.random.PRNGKey(0)
    kx, kparams = jax.random.split(key, 2)
    x = jax.random.normal(kx, (BATCH, NUM_CHANNELS, SEQ_LEN), jnp.float32)
    # all-ones mask => exact PatchTSTOG forward semantics
    mask = jnp.ones((BATCH, NUM_CHANNELS, NUM_PATCHES), jnp.float32)
    params = init_params(kparams)

    y = patchtst_forward(x, mask, params)
    jax.block_until_ready(y)
    assert y.shape == (BATCH, NUM_CHANNELS, PRED_LEN)
    assert bool(jnp.all(jnp.isfinite(y)))
    print("KERNEL_OK")
</pallas_src>

<mosaic_0001>
module attributes {stable_mosaic.version = 11 : i64} {
  func.func @patchtst_kernel(%arg0: memref<8x24xf32, #tpu.memory_space<vmem>>, %arg1: memref<32x48xf32, #tpu.memory_space<vmem>>, %arg2: memref<520x128xf32, #tpu.memory_space<vmem>>, %arg3: memref<256x128xf32, #tpu.memory_space<vmem>>, %arg4: memref<8x8xf32, #tpu.memory_space<vmem>>) attributes {dimension_semantics = [], scalar_prefetch = 0 : i64, scratch_operands = 0 : i64, tpu.core_type = #tpu.core_type<tc>} {
    %c0 = arith.constant 0 : index
    %c0_0 = arith.constant 0 : index
    %0 = vector.load %arg2[%c0, %c0_0] : memref<520x128xf32, #tpu.memory_space<vmem>>, vector<128x32xf32>
    %c128 = arith.constant 128 : index
    %c0_1 = arith.constant 0 : index
    %1 = vector.load %arg2[%c128, %c0_1] : memref<520x128xf32, #tpu.memory_space<vmem>>, vector<128x32xf32>
    %c256 = arith.constant 256 : index
    %c0_2 = arith.constant 0 : index
    %2 = vector.load %arg2[%c256, %c0_2] : memref<520x128xf32, #tpu.memory_space<vmem>>, vector<128x32xf32>
    %c384 = arith.constant 384 : index
    %c0_3 = arith.constant 0 : index
    %3 = vector.load %arg2[%c384, %c0_3] : memref<520x128xf32, #tpu.memory_space<vmem>>, vector<32x128xf32>
    %c416 = arith.constant 416 : index
    %c0_4 = arith.constant 0 : index
    %4 = vector.load %arg2[%c416, %c0_4] : memref<520x128xf32, #tpu.memory_space<vmem>>, vector<32x32xf32>
    %c448 = arith.constant 448 : index
    %c0_5 = arith.constant 0 : index
    %5 = vector.load %arg2[%c448, %c0_5] : memref<520x128xf32, #tpu.memory_space<vmem>>, vector<32x8xf32>
    %c480 = arith.constant 480 : index
    %c0_6 = arith.constant 0 : index
    %6 = vector.load %arg2[%c480, %c0_6] : memref<520x128xf32, #tpu.memory_space<vmem>>, vector<8x32xf32>
    %c488 = arith.constant 488 : index
    %c0_7 = arith.constant 0 : index
    %7 = vector.load %arg2[%c488, %c0_7] : memref<520x128xf32, #tpu.memory_space<vmem>>, vector<32x8xf32>
    %c192 = arith.constant 192 : index
    %c0_8 = arith.constant 0 : index
    %8 = vector.load %arg3[%c192, %c0_8] : memref<256x128xf32, #tpu.memory_space<vmem>>, vector<24x128xf32>
    %c0_9 = arith.constant 0 : index
    %c0_10 = arith.constant 0 : index
    %9 = vector.load %arg0[%c0_9, %c0_10] : memref<8x24xf32, #tpu.memory_space<vmem>>, vector<8x24xf32>
    %10 = vector.extract_strided_slice %9 {offsets = [0, 0], sizes = [8, 16], strides = [1, 1]} : vector<8x24xf32> to vector<8x16xf32>
    %11 = vector.extract_strided_slice %9 {offsets = [0, 16], sizes = [8, 1], strides = [1, 1]} : vector<8x24xf32> to vector<8x1xf32>
    %12 = vector.extract_strided_slice %9 {offsets = [0, 17], sizes = [8, 1], strides = [1, 1]} : vector<8x24xf32> to vector<8x1xf32>
    %13 = vector.extract_strided_slice %9 {offsets = [0, 18], sizes = [8, 1], strides = [1, 1]} : vector<8x24xf32> to vector<8x1xf32>
    %cst = arith.constant dense<0.000000e+00> : vector<8xf32>
    %14 = vector.multi_reduction <add>, %10, %cst [1] : vector<8x16xf32> to vector<8xf32>
    %15 = vector.shape_cast %14 : vector<8xf32> to vector<8x1xf32>
    %cst_11 = arith.constant 1.600000e+01 : f32
    %16 = vector.broadcast %cst_11 : f32 to vector<8x1xf32>
    %17 = arith.divf %15, %16 : vector<8x1xf32>
    %18 = arith.mulf %10, %10 : vector<8x16xf32>
    %cst_12 = arith.constant dense<0.000000e+00> : vector<8xf32>
    %19 = vector.multi_reduction <add>, %18, %cst_12 [1] : vector<8x16xf32> to vector<8xf32>
    %20 = vector.shape_cast %19 : vector<8xf32> to vector<8x1xf32>
    %cst_13 = arith.constant 1.600000e+01 : f32
    %21 = vector.broadcast %cst_13 : f32 to vector<8x1xf32>
    %22 = arith.divf %20, %21 : vector<8x1xf32>
    %23 = arith.mulf %17, %17 : vector<8x1xf32>
    %24 = arith.subf %22, %23 : vector<8x1xf32>
    %cst_14 = arith.constant 0.000000e+00 : f32
    %25 = vector.broadcast %cst_14 : f32 to vector<8x1xf32>
    %26 = arith.maximumf %24, %25 : vector<8x1xf32>
    %cst_15 = arith.constant 9.99999974E-6 : f32
    %27 = vector.broadcast %cst_15 : f32 to vector<8x1xf32>
    %28 = arith.addf %26, %27 : vector<8x1xf32>
    %29 = math.rsqrt %28 : vector<8x1xf32>
    %cst_16 = arith.constant 9.99999974E-6 : f32
    %30 = vector.broadcast %cst_16 : f32 to vector<8x1xf32>
    %31 = arith.addf %26, %30 : vector<8x1xf32>
    %32 = arith.mulf %31, %29 : vector<8x1xf32>
    %33 = arith.mulf %29, %11 : vector<8x1xf32>
    %34 = arith.mulf %17, %33 : vector<8x1xf32>
    %35 = arith.subf %12, %34 : vector<8x1xf32>
    %36 = tpu.concatenate %33, %35 in 1 : vector<8x1xf32>, vector<8x1xf32> -> vector<8x2xf32>
    %cst_17 = arith.constant dense<0.000000e+00> : vector<32x2xf32>
    %37 = tpu.matmul %5, %36, %cst_17 {dimension_numbers = #tpu.dot_dimension_numbers<[1], [0], [0], [1], [0, 0, 1, 1], [], []>} : vector<32x8xf32>, vector<8x2xf32>, vector<32x2xf32> -> vector<32x2xf32>
    %c0_18 = arith.constant 0 : index
    %c0_19 = arith.constant 0 : index
    %38 = vector.load %arg1[%c0_18, %c0_19] : memref<32x48xf32, #tpu.memory_space<vmem>>, vector<32x48xf32>
    %39 = vector.extract_strided_slice %38 {offsets = [0, 0], sizes = [32, 8], strides = [1, 1]} : vector<32x48xf32> to vector<32x8xf32>
    %40 = vector.extract_strided_slice %38 {offsets = [0, 8], sizes = [32, 8], strides = [1, 1]} : vector<32x48xf32> to vector<32x8xf32>
    %41 = vector.extract_strided_slice %38 {offsets = [0, 16], sizes = [32, 32], strides = [1, 1]} : vector<32x48xf32> to vector<32x32xf32>
    %42 = vector.extract_strided_slice %37 {offsets = [0, 0], sizes = [32, 1], strides = [1, 1]} : vector<32x2xf32> to vector<32x1xf32>
    %43 = vector.broadcast %42 : vector<32x1xf32> to vector<32x8xf32>
    %44 = arith.mulf %39, %43 : vector<32x8xf32>
    %45 = vector.extract_strided_slice %37 {offsets = [0, 1], sizes = [32, 1], strides = [1, 1]} : vector<32x2xf32> to vector<32x1xf32>
    %46 = vector.broadcast %45 : vector<32x1xf32> to vector<32x8xf32>
    %47 = arith.addf %44, %46 : vector<32x8xf32>
    %48 = arith.mulf %47, %40 : vector<32x8xf32>
    %c216 = arith.constant 216 : index
    %c0_20 = arith.constant 0 : index
    %49 = vector.load %arg3[%c216, %c0_20] : memref<256x128xf32, #tpu.memory_space<vmem>>, vector<8x32xf32>
    %cst_21 = arith.constant dense<0.000000e+00> : vector<32x32xf32>
    %50 = tpu.matmul %48, %49, %cst_21 {dimension_numbers = #tpu.dot_dimension_numbers<[1], [0], [0], [1], [0, 0, 1, 1], [], []>} : vector<32x8xf32>, vector<8x32xf32>, vector<32x32xf32> -> vector<32x32xf32>
    %51 = vector.extract_strided_slice %8 {offsets = [16, 0], sizes = [1, 32], strides = [1, 1]} : vector<24x128xf32> to vector<1x32xf32>
    %52 = vector.broadcast %51 : vector<1x32xf32> to vector<32x32xf32>
    %53 = arith.addf %50, %52 : vector<32x32xf32>
    %54 = arith.addf %53, %41 : vector<32x32xf32>
    %c0_22 = arith.constant 0 : index
    %c0_23 = arith.constant 0 : index
    %55 = vector.load %arg3[%c0_22, %c0_23] : memref<256x128xf32, #tpu.memory_space<vmem>>, vector<32x96xf32>
    %c0_24 = arith.constant 0 : index
    %c96 = arith.constant 96 : index
    %56 = vector.load %arg3[%c0_24, %c96] : memref<256x128xf32, #tpu.memory_space<vmem>>, vector<32x32xf32>
    %c64 = arith.constant 64 : index
    %c0_25 = arith.constant 0 : index
    %57 = vector.load %arg3[%c64, %c0_25] : memref<256x128xf32, #tpu.memory_space<vmem>>, vector<32x64xf32>
    %c64_26 = arith.constant 64 : index
    %c64_27 = arith.constant 64 : index
    %58 = vector.load %arg3[%c64_26, %c64_27] : memref<256x128xf32, #tpu.memory_space<vmem>>, vector<64x32xf32>
    %cst_28 = arith.constant dense<0.000000e+00> : vector<32x96xf32>
    %59 = tpu.matmul %54, %55, %cst_28 {dimension_numbers = #tpu.dot_dimension_numbers<[1], [0], [0], [1], [0, 0, 1, 1], [], []>} : vector<32x32xf32>, vector<32x96xf32>, vector<32x96xf32> -> vector<32x96xf32>
    %60 = vector.extract_strided_slice %8 {offsets = [0, 0], sizes = [1, 96], strides = [1, 1]} : vector<24x128xf32> to vector<1x96xf32>
    %61 = vector.broadcast %60 : vector<1x96xf32> to vector<32x96xf32>
    %62 = arith.addf %59, %61 : vector<32x96xf32>
    %63 = vector.extract_strided_slice %62 {offsets = [0, 0], sizes = [32, 32], strides = [1, 1]} : vector<32x96xf32> to vector<32x32xf32>
    %64 = vector.extract_strided_slice %62 {offsets = [0, 32], sizes = [32, 32], strides = [1, 1]} : vector<32x96xf32> to vector<32x32xf32>
    %65 = vector.extract_strided_slice %62 {offsets = [0, 64], sizes = [32, 32], strides = [1, 1]} : vector<32x96xf32> to vector<32x32xf32>
    %cst_29 = arith.constant dense<0.000000e+00> : vector<128x32xf32>
    %66 = tpu.matmul %2, %63, %cst_29 {dimension_numbers = #tpu.dot_dimension_numbers<[1], [0], [0], [1], [0, 0, 1, 1], [], []>} : vector<128x32xf32>, vector<32x32xf32>, vector<128x32xf32> -> vector<128x32xf32>
    %67 = arith.mulf %66, %1 : vector<128x32xf32>
    %cst_30 = arith.constant dense<0.000000e+00> : vector<128x32xf32>
    %68 = tpu.matmul %67, %64, %cst_30 {dimension_numbers = #tpu.dot_dimension_numbers<[1], [1], [0], [0], [0, 0, 1, 0], [], []>} : vector<128x32xf32>, vector<32x32xf32>, vector<128x32xf32> -> vector<128x32xf32>
    %69 = arith.addf %68, %0 : vector<128x32xf32>
    %cst_31 = arith.constant dense<0xFF800000> : vector<128xf32>
    %70 = vector.multi_reduction <maximumf>, %69, %cst_31 [1] : vector<128x32xf32> to vector<128xf32>
    %71 = vector.shape_cast %70 : vector<128xf32> to vector<128x1xf32>
    %72 = vector.broadcast %71 : vector<128x1xf32> to vector<128x32xf32>
    %73 = arith.subf %69, %72 : vector<128x32xf32>
    %74 = math.exp %73 : vector<128x32xf32>
    %cst_32 = arith.constant dense<0.000000e+00> : vector<128xf32>
    %75 = vector.multi_reduction <add>, %74, %cst_32 [1] : vector<128x32xf32> to vector<128xf32>
    %76 = vector.shape_cast %75 : vector<128xf32> to vector<128x1xf32>
    %77 = tpu.reciprocal %76 {approx = true} : vector<128x1xf32> -> vector<128x1xf32>
    %78 = vector.broadcast %77 : vector<128x1xf32> to vector<128x32xf32>
    %79 = arith.mulf %74, %78 : vector<128x32xf32>
    %cst_33 = arith.constant dense<0.000000e+00> : vector<128x32xf32>
    %80 = tpu.matmul %79, %65, %cst_33 {dimension_numbers = #tpu.dot_dimension_numbers<[1], [0], [0], [1], [0, 0, 1, 1], [], []>} : vector<128x32xf32>, vector<32x32xf32>, vector<128x32xf32> -> vector<128x32xf32>
    %81 = arith.mulf %80, %1 : vector<128x32xf32>
    %cst_34 = arith.constant dense<0.000000e+00> : vector<32x32xf32>
    %82 = tpu.matmul %3, %81, %cst_34 {dimension_numbers = #tpu.dot_dimension_numbers<[1], [0], [0], [1], [0, 0, 1, 1], [], []>} : vector<32x128xf32>, vector<128x32xf32>, vector<32x32xf32> -> vector<32x32xf32>
    %cst_35 = arith.constant dense<0.000000e+00> : vector<32x32xf32>
    %83 = tpu.matmul %82, %56, %cst_35 {dimension_numbers = #tpu.dot_dimension_numbers<[1], [0], [0], [1], [0, 0, 1, 1], [], []>} : vector<32x32xf32>, vector<32x32xf32>, vector<32x32xf32> -> vector<32x32xf32>
    %84 = vector.extract_strided_slice %8 {offsets = [1, 0], sizes = [1, 32], strides = [1, 1]} : vector<24x128xf32> to vector<1x32xf32>
    %85 = vector.broadcast %84 : vector<1x32xf32> to vector<32x32xf32>
    %86 = arith.addf %83, %85 : vector<32x32xf32>
    %87 = arith.addf %54, %86 : vector<32x32xf32>
    %88 = vector.extract_strided_slice %8 {offsets = [2, 0], sizes = [1, 32], strides = [1, 1]} : vector<24x128xf32> to vector<1x32xf32>
    %89 = vector.extract_strided_slice %8 {offsets = [3, 0], sizes = [1, 32], strides = [1, 1]} : vector<24x128xf32> to vector<1x32xf32>
    %cst_36 = arith.constant dense<0.000000e+00> : vector<32xf32>
    %90 = vector.multi_reduction <add>, %87, %cst_36 [0] : vector<32x32xf32> to vector<32xf32>
    %91 = vector.shape_cast %90 : vector<32xf32> to vector<1x32xf32>
    %cst_37 = arith.constant 3.200000e+01 : f32
    %92 = vector.broadcast %cst_37 : f32 to vector<1x32xf32>
    %93 = arith.divf %91, %92 : vector<1x32xf32>
    %94 = arith.mulf %87, %87 : vector<32x32xf32>
    %cst_38 = arith.constant dense<0.000000e+00> : vector<32xf32>
    %95 = vector.multi_reduction <add>, %94, %cst_38 [0] : vector<32x32xf32> to vector<32xf32>
    %96 = vector.shape_cast %95 : vector<32xf32> to vector<1x32xf32>
    %cst_39 = arith.constant 3.200000e+01 : f32
    %97 = vector.broadcast %cst_39 : f32 to vector<1x32xf32>
    %98 = arith.divf %96, %97 : vector<1x32xf32>
    %99 = arith.mulf %93, %93 : vector<1x32xf32>
    %100 = arith.subf %98, %99 : vector<1x32xf32>
    %cst_40 = arith.constant 0.000000e+00 : f32
    %101 = vector.broadcast %cst_40 : f32 to vector<1x32xf32>
    %102 = arith.maximumf %100, %101 : vector<1x32xf32>
    %103 = vector.broadcast %93 : vector<1x32xf32> to vector<32x32xf32>
    %104 = arith.subf %87, %103 : vector<32x32xf32>
    %cst_41 = arith.constant 9.99999974E-6 : f32
    %105 = vector.broadcast %cst_41 : f32 to vector<1x32xf32>
    %106 = arith.addf %102, %105 : vector<1x32xf32>
    %107 = math.rsqrt %106 : vector<1x32xf32>
    %108 = arith.mulf %107, %88 : vector<1x32xf32>
    %109 = vector.broadcast %108 : vector<1x32xf32> to vector<32x32xf32>
    %110 = arith.mulf %104, %109 : vector<32x32xf32>
    %111 = vector.broadcast %89 : vector<1x32xf32> to vector<32x32xf32>
    %112 = arith.addf %110, %111 : vector<32x32xf32>
    %cst_42 = arith.constant dense<0.000000e+00> : vector<32x64xf32>
    %113 = tpu.matmul %112, %57, %cst_42 {dimension_numbers = #tpu.dot_dimension_numbers<[1], [0], [0], [1], [0, 0, 1, 1], [], []>} : vector<32x32xf32>, vector<32x64xf32>, vector<32x64xf32> -> vector<32x64xf32>
    %114 = vector.extract_strided_slice %8 {offsets = [4, 0], sizes = [1, 64], strides = [1, 1]} : vector<24x128xf32> to vector<1x64xf32>
    %115 = vector.broadcast %114 : vector<1x64xf32> to vector<32x64xf32>
    %116 = arith.addf %113, %115 : vector<32x64xf32>
    %cst_43 = arith.constant 5.000000e-01 : f32
    %117 = vector.broadcast %cst_43 : f32 to vector<32x64xf32>
    %118 = arith.mulf %117, %116 : vector<32x64xf32>
    %cst_44 = arith.constant 4.471500e-02 : f32
    %119 = vector.broadcast %cst_44 : f32 to vector<32x64xf32>
    %120 = arith.mulf %119, %116 : vector<32x64xf32>
    %121 = arith.mulf %120, %116 : vector<32x64xf32>
    %122 = arith.mulf %121, %116 : vector<32x64xf32>
    %123 = arith.addf %116, %122 : vector<32x64xf32>
    %cst_45 = arith.constant 0.797884583 : f32
    %124 = vector.broadcast %cst_45 : f32 to vector<32x64xf32>
    %125 = arith.mulf %124, %123 : vector<32x64xf32>
    %126 = math.tanh %125 : vector<32x64xf32>
    %cst_46 = arith.constant 1.000000e+00 : f32
    %127 = vector.broadcast %cst_46 : f32 to vector<32x64xf32>
    %128 = arith.addf %127, %126 : vector<32x64xf32>
    %129 = arith.mulf %118, %128 : vector<32x64xf32>
    %cst_47 = arith.constant dense<0.000000e+00> : vector<32x32xf32>
    %130 = tpu.matmul %129, %58, %cst_47 {dimension_numbers = #tpu.dot_dimension_numbers<[1], [0], [0], [1], [0, 0, 1, 1], [], []>} : vector<32x64xf32>, vector<64x32xf32>, vector<32x32xf32> -> vector<32x32xf32>
    %131 = vector.extract_strided_slice %8 {offsets = [5, 0], sizes = [1, 32], strides = [1, 1]} : vector<24x128xf32> to vector<1x32xf32>
    %132 = vector.broadcast %131 : vector<1x32xf32> to vector<32x32xf32>
    %133 = arith.addf %130, %132 : vector<32x32xf32>
    %134 = arith.addf %112, %133 : vector<32x32xf32>
    %135 = vector.extract_strided_slice %8 {offsets = [6, 0], sizes = [1, 32], strides = [1, 1]} : vector<24x128xf32> to vector<1x32xf32>
    %136 = vector.extract_strided_slice %8 {offsets = [7, 0], sizes = [1, 32], strides = [1, 1]} : vector<24x128xf32> to vector<1x32xf32>
    %cst_48 = arith.constant dense<0.000000e+00> : vector<32xf32>
    %137 = vector.multi_reduction <add>, %134, %cst_48 [0] : vector<32x32xf32> to vector<32xf32>
    %138 = vector.shape_cast %137 : vector<32xf32> to vector<1x32xf32>
    %cst_49 = arith.constant 3.200000e+01 : f32
    %139 = vector.broadcast %cst_49 : f32 to vector<1x32xf32>
    %140 = arith.divf %138, %139 : vector<1x32xf32>
    %141 = arith.mulf %134, %134 : vector<32x32xf32>
    %cst_50 = arith.constant dense<0.000000e+00> : vector<32xf32>
    %142 = vector.multi_reduction <add>, %141, %cst_50 [0] : vector<32x32xf32> to vector<32xf32>
    %143 = vector.shape_cast %142 : vector<32xf32> to vector<1x32xf32>
    %cst_51 = arith.constant 3.200000e+01 : f32
    %144 = vector.broadcast %cst_51 : f32 to vector<1x32xf32>
    %145 = arith.divf %143, %144 : vector<1x32xf32>
    %146 = arith.mulf %140, %140 : vector<1x32xf32>
    %147 = arith.subf %145, %146 : vector<1x32xf32>
    %cst_52 = arith.constant 0.000000e+00 : f32
    %148 = vector.broadcast %cst_52 : f32 to vector<1x32xf32>
    %149 = arith.maximumf %147, %148 : vector<1x32xf32>
    %150 = vector.broadcast %140 : vector<1x32xf32> to vector<32x32xf32>
    %151 = arith.subf %134, %150 : vector<32x32xf32>
    %cst_53 = arith.constant 9.99999974E-6 : f32
    %152 = vector.broadcast %cst_53 : f32 to vector<1x32xf32>
    %153 = arith.addf %149, %152 : vector<1x32xf32>
    %154 = math.rsqrt %153 : vector<1x32xf32>
    %155 = arith.mulf %154, %135 : vector<1x32xf32>
    %156 = vector.broadcast %155 : vector<1x32xf32> to vector<32x32xf32>
    %157 = arith.mulf %151, %156 : vector<32x32xf32>
    %158 = vector.broadcast %136 : vector<1x32xf32> to vector<32x32xf32>
    %159 = arith.addf %157, %158 : vector<32x32xf32>
    %c32 = arith.constant 32 : index
    %c0_54 = arith.constant 0 : index
    %160 = vector.load %arg3[%c32, %c0_54] : memref<256x128xf32, #tpu.memory_space<vmem>>, vector<32x96xf32>
    %c32_55 = arith.constant 32 : index
    %c96_56 = arith.constant 96 : index
    %161 = vector.load %arg3[%c32_55, %c96_56] : memref<256x128xf32, #tpu.memory_space<vmem>>, vector<32x32xf32>
    %c128_57 = arith.constant 128 : index
    %c0_58 = arith.constant 0 : index
    %162 = vector.load %arg3[%c128_57, %c0_58] : memref<256x128xf32, #tpu.memory_space<vmem>>, vector<32x64xf32>
    %c128_59 = arith.constant 128 : index
    %c64_60 = arith.constant 64 : index
    %163 = vector.load %arg3[%c128_59, %c64_60] : memref<256x128xf32, #tpu.memory_space<vmem>>, vector<64x32xf32>
    %cst_61 = arith.constant dense<0.000000e+00> : vector<32x96xf32>
    %164 = tpu.matmul %159, %160, %cst_61 {dimension_numbers = #tpu.dot_dimension_numbers<[1], [0], [0], [1], [0, 0, 1, 1], [], []>} : vector<32x32xf32>, vector<32x96xf32>, vector<32x96xf32> -> vector<32x96xf32>
    %165 = vector.extract_strided_slice %8 {offsets = [8, 0], sizes = [1, 96], strides = [1, 1]} : vector<24x128xf32> to vector<1x96xf32>
    %166 = vector.broadcast %165 : vector<1x96xf32> to vector<32x96xf32>
    %167 = arith.addf %164, %166 : vector<32x96xf32>
    %168 = vector.extract_strided_slice %167 {offsets = [0, 0], sizes = [32, 32], strides = [1, 1]} : vector<32x96xf32> to vector<32x32xf32>
    %169 = vector.extract_strided_slice %167 {offsets = [0, 32], sizes = [32, 32], strides = [1, 1]} : vector<32x96xf32> to vector<32x32xf32>
    %170 = vector.extract_strided_slice %167 {offsets = [0, 64], sizes = [32, 32], strides = [1, 1]} : vector<32x96xf32> to vector<32x32xf32>
    %cst_62 = arith.constant dense<0.000000e+00> : vector<128x32xf32>
    %171 = tpu.matmul %2, %168, %cst_62 {dimension_numbers = #tpu.dot_dimension_numbers<[1], [0], [0], [1], [0, 0, 1, 1], [], []>} : vector<128x32xf32>, vector<32x32xf32>, vector<128x32xf32> -> vector<128x32xf32>
    %172 = arith.mulf %171, %1 : vector<128x32xf32>
    %cst_63 = arith.constant dense<0.000000e+00> : vector<128x32xf32>
    %173 = tpu.matmul %172, %169, %cst_63 {dimension_numbers = #tpu.dot_dimension_numbers<[1], [1], [0], [0], [0, 0, 1, 0], [], []>} : vector<128x32xf32>, vector<32x32xf32>, vector<128x32xf32> -> vector<128x32xf32>
    %174 = arith.addf %173, %68 : vector<128x32xf32>
    %175 = arith.addf %174, %0 : vector<128x32xf32>
    %cst_64 = arith.constant dense<0xFF800000> : vector<128xf32>
    %176 = vector.multi_reduction <maximumf>, %175, %cst_64 [1] : vector<128x32xf32> to vector<128xf32>
    %177 = vector.shape_cast %176 : vector<128xf32> to vector<128x1xf32>
    %178 = vector.broadcast %177 : vector<128x1xf32> to vector<128x32xf32>
    %179 = arith.subf %175, %178 : vector<128x32xf32>
    %180 = math.exp %179 : vector<128x32xf32>
    %cst_65 = arith.constant dense<0.000000e+00> : vector<128xf32>
    %181 = vector.multi_reduction <add>, %180, %cst_65 [1] : vector<128x32xf32> to vector<128xf32>
    %182 = vector.shape_cast %181 : vector<128xf32> to vector<128x1xf32>
    %183 = tpu.reciprocal %182 {approx = true} : vector<128x1xf32> -> vector<128x1xf32>
    %184 = vector.broadcast %183 : vector<128x1xf32> to vector<128x32xf32>
    %185 = arith.mulf %180, %184 : vector<128x32xf32>
    %cst_66 = arith.constant dense<0.000000e+00> : vector<128x32xf32>
    %186 = tpu.matmul %185, %170, %cst_66 {dimension_numbers = #tpu.dot_dimension_numbers<[1], [0], [0], [1], [0, 0, 1, 1], [], []>} : vector<128x32xf32>, vector<32x32xf32>, vector<128x32xf32> -> vector<128x32xf32>
    %187 = arith.mulf %186, %1 : vector<128x32xf32>
    %cst_67 = arith.constant dense<0.000000e+00> : vector<32x32xf32>
    %188 = tpu.matmul %3, %187, %cst_67 {dimension_numbers = #tpu.dot_dimension_numbers<[1], [0], [0], [1], [0, 0, 1, 1], [], []>} : vector<32x128xf32>, vector<128x32xf32>, vector<32x32xf32> -> vector<32x32xf32>
    %cst_68 = arith.constant dense<0.000000e+00> : vector<32x32xf32>
    %189 = tpu.matmul %188, %161, %cst_68 {dimension_numbers = #tpu.dot_dimension_numbers<[1], [0], [0], [1], [0, 0, 1, 1], [], []>} : vector<32x32xf32>, vector<32x32xf32>, vector<32x32xf32> -> vector<32x32xf32>
    %190 = vector.extract_strided_slice %8 {offsets = [9, 0], sizes = [1, 32], strides = [1, 1]} : vector<24x128xf32> to vector<1x32xf32>
    %191 = vector.broadcast %190 : vector<1x32xf32> to vector<32x32xf32>
    %192 = arith.addf %189, %191 : vector<32x32xf32>
    %193 = arith.addf %159, %192 : vector<32x32xf32>
    %194 = vector.extract_strided_slice %8 {offsets = [10, 0], sizes = [1, 32], strides = [1, 1]} : vector<24x128xf32> to vector<1x32xf32>
    %195 = vector.extract_strided_slice %8 {offsets = [11, 0], sizes = [1, 32], strides = [1, 1]} : vector<24x128xf32> to vector<1x32xf32>
    %cst_69 = arith.constant dense<0.000000e+00> : vector<32xf32>
    %196 = vector.multi_reduction <add>, %193, %cst_69 [0] : vector<32x32xf32> to vector<32xf32>
    %197 = vector.shape_cast %196 : vector<32xf32> to vector<1x32xf32>
    %cst_70 = arith.constant 3.200000e+01 : f32
    %198 = vector.broadcast %cst_70 : f32 to vector<1x32xf32>
    %199 = arith.divf %197, %198 : vector<1x32xf32>
    %200 = arith.mulf %193, %193 : vector<32x32xf32>
    %cst_71 = arith.constant dense<0.000000e+00> : vector<32xf32>
    %201 = vector.multi_reduction <add>, %200, %cst_71 [0] : vector<32x32xf32> to vector<32xf32>
    %202 = vector.shape_cast %201 : vector<32xf32> to vector<1x32xf32>
    %cst_72 = arith.constant 3.200000e+01 : f32
    %203 = vector.broadcast %cst_72 : f32 to vector<1x32xf32>
    %204 = arith.divf %202, %203 : vector<1x32xf32>
    %205 = arith.mulf %199, %199 : vector<1x32xf32>
    %206 = arith.subf %204, %205 : vector<1x32xf32>
    %cst_73 = arith.constant 0.000000e+00 : f32
    %207 = vector.broadcast %cst_73 : f32 to vector<1x32xf32>
    %208 = arith.maximumf %206, %207 : vector<1x32xf32>
    %209 = vector.broadcast %199 : vector<1x32xf32> to vector<32x32xf32>
    %210 = arith.subf %193, %209 : vector<32x32xf32>
    %cst_74 = arith.constant 9.99999974E-6 : f32
    %211 = vector.broadcast %cst_74 : f32 to vector<1x32xf32>
    %212 = arith.addf %208, %211 : vector<1x32xf32>
    %213 = math.rsqrt %212 : vector<1x32xf32>
    %214 = arith.mulf %213, %194 : vector<1x32xf32>
    %215 = vector.broadcast %214 : vector<1x32xf32> to vector<32x32xf32>
    %216 = arith.mulf %210, %215 : vector<32x32xf32>
    %217 = vector.broadcast %195 : vector<1x32xf32> to vector<32x32xf32>
    %218 = arith.addf %216, %217 : vector<32x32xf32>
    %cst_75 = arith.constant dense<0.000000e+00> : vector<32x64xf32>
    %219 = tpu.matmul %218, %162, %cst_75 {dimension_numbers = #tpu.dot_dimension_numbers<[1], [0], [0], [1], [0, 0, 1, 1], [], []>} : vector<32x32xf32>, vector<32x64xf32>, vector<32x64xf32> -> vector<32x64xf32>
    %220 = vector.extract_strided_slice %8 {offsets = [12, 0], sizes = [1, 64], strides = [1, 1]} : vector<24x128xf32> to vector<1x64xf32>
    %221 = vector.broadcast %220 : vector<1x64xf32> to vector<32x64xf32>
    %222 = arith.addf %219, %221 : vector<32x64xf32>
    %cst_76 = arith.constant 5.000000e-01 : f32
    %223 = vector.broadcast %cst_76 : f32 to vector<32x64xf32>
    %224 = arith.mulf %223, %222 : vector<32x64xf32>
    %cst_77 = arith.constant 4.471500e-02 : f32
    %225 = vector.broadcast %cst_77 : f32 to vector<32x64xf32>
    %226 = arith.mulf %225, %222 : vector<32x64xf32>
    %227 = arith.mulf %226, %222 : vector<32x64xf32>
    %228 = arith.mulf %227, %222 : vector<32x64xf32>
    %229 = arith.addf %222, %228 : vector<32x64xf32>
    %cst_78 = arith.constant 0.797884583 : f32
    %230 = vector.broadcast %cst_78 : f32 to vector<32x64xf32>
    %231 = arith.mulf %230, %229 : vector<32x64xf32>
    %232 = math.tanh %231 : vector<32x64xf32>
    %cst_79 = arith.constant 1.000000e+00 : f32
    %233 = vector.broadcast %cst_79 : f32 to vector<32x64xf32>
    %234 = arith.addf %233, %232 : vector<32x64xf32>
    %235 = arith.mulf %224, %234 : vector<32x64xf32>
    %cst_80 = arith.constant dense<0.000000e+00> : vector<32x32xf32>
    %236 = tpu.matmul %235, %163, %cst_80 {dimension_numbers = #tpu.dot_dimension_numbers<[1], [0], [0], [1], [0, 0, 1, 1], [], []>} : vector<32x64xf32>, vector<64x32xf32>, vector<32x32xf32> -> vector<32x32xf32>
    %237 = vector.extract_strided_slice %8 {offsets = [13, 0], sizes = [1, 32], strides = [1, 1]} : vector<24x128xf32> to vector<1x32xf32>
    %238 = vector.broadcast %237 : vector<1x32xf32> to vector<32x32xf32>
    %239 = arith.addf %236, %238 : vector<32x32xf32>
    %240 = arith.addf %218, %239 : vector<32x32xf32>
    %241 = vector.extract_strided_slice %8 {offsets = [14, 0], sizes = [1, 32], strides = [1, 1]} : vector<24x128xf32> to vector<1x32xf32>
    %242 = vector.extract_strided_slice %8 {offsets = [15, 0], sizes = [1, 32], strides = [1, 1]} : vector<24x128xf32> to vector<1x32xf32>
    %cst_81 = arith.constant dense<0.000000e+00> : vector<32xf32>
    %243 = vector.multi_reduction <add>, %240, %cst_81 [0] : vector<32x32xf32> to vector<32xf32>
    %244 = vector.shape_cast %243 : vector<32xf32> to vector<1x32xf32>
    %cst_82 = arith.constant 3.200000e+01 : f32
    %245 = vector.broadcast %cst_82 : f32 to vector<1x32xf32>
    %246 = arith.divf %244, %245 : vector<1x32xf32>
    %247 = arith.mulf %240, %240 : vector<32x32xf32>
    %cst_83 = arith.constant dense<0.000000e+00> : vector<32xf32>
    %248 = vector.multi_reduction <add>, %247, %cst_83 [0] : vector<32x32xf32> to vector<32xf32>
    %249 = vector.shape_cast %248 : vector<32xf32> to vector<1x32xf32>
    %cst_84 = arith.constant 3.200000e+01 : f32
    %250 = vector.broadcast %cst_84 : f32 to vector<1x32xf32>
    %251 = arith.divf %249, %250 : vector<1x32xf32>
    %252 = arith.mulf %246, %246 : vector<1x32xf32>
    %253 = arith.subf %251, %252 : vector<1x32xf32>
    %cst_85 = arith.constant 0.000000e+00 : f32
    %254 = vector.broadcast %cst_85 : f32 to vector<1x32xf32>
    %255 = arith.maximumf %253, %254 : vector<1x32xf32>
    %256 = vector.broadcast %246 : vector<1x32xf32> to vector<32x32xf32>
    %257 = arith.subf %240, %256 : vector<32x32xf32>
    %cst_86 = arith.constant 9.99999974E-6 : f32
    %258 = vector.broadcast %cst_86 : f32 to vector<1x32xf32>
    %259 = arith.addf %255, %258 : vector<1x32xf32>
    %260 = math.rsqrt %259 : vector<1x32xf32>
    %261 = arith.mulf %260, %241 : vector<1x32xf32>
    %262 = vector.broadcast %261 : vector<1x32xf32> to vector<32x32xf32>
    %263 = arith.mulf %257, %262 : vector<32x32xf32>
    %264 = vector.broadcast %242 : vector<1x32xf32> to vector<32x32xf32>
    %265 = arith.addf %263, %264 : vector<32x32xf32>
    %c224 = arith.constant 224 : index
    %c0_87 = arith.constant 0 : index
    %266 = vector.load %arg3[%c224, %c0_87] : memref<256x128xf32, #tpu.memory_space<vmem>>, vector<32x32xf32>
    %cst_88 = arith.constant dense<0.000000e+00> : vector<32x32xf32>
    %267 = tpu.matmul %265, %266, %cst_88 {dimension_numbers = #tpu.dot_dimension_numbers<[1], [0], [0], [1], [0, 0, 1, 1], [], []>} : vector<32x32xf32>, vector<32x32xf32>, vector<32x32xf32> -> vector<32x32xf32>
    %268 = arith.mulf %267, %4 : vector<32x32xf32>
    %cst_89 = arith.constant dense<0.000000e+00> : vector<32x8xf32>
    %269 = tpu.matmul %268, %7, %cst_89 {dimension_numbers = #tpu.dot_dimension_numbers<[1], [0], [0], [1], [0, 0, 1, 1], [], []>} : vector<32x32xf32>, vector<32x8xf32>, vector<32x8xf32> -> vector<32x8xf32>
    %cst_90 = arith.constant dense<0.000000e+00> : vector<8x8xf32>
    %270 = tpu.matmul %6, %269, %cst_90 {dimension_numbers = #tpu.dot_dimension_numbers<[1], [0], [0], [1], [0, 0, 1, 1], [], []>} : vector<8x32xf32>, vector<32x8xf32>, vector<8x8xf32> -> vector<8x8xf32>
    %271 = vector.extract_strided_slice %8 {offsets = [17, 0], sizes = [1, 8], strides = [1, 1]} : vector<24x128xf32> to vector<1x8xf32>
    %272 = vector.broadcast %271 : vector<1x8xf32> to vector<8x8xf32>
    %273 = arith.addf %270, %272 : vector<8x8xf32>
    %274 = arith.mulf %13, %32 : vector<8x1xf32>
    %275 = arith.mulf %12, %274 : vector<8x1xf32>
    %276 = arith.subf %17, %275 : vector<8x1xf32>
    %277 = vector.broadcast %274 : vector<8x1xf32> to vector<8x8xf32>
    %278 = arith.mulf %273, %277 : vector<8x8xf32>
    %279 = vector.broadcast %276 : vector<8x1xf32> to vector<8x8xf32>
    %280 = arith.addf %278, %279 : vector<8x8xf32>
    %c0_91 = arith.constant 0 : index
    %c0_92 = arith.constant 0 : index
    %281 = vector.load %arg4[%c0_91, %c0_92] : memref<8x8xf32, #tpu.memory_space<vmem>>, vector<8x8xf32>
    tpu.vector_store %arg4[%c0_91, %c0_92], %280 {strides = array<i32>} : memref<8x8xf32, #tpu.memory_space<vmem>>, vector<8x8xf32>,
    return
  }
}

</mosaic_0001>

<bundles_post_ra>
// kernel: tile.23
= control target key start
LH: loop header
LB: loop body
LE: loop exit
PB: predicated region body
PF: predicated region fallthrough
CT: control target
= control target key end

     0   :  { %s22_s0 = inlined_call_operand.vmem [shape: f32[4], index: 0, kind: input, shape index: {}]   ;;  %s23_s1 = inlined_call_operand.vmem [shape: f32[2,4], index: 1, kind: output, shape index: {}]  }
   0x1   :  { %v4_v0 = vld [vmem:[%s22_s0] ss:$0 sm:$0xff] }
   0x2   :  { %5 = vst [vmem:[%s23_s1] sm:$0x3] %v4_v0 }

// kernel: tile.0
= control target key start
LH: loop header
LB: loop body
LE: loop exit
PB: predicated region body
PF: predicated region fallthrough
CT: control target
= control target key end

     0   :  { %s34_s8 = smov 125   ;;  %vm7_vm0 = vcmask 7168   ;;  %s35_s11 = smov 126   ;;  %s61_s0 = inlined_call_operand.vmem [shape: f32[2,4], index: 0, kind: input, shape index: {}]   ;;  %s62_s1 = inlined_call_operand.vmem [shape: f32[8,1], index: 1, kind: output, shape index: {}]  }
   0x1   :  { %v4_v0 = vld [vmem:[%s61_s0] sm:$0x3]  ;;  %s33_s0 = smov 127  }
   0x2   :  { %5 = vst [vmem:[#allocation0] sm:$0x3] %v4_v0 }
   0x9   :  { %v9_v1 = vld [vmem:[#allocation0] sm:$0x3]  }
   0xa   :  { %v21_v2 = vld [vmem:[#allocation0] sm:$0x3]   ;;  %10 = vrot.lane.b32.xlu0 %v9_v1, %s33_s0 }
   0xb   :  { %22 = vrot.lane.b32.xlu1 %v21_v2, %s34_s8  ;;  %v6_v3 = vld [vmem:[#allocation0] sm:$0x3]  }
   0xc   :  { %v15_v4 = vld [vmem:[#allocation0] sm:$0x3]   ;;  %8 = vst.msk [vmem:[%s62_s1] ss:$4 sm:$0x3] %vm7_vm0, %v6_v3  }
   0xe   :  { %16 = vrot.lane.b32.xlu0 %v15_v4, %s35_s11 }
  0x7c   :  { %v11_v5 = vpop.permute.xlu0 %10  }
  0x7d   :  { %v23_v6 = vpop.permute.xlu1 %22   ;;  %27 = vst.msk [vmem:[%s62_s1 + $0x1] ss:$4 sm:$0x3] %vm7_vm0, %v11_v5  }
  0x7e   :  { %29 = vst.msk [vmem:[%s62_s1 + $0x3] ss:$4 sm:$0x3] %vm7_vm0, %v23_v6  }
  0x80   :  { %v17_v7 = vpop.permute.xlu0 %16  }
  0x81   :  { %28 = vst.msk [vmem:[%s62_s1 + $0x2] ss:$4 sm:$0x3] %vm7_vm0, %v17_v7  }

// kernel: patchtst_forward.1
= control target key start
LH: loop header
LB: loop body
LE: loop exit
PB: predicated region body
PF: predicated region fallthrough
CT: control target
= control target key end

     0   :  { %vm87_vm0 = vcmask 130048   ;;  %s6692_s0 = inlined_call_operand.vmem [shape: f32[8,24], index: 0, kind: input, shape index: {}]   ;;  %s6693_s1 = inlined_call_operand.vmem [shape: f32[32,48], index: 1, kind: input, shape index: {}]   ;;  %s6694_s2 = inlined_call_operand.vmem [shape: f32[520,128], index: 2, kind: input, shape index: {}]   ;;  %s6695_s3 = inlined_call_operand.vmem [shape: f32[256,128], index: 3, kind: input, shape index: {}]   ;;  %s6696_s4 = inlined_call_operand.hbm [shape: f32[8,8], index: 4, kind: output, shape index: {}]  }
   0x1   :  { %v86_v0 = vld [vmem:[%s6692_s0] sm:$0xff] }
   0x2   :  { %9 = vsyncpa [#allocation3], 0  ;;  %v88_v1 = vsel %vm87_vm0, %v86_v0, 0.0  ;;  %v93_v2 = vmul.f32 %v86_v0, %v86_v0  ;;  %s5207_s17 = smov 1   ;;  %s5208_s18 = smov 112   ;;  %v74_v16 = vld [vmem:[%s6694_s2 + $0x1c0] sm:$0xff] }
   0x3   :  { %89 = vadd.xlane.f32.xlu0 %v88_v1  ;;  %vm121_vm1 = vcmask 64512   ;;  %v5209_v17 = vmov 0   ;;  %vm119_vm2 = vcmask 7168   ;;  %v75_v23 = vld [vmem:[%s6694_s2 + $0x1c8] sm:$0xff]  ;;  %v76_v24 = vld [vmem:[%s6694_s2 + $0x1d0] sm:$0xff]  ;;  %v77_v25 = vld [vmem:[%s6694_s2 + $0x1d8] sm:$0xff] }
   0x4   :  { %v94_v3 = vsel %vm87_vm0, %v93_v2, 0.0  ;;  %4178 = vmatprep.mubr.msk.f32.mxu0 %vm121_vm1, %v74_v16  ;;  %4864 = vset.pattern.permute.xlu1 %v5209_v17  ;;  %v5210_v26 = vmov 1   ;;  %v220_v31 = vld [vmem:[%s6693_s1 + $0x8] sm:$0xff]  ;;  %s5211_s29 = smov 120   ;;  %v222_v32 = vld [vmem:[%s6693_s1 + $0x18] sm:$0xff]  ;;  %v219_v33 = vld [vmem:[%s6693_s1] sm:$0xff]  ;;  %v288_v2 = vlaneseq }
   0x5   :  { %4870 = vset.pattern.permute.xlu0 %v5210_v26  ;;  %v287_v34 = vld [vmem:[%s6695_s3 + $0xd8] sm:$0xff]  ;;  %v221_v35 = vld [vmem:[%s6693_s1 + $0x10] sm:$0xff]  ;;  %v5295_v36 = vld [vmem:[%s6695_s3] sm:$0xff]  ;;  %vm421_vm3 = vcmask 261120   ;;  %s5212_s25 = smov 96   ;;  %s5213_s1 = smov 64  }
   0x6   :  { %4184 = vmatprep.subr.mxu1 %v287_v34  ;;  %v5300_v37 = vld [vmem:[%s6695_s3 + $0x8] sm:$0xff]  ;;  %v5313_v63 = vld [vmem:[%s6695_s3 + $0x10] sm:$0xff]  ;;  %vm5425_vm4 = vmpackc.low %vm421_vm3, %vm421_vm3  ;;  %vm1792_vm5 = vcmask 523264   ;;  %vm5219_vm6 = vmmov 0   ;;  %s5221_s24 = smov [#allocation2]  }
   0x7   :  { %95 = vadd.xlane.f32.xlu0 %v94_v3  ;;  %4185 = vmatpush3.msra.mxu1 %v287_v34  ;;  %v4627_v38 = vpack.c.bf16 %v5300_v37, %v5295_v36  ;;  %v5322_v3 = vshrl.u32 %v288_v2, 7  ;;  %s3752_s26 = sshll.u32 %s5221_s24, 4  ;;  %s3753_s26 = int_to_ptr.vmem [resolvable:$true] %s3752_s26 }
   0x8   :  { %p5188_p1 = scmp.lt.s32.totalorder %s3753_s26, %s3753_s26 }
  0x90   :  { %v90_v4 = vpop.xlane.xlu0 %89 }
  0x91   :  { %v5250_v5 = vmul.f32 0.0625, %v90_v4  ;;  %v5325_v4 = vsub.s32 0, %v5322_v3 }
  0x93   :  { %6718 = vst [vmem:[#allocation5_spill] sm:$0xff] %v5250_v5  ;;  %v98_v7 = vmul.f32 %v5250_v5, %v5250_v5 }
  0x94   :  { %v96_v6 = vpop.xlane.xlu0 %95 }
  0x95   :  { %v97_v8 = vmul.f32 0.0625, %v96_v6  ;;  %v85_v6 = vld [vmem:[%s6695_s3 + $0xd0] sm:$0xff] }
  0x97   :  { %v99_v9 = vsub.f32 %v97_v8, %v98_v7  ;;  %v291_v7 = vrot.slane %v85_v6, %v5325_v4 }
  0x99   :  { %v100_v10 = vmax.f32 %v99_v9, 0.0 }
  0x9b   :  { %v101_v11 = vadd.f32 1e-05, %v100_v10 }
  0x9d   :  { %4974 = vrsqrt.f32 %v101_v11 }
  0xa7   :  { %v4975_v12 = vpop.eup %4974 }
  0xa8   :  { %v5254_v13 = vmul.f32 %v4975_v12, %v101_v11  ;;  %v104_v14 = vmul.f32 %v4975_v12, %v86_v0 }
  0xaa   :  { %6719 = vst [vmem:[#allocation6_spill] sm:$0xff] %v5254_v13  ;;  %v105_v15 = vmul.f32 %v104_v14, %v5250_v5  ;;  %v32_v5 = vld [vmem:[%s6694_s2 + $0x70] sm:$0xff] }
  0xac   :  { %107 = vrot.lane.b32.xlu1 %v105_v15, %s5207_s17 }
  0xb0   :  { %112 = vrot.lane.b32.xlu1 %v104_v14, %s5208_s18 }
 0x11e   :  { %v108_v18 = vpop.permute.xlu1 %107 }
 0x11f   :  { %v110_v19 = vsub.f32 %v86_v0, %v108_v18  ;;  %v5318_v0 = vld [vmem:[%s6695_s3 + $0x18] sm:$0xff] }
 0x120   :  { %v4631_v1 = vpack.c.bf16 %v5318_v0, %v5313_v63 }
 0x121   :  { %116 = vrot.lane.b32.xlu0 %v110_v19, %s5208_s18 }
 0x122   :  { %v113_v20 = vpop.permute.xlu1 %112 }
 0x193   :  { %v117_v21 = vpop.permute.xlu0 %116 }
 0x194   :  { %v120_v22 = vsel %vm119_vm2, %v113_v20, %v117_v21 }
 0x195   :  { %4176 = vmatprep.subr.mxu0 %v120_v22 }
 0x196   :  { %4177 = vmatpush3.msra.mxu0 %v120_v22 }
 0x197   :  { %4179 = vmatmul.mubr.msk.f32.vlgmr.msra.gmra.mrb[0].mxu0 %vm121_vm1, %v75_v23  ;;  %4628 = vmatprep.subr.bf16.mxu0 %v4627_v38 }
 0x198   :  { %4181 = vmatprep.mubr.msk.f32.mxu0 %vm121_vm1, %v76_v24  ;;  %4630 = vmatpush3.bf16.msra.mxu0 %v4627_v38 }
 0x199   :  { %4632 = vmatprep.subr.bf16.mxu0 %v4631_v1 }
 0x19b   :  { %4182 = vmatmul.mubr.msk.f32.gmra.mrb[2].mxu0 %vm121_vm1, %v77_v25  ;;  %v50_v25 = vld [vmem:[%s6694_s2 + $0x100] sm:$0xff] }
 0x19c   :  { %4634 = vmatpush3.bf16.msra.mxu0 %v4631_v1 }
 0x26a   :  { %v4180_v27 = vpop.f32.mrb[0].mxu0 }
 0x26b   :  { %230 = vperm.xlu1 %4864, %v4180_v27   ;;  %v200_v28 = vpop.f32.mrb[1].mxu0 }
 0x26e   :  { %v4183_v29 = vpop.f32.mrb[2].mxu0 }
 0x26f   :  { %4865 = vset.pattern.permute.xlu1 %v5210_v26  ;;  %v210_v30 = vpop.f32.mrb[3].mxu0 }
 0x270   :  { %252 = vperm.xlu1 %4865, %v4180_v27   ;;  %256 = vperm.xlu0 %4870, %v210_v30  }
 0x274   :  { %4866 = vset.pattern.permute.xlu1 %v5209_v17  ;;  %273 = vrot.lane.b32.xlu0 %v220_v31, %s5211_s29 }
 0x275   :  { %225 = vperm.xlu1 %4866, %v200_v28  }
 0x278   :  { %277 = vrot.lane.b32.xlu0 %v222_v32, %s5211_s29 }
 0x279   :  { %4867 = vset.pattern.permute.xlu1 %v5210_v26 }
 0x27a   :  { %248 = vperm.xlu1 %4867, %v200_v28  }
 0x27c   :  { %391 = vrot.lane.b32.xlu0 %v220_v31, %s5208_s18 }
 0x27e   :  { %4868 = vset.pattern.permute.xlu1 %v5209_v17 }
 0x27f   :  { %240 = vperm.xlu1 %4868, %v4183_v29  }
 0x280   :  { %395 = vrot.lane.b32.xlu0 %v222_v32, %s5208_s18 }
 0x283   :  { %235 = vperm.xlu1 %4868, %v210_v30  }
 0x287   :  { %4869 = vset.pattern.permute.xlu1 %v5210_v26  ;;  %v83_v26 = vld [vmem:[%s6695_s3 + $0xc0] sm:$0xff] }
 0x288   :  { %260 = vperm.xlu1 %4869, %v4183_v29   ;;  %v420_v27 = vrot.slane %v83_v26, %v5325_v4 }
 0x28c   :  { %271 = vrot.lane.b32.xlu1 %v219_v33, %s5211_s29 }
 0x290   :  { %275 = vrot.lane.b32.xlu1 %v221_v35, %s5211_s29 }
 0x294   :  { %389 = vrot.lane.b32.xlu1 %v219_v33, %s5208_s18 }
 0x298   :  { %393 = vrot.lane.b32.xlu1 %v221_v35, %s5208_s18  ;;  %s5214_s18 = smov 32  }
 0x2ea   :  { %v231_v39 = vpop.permute.xlu1 %230 }
 0x2eb   :  { %v244_v48 = vmul.f32 %v231_v39, %v220_v31 }
 0x2ef   :  { %v253_v40 = vpop.permute.xlu1 %252  ;;  %v257_v45 = vpop.permute.xlu0 %256 }
 0x2f0   :  { %v264_v52 = vadd.f32 %v253_v40, %v244_v48  ;;  %v57_v48 = vld [vmem:[%s6694_s2 + $0x138] sm:$0xff] }
 0x2f3   :  { %v274_v49 = vpop.permute.xlu0 %273 }
 0x2f4   :  { %v226_v41 = vpop.permute.xlu1 %225  ;;  %v284_v56 = vmul.f32 %v274_v49, %v264_v52  ;;  %v58_v49 = vld [vmem:[%s6694_s2 + $0x140] sm:$0xff]  ;;  %v61_v52 = vld [vmem:[%s6694_s2 + $0x158] sm:$0xff] }
 0x2f5   :  { %v243_v47 = vmul.f32 %v226_v41, %v219_v33 }
 0x2f7   :  { %v278_v58 = vpop.permute.xlu0 %277 }
 0x2f9   :  { %v249_v42 = vpop.permute.xlu1 %248 }
 0x2fa   :  { %v263_v50 = vadd.f32 %v249_v42, %v243_v47  ;;  %v51_v42 = vld [vmem:[%s6694_s2 + $0x108] sm:$0xff]  ;;  %v56_v47 = vld [vmem:[%s6694_s2 + $0x130] sm:$0xff] }
 0x2fb   :  { %v392_v10 = vpop.permute.xlu0 %391 }
 0x2fe   :  { %v241_v43 = vpop.permute.xlu1 %240 }
 0x2ff   :  { %v246_v53 = vmul.f32 %v241_v43, %v222_v32  ;;  %v396_v22 = vpop.permute.xlu0 %395  ;;  %v52_v43 = vld [vmem:[%s6694_s2 + $0x110] sm:$0xff] }
 0x302   :  { %v236_v44 = vpop.permute.xlu1 %235 }
 0x303   :  { %v245_v51 = vmul.f32 %v236_v44, %v221_v35  ;;  %v53_v44 = vld [vmem:[%s6694_s2 + $0x118] sm:$0xff] }
 0x305   :  { %v265_v59 = vadd.f32 %v257_v45, %v245_v51  ;;  %v54_v45 = vld [vmem:[%s6694_s2 + $0x120] sm:$0xff]  ;;  %v60_v51 = vld [vmem:[%s6694_s2 + $0x150] sm:$0xff] }
 0x307   :  { %v261_v46 = vpop.permute.xlu1 %260 }
 0x308   :  { %v266_v57 = vadd.f32 %v261_v46, %v246_v53  ;;  %v55_v46 = vld [vmem:[%s6694_s2 + $0x128] sm:$0xff]  ;;  %v62_v53 = vld [vmem:[%s6694_s2 + $0x160] sm:$0xff] }
 0x30a   :  { %v286_v62 = vmul.f32 %v278_v58, %v266_v57 }
 0x30b   :  { %v272_v54 = vpop.permute.xlu1 %271 }
 0x30c   :  { %v283_v55 = vmul.f32 %v272_v54, %v263_v50  ;;  %v59_v50 = vld [vmem:[%s6694_s2 + $0x148] sm:$0xff] }
 0x30d   :  { %v63_v54 = vld [vmem:[%s6694_s2 + $0x168] sm:$0xff] }
 0x30e   :  { %4186 = vmatprep.mubr.msk.f32.mxu1 %vm121_vm1, %v283_v55  ;;  %v64_v55 = vld [vmem:[%s6694_s2 + $0x170] sm:$0xff] }
 0x30f   :  { %4187 = vmatmul.mubr.msk.f32.vlgmr.msra.gmra.mrb[0].mxu1 %vm121_vm1, %v284_v56  ;;  %v276_v60 = vpop.permute.xlu1 %275  ;;  %v65_v56 = vld [vmem:[%s6694_s2 + $0x178] sm:$0xff] }
 0x310   :  { %v285_v61 = vmul.f32 %v276_v60, %v265_v59  ;;  %v6120_v60 = vld [vmem:[%s6694_s2 + $0x98] sm:$0xff] }
 0x312   :  { %4189 = vmatprep.mubr.msk.f32.mxu1 %vm121_vm1, %v285_v61 }
 0x313   :  { %4190 = vmatmul.mubr.msk.f32.gmra.mrb[2].mxu1 %vm121_vm1, %v286_v62  ;;  %v390_v8 = vpop.permute.xlu1 %389 }
 0x314   :  { %4214 = vmatprep.mubr.msk.f32.mxu1 %vm421_vm3, %v50_v25  ;;  %v5471_v25 = vld [vmem:[%s6694_s2 + $0xa0] sm:$0xff] }
 0x317   :  { %v394_v20 = vpop.permute.xlu1 %393 }
 0x3e2   :  { %v4188_v9 = vpop.f32.mrb[0].mxu1 }
 0x3e3   :  { %v376_v11 = vadd.f32 %v4188_v9, %v291_v7  ;;  %v370_v12 = vpop.f32.mrb[1].mxu1 }
 0x3e4   :  { %v371_v14 = vadd.f32 %v370_v12, %v291_v7  ;;  %v5451_v12 = vld [vmem:[%s6694_s2 + $0x98] sm:$0xff] }
 0x3e5   :  { %v5333_v17 = vadd.f32 %v392_v10, %v376_v11 }
 0x3e6   :  { %v5331_v15 = vadd.f32 %v390_v8, %v371_v14  ;;  %v4191_v16 = vpop.f32.mrb[2].mxu1  ;;  %v5445_v8 = vld [vmem:[%s6694_s2 + $0x88] sm:$0xff] }
 0x3e7   :  { %v386_v18 = vadd.f32 %v4191_v16, %v291_v7  ;;  %v380_v19 = vpop.f32.mrb[3].mxu1  ;;  %v5457_v16 = vld [vmem:[%s6694_s2 + $0x90] sm:$0xff] }
 0x3e8   :  { %v381_v21 = vadd.f32 %v380_v19, %v291_v7  ;;  %4200 = vmatprep.mubr.msk.f32.mxu0 %vm421_vm3, %v5331_v15  ;;  %v5440_v7 = vld [vmem:[%s6694_s2 + $0x80] sm:$0xff] }
 0x3e9   :  { %4201 = vmatmul.mubr.msk.f32.vlgmr.msra.gmra.mrb[4].mxu0 %vm421_vm3, %v5333_v17  ;;  %v5341_v24 = vadd.f32 %v396_v22, %v386_v18  ;;  %v5466_v22 = vld [vmem:[%s6694_s2 + $0xa8] sm:$0xff] }
 0x3ea   :  { %v5339_v23 = vadd.f32 %v394_v20, %v381_v21 }
 0x3ec   :  { %4203 = vmatprep.mubr.msk.f32.mxu0 %vm421_vm3, %v5339_v23 }
 0x3ed   :  { %4204 = vmatmul.mubr.msk.f32.gmra.mrb[6].mxu0 %vm421_vm3, %v5341_v24 }
 0x4bc   :  { %v4202_v28 = vpop.f32.mrb[4].mxu0 }
 0x4bd   :  { %v506_v29 = vadd.f32 %v4202_v28, %v420_v27  ;;  %v500_v30 = vpop.f32.mrb[5].mxu0 }
 0x4be   :  { %v501_v31 = vadd.f32 %v500_v30, %v420_v27  ;;  %v5480_v30 = vld [vmem:[%s6694_s2 + $0xb8] sm:$0xff] }
 0x4c0   :  { %v4205_v32 = vpop.f32.mrb[6].mxu0  ;;  %v5355_v33 = vpack.i.bf16 %v506_v29, %v501_v31  ;;  %v4635_v34 = vpack.c.bf16 %v506_v29, %v501_v31  ;;  %v5485_v31 = vld [vmem:[%s6694_s2 + $0xb0] sm:$0xff] }
 0x4c1   :  { %v516_v35 = vadd.f32 %v4205_v32, %v420_v27  ;;  %v510_v38 = vpop.f32.mrb[7].mxu0 }
 0x4c2   :  { %v511_v39 = vadd.f32 %v510_v38, %v420_v27  ;;  %4872 = vrot.lane.b32.xlu1 %v5355_v33, %s5212_s25  ;;  %4636 = vmatprep.subr.bf16.mxu1 %v4635_v34 }
 0x4c3   :  { %4638 = vmatpush3.bf16.msra.mxu1 %v4635_v34 }
 0x4c4   :  { %v5359_v40 = vpack.i.bf16 %v516_v35, %v511_v39  ;;  %v4639_v41 = vpack.c.bf16 %v516_v35, %v511_v39  ;;  %v5494_v39 = vld [vmem:[%s6694_s2 + $0xc8] sm:$0xff] }
 0x4c6   :  { %4877 = vrot.lane.b32.xlu0 %v5359_v40, %s5212_s25  ;;  %4640 = vmatprep.subr.bf16.mxu1 %v4639_v41 }
 0x4c7   :  { %4642 = vmatpush3.bf16.msra.mxu1 %v4639_v41  ;;  %v5499_v41 = vld [vmem:[%s6694_s2 + $0xc0] sm:$0xff] }
 0x4ca   :  { %4215 = vmatmul.mubr.msk.f32.vlgmr.msra.gmra.mrb[4].mxu1 %vm421_vm3, %v51_v42 }
 0x4cb   :  { %4217 = vmatprep.mubr.msk.f32.mxu1 %vm421_vm3, %v52_v43 }
 0x4ce   :  { %4218 = vmatmul.mubr.msk.f32.gmra.mrb[6].mxu1 %vm421_vm3, %v53_v44 }
 0x4cf   :  { %4220 = vmatprep.mubr.msk.f32.mxu1 %vm421_vm3, %v54_v45 }
 0x4d2   :  { %4221 = vmatmul.mubr.msk.f32.gmra.mrb[8].mxu1 %vm421_vm3, %v55_v46  ;;  %v5508_v46 = vld [vmem:[%s6694_s2 + $0xd8] sm:$0xff] }
 0x4d3   :  { %4223 = vmatprep.mubr.msk.f32.mxu1 %vm421_vm3, %v56_v47  ;;  %v5513_v47 = vld [vmem:[%s6694_s2 + $0xd0] sm:$0xff] }
 0x4d6   :  { %4224 = vmatmul.mubr.msk.f32.gmra.mrb[10].mxu1 %vm421_vm3, %v57_v48 }
 0x4d7   :  { %4226 = vmatprep.mubr.msk.f32.mxu1 %vm421_vm3, %v58_v49 }
 0x4da   :  { %4227 = vmatmul.mubr.msk.f32.gmra.mrb[12].mxu1 %vm421_vm3, %v59_v50 }
 0x4db   :  { %4229 = vmatprep.mubr.msk.f32.mxu1 %vm421_vm3, %v60_v51 }
 0x4de   :  { %4230 = vmatmul.mubr.msk.f32.gmra.mrb[14].mxu1 %vm421_vm3, %v61_v52  ;;  %v5522_v52 = vld [vmem:[%s6694_s2 + $0xe8] sm:$0xff] }
 0x4df   :  { %4232 = vmatprep.mubr.msk.f32.mxu1 %vm421_vm3, %v62_v53  ;;  %v5527_v53 = vld [vmem:[%s6694_s2 + $0xe0] sm:$0xff] }
 0x4e2   :  { %4233 = vmatmul.mubr.msk.f32.gmra.mrb[16].mxu1 %vm421_vm3, %v63_v54 }
 0x4e3   :  { %4235 = vmatprep.mubr.msk.f32.mxu1 %vm421_vm3, %v64_v55 }
 0x4e6   :  { %4236 = vmatmul.mubr.msk.f32.gmra.mrb[18].mxu1 %vm421_vm3, %v65_v56 }
 0x534   :  { %v4873_v57 = vpop.permute.xlu1 %4872 }
 0x535   :  { %v4875_v58 = vunpack.i.h.bf16 %v4873_v57  ;;  %v4874_v59 = vunpack.i.l.bf16 %v4873_v57 }
 0x537   :  { %v4643_v61 = vpack.c.bf16 %v4875_v58, %v4874_v59  ;;  %v5536_v58 = vld [vmem:[%s6694_s2 + $0xf8] sm:$0xff]  ;;  %v5541_v59 = vld [vmem:[%s6694_s2 + $0xf0] sm:$0xff] }
 0x538   :  { %v4878_v62 = vpop.permute.xlu0 %4877 }
 0x539   :  { %v4880_v1 = vunpack.i.h.bf16 %v4878_v62  ;;  %v4879_v2 = vunpack.i.l.bf16 %v4878_v62  ;;  %4645 = vmatprep.subr.msk.bf16.mxu0 %vm5425_vm4, %v4643_v61 }
 0x53a   :  { %4648 = vmatpush3.bf16.xpose.msk.msra.mxu0 %vm5425_vm4, %v4643_v61 }
 0x53b   :  { %v4649_v6 = vpack.c.bf16 %v4880_v1, %v4879_v2 }
 0x53d   :  { %4651 = vmatprep.subr.msk.bf16.mxu0 %vm5425_vm4, %v4649_v6 }
 0x542   :  { %4654 = vmatpush3.bf16.xpose.msk.msra.mxu0 %vm5425_vm4, %v4649_v6  ;;  %v19_v6 = vld [vmem:[%s6694_s2 + $0x8] sm:$0xff] }
 0x59d   :  { %v4216_v9 = vpop.f32.mrb[4].mxu1 }
 0x59e   :  { %v633_v10 = vpop.f32.mrb[5].mxu1  ;;  %v713_v14 = vmul.f32 %v4216_v9, %v5445_v8  ;;  %v18_v9 = vld [vmem:[%s6694_s2] sm:$0xff] }
 0x59f   :  { %v712_v11 = vmul.f32 %v633_v10, %v5440_v7 }
 0x5a1   :  { %v4219_v18 = vpop.f32.mrb[6].mxu1  ;;  %4246 = vmatprep.mubr.msk.f32.mxu0 %vm421_vm3, %v712_v11 }
 0x5a2   :  { %v715_v19 = vmul.f32 %v4219_v18, %v5451_v12  ;;  %v643_v20 = vpop.f32.mrb[7].mxu1  ;;  %4247 = vmatmul.mubr.msk.f32.vlgmr.msra.gmra.mrb[8].mxu0 %vm421_vm3, %v713_v14 }
 0x5a3   :  { %v714_v21 = vmul.f32 %v643_v20, %v5457_v16 }
 0x5a5   :  { %v4222_v26 = vpop.f32.mrb[8].mxu1  ;;  %4249 = vmatprep.mubr.msk.f32.mxu0 %vm421_vm3, %v714_v21  ;;  %v20_v21 = vld [vmem:[%s6694_s2 + $0x10] sm:$0xff] }
 0x5a6   :  { %v717_v27 = vmul.f32 %v4222_v26, %v5466_v22  ;;  %v653_v28 = vpop.f32.mrb[9].mxu1  ;;  %4250 = vmatmul.mubr.msk.f32.gmra.mrb[10].mxu0 %vm421_vm3, %v715_v19  ;;  %v21_v19 = vld [vmem:[%s6694_s2 + $0x18] sm:$0xff] }
 0x5a7   :  { %v716_v29 = vmul.f32 %v653_v28, %v5471_v25 }
 0x5a9   :  { %v4225_v32 = vpop.f32.mrb[10].mxu1  ;;  %4252 = vmatprep.mubr.msk.f32.mxu0 %vm421_vm3, %v716_v29 }
 0x5aa   :  { %v719_v34 = vmul.f32 %v4225_v32, %v5480_v30  ;;  %v663_v35 = vpop.f32.mrb[11].mxu1  ;;  %4253 = vmatmul.mubr.msk.f32.gmra.mrb[12].mxu0 %vm421_vm3, %v717_v27 }
 0x5ab   :  { %v718_v38 = vmul.f32 %v663_v35, %v5485_v31  ;;  %v22_v35 = vld [vmem:[%s6694_s2 + $0x20] sm:$0xff] }
 0x5ad   :  { %v4228_v42 = vpop.f32.mrb[12].mxu1  ;;  %4255 = vmatprep.mubr.msk.f32.mxu0 %vm421_vm3, %v718_v38 }
 0x5ae   :  { %v721_v43 = vmul.f32 %v4228_v42, %v5494_v39  ;;  %v673_v44 = vpop.f32.mrb[13].mxu1  ;;  %4256 = vmatmul.mubr.msk.f32.gmra.mrb[14].mxu0 %vm421_vm3, %v719_v34  ;;  %v23_v34 = vld [vmem:[%s6694_s2 + $0x28] sm:$0xff] }
 0x5af   :  { %v720_v45 = vmul.f32 %v673_v44, %v5499_v41 }
 0x5b1   :  { %v4231_v48 = vpop.f32.mrb[14].mxu1  ;;  %4258 = vmatprep.mubr.msk.f32.mxu0 %vm421_vm3, %v720_v45 }
 0x5b2   :  { %v723_v49 = vmul.f32 %v4231_v48, %v5508_v46  ;;  %v683_v50 = vpop.f32.mrb[15].mxu1  ;;  %4259 = vmatmul.mubr.msk.f32.gmra.mrb[16].mxu0 %vm421_vm3, %v721_v43 }
 0x5b3   :  { %v722_v51 = vmul.f32 %v683_v50, %v5513_v47  ;;  %v24_v50 = vld [vmem:[%s6694_s2 + $0x30] sm:$0xff] }
 0x5b5   :  { %v4234_v54 = vpop.f32.mrb[16].mxu1  ;;  %4261 = vmatprep.mubr.msk.f32.mxu0 %vm421_vm3, %v722_v51 }
 0x5b6   :  { %v725_v55 = vmul.f32 %v4234_v54, %v5522_v52  ;;  %v693_v56 = vpop.f32.mrb[17].mxu1  ;;  %4262 = vmatmul.mubr.msk.f32.gmra.mrb[18].mxu0 %vm421_vm3, %v723_v49  ;;  %v25_v49 = vld [vmem:[%s6694_s2 + $0x38] sm:$0xff] }
 0x5b7   :  { %v724_v57 = vmul.f32 %v693_v56, %v5527_v53 }
 0x5b9   :  { %v4237_v61 = vpop.f32.mrb[18].mxu1  ;;  %4264 = vmatprep.mubr.msk.f32.mxu0 %vm421_vm3, %v724_v57 }
 0x5ba   :  { %v727_v62 = vmul.f32 %v4237_v61, %v5536_v58  ;;  %v703_v1 = vpop.f32.mrb[19].mxu1  ;;  %4265 = vmatmul.mubr.msk.f32.gmra.mrb[20].mxu0 %vm421_vm3, %v725_v55 }
 0x5bb   :  { %v726_v2 = vmul.f32 %v703_v1, %v5541_v59  ;;  %v26_v1 = vld [vmem:[%s6694_s2 + $0x40] sm:$0xff] }
 0x5bd   :  { %4267 = vmatprep.mubr.msk.f32.mxu0 %vm421_vm3, %v726_v2 }
 0x5be   :  { %4268 = vmatmul.mubr.msk.f32.gmra.mrb[22].mxu0 %vm421_vm3, %v727_v62  ;;  %v27_v62 = vld [vmem:[%s6694_s2 + $0x48] sm:$0xff] }
 0x675   :  { %v5555_v10 = vpop.f32.mrb[8].mxu0 }
 0x676   :  { %v5558_v11 = vadd.f32 %v5555_v10, %v19_v6  ;;  %v5560_v14 = vpop.f32.mrb[9].mxu0 }
 0x677   :  { %6722 = vst [vmem:[#allocation7_spill] sm:$0xff] %v5560_v14  ;;  %v5563_v18 = vadd.f32 %v5560_v14, %v18_v9 }
 0x678   :  { %v960_v20 = vsel %vm421_vm3, %v5558_v11, -inf }
 0x679   :  { %v5573_v26 = vpop.f32.mrb[10].mxu0  ;;  %961 = vmax.xlane.f32.xlu0 %v960_v20  ;;  %v957_v27 = vsel %vm421_vm3, %v5563_v18, -inf }
 0x67a   :  { %6723 = vst [vmem:[#allocation8_spill] sm:$0xff] %v5573_v26  ;;  %v5578_v28 = vadd.f32 %v5573_v26, %v21_v19  ;;  %v5580_v29 = vpop.f32.mrb[11].mxu0  ;;  %958 = vmax.xlane.f32.xlu1 %v957_v27  ;;  %v29_v27 = vld [vmem:[%s6694_s2 + $0x58] sm:$0xff] }
 0x67b   :  { %6724 = vst [vmem:[#allocation9_spill] sm:$0xff] %v5580_v29  ;;  %v5583_v32 = vadd.f32 %v5580_v29, %v20_v21 }
 0x67c   :  { %v966_v38 = vsel %vm421_vm3, %v5578_v28, -inf }
 0x67d   :  { %v5593_v42 = vpop.f32.mrb[12].mxu0  ;;  %v963_v43 = vsel %vm421_vm3, %v5583_v32, -inf }
 0x67e   :  { %6725 = vst [vmem:[#allocation10_spill] sm:$0xff] %v5593_v42  ;;  %v5598_v44 = vadd.f32 %v5593_v42, %v23_v34  ;;  %v5600_v45 = vpop.f32.mrb[13].mxu0  ;;  %964 = vmax.xlane.f32.xlu0 %v963_v43  ;;  %967 = vmax.xlane.f32.xlu1 %v966_v38  ;;  %v28_v34 = vld [vmem:[%s6694_s2 + $0x50] sm:$0xff] }
 0x67f   :  { %6726 = vst [vmem:[#allocation11_spill] sm:$0xff] %v5600_v45  ;;  %v5603_v48 = vadd.f32 %v5600_v45, %v22_v35 }
 0x680   :  { %v972_v51 = vsel %vm421_vm3, %v5598_v44, -inf }
 0x681   :  { %v5613_v54 = vpop.f32.mrb[14].mxu0  ;;  %v969_v55 = vsel %vm421_vm3, %v5603_v48, -inf }
 0x682   :  { %6727 = vst [vmem:[#allocation12_spill] sm:$0xff] %v5613_v54  ;;  %v5618_v56 = vadd.f32 %v5613_v54, %v25_v49  ;;  %v5620_v57 = vpop.f32.mrb[15].mxu0  ;;  %970 = vmax.xlane.f32.xlu0 %v969_v55  ;;  %973 = vmax.xlane.f32.xlu1 %v972_v51  ;;  %v31_v55 = vld [vmem:[%s6694_s2 + $0x68] sm:$0xff] }
 0x683   :  { %6728 = vst [vmem:[#allocation13_spill] sm:$0xff] %v5620_v57  ;;  %v5623_v61 = vadd.f32 %v5620_v57, %v24_v50 }
 0x684   :  { %v978_v2 = vsel %vm421_vm3, %v5618_v56, -inf }
 0x685   :  { %v5633_v6 = vpop.f32.mrb[16].mxu0  ;;  %v975_v9 = vsel %vm421_vm3, %v5623_v61, -inf }
 0x686   :  { %6729 = vst [vmem:[#allocation14_spill] sm:$0xff] %v5633_v6  ;;  %v5638_v19 = vadd.f32 %v5633_v6, %v27_v62  ;;  %v5640_v20 = vpop.f32.mrb[17].mxu0  ;;  %976 = vmax.xlane.f32.xlu0 %v975_v9  ;;  %979 = vmax.xlane.f32.xlu1 %v978_v2  ;;  %v30_v62 = vld [vmem:[%s6694_s2 + $0x60] sm:$0xff] }
 0x687   :  { %6730 = vst [vmem:[#allocation15_spill] sm:$0xff] %v5640_v20  ;;  %v5643_v21 = vadd.f32 %v5640_v20, %v26_v1 }
 0x688   :  { %v984_v35 = vsel %vm421_vm3, %v5638_v19, -inf }
 0x689   :  { %v5653_v38 = vpop.f32.mrb[18].mxu0  ;;  %v981_v43 = vsel %vm421_vm3, %v5643_v21, -inf }
 0x68a   :  { %6731 = vst [vmem:[#allocation16_spill] sm:$0xff] %v5653_v38  ;;  %v5658_v49 = vadd.f32 %v5653_v38, %v29_v27  ;;  %v5660_v50 = vpop.f32.mrb[19].mxu0  ;;  %982 = vmax.xlane.f32.xlu0 %v981_v43  ;;  %985 = vmax.xlane.f32.xlu1 %v984_v35  ;;  %v33_v43 = vld [vmem:[%s6694_s2 + $0x78] sm:$0xff] }
 0x68b   :  { %6732 = vst [vmem:[#allocation17_spill] sm:$0xff] %v5660_v50  ;;  %v5663_v51 = vadd.f32 %v5660_v50, %v28_v34 }
 0x68c   :  { %v990_v1 = vsel %vm421_vm3, %v5658_v49, -inf }
 0x68d   :  { %v5673_v2 = vpop.f32.mrb[20].mxu0  ;;  %v987_v9 = vsel %vm421_vm3, %v5663_v51, -inf }
 0x68e   :  { %6733 = vst [vmem:[#allocation18_spill] sm:$0xff] %v5673_v2  ;;  %v5678_v27 = vadd.f32 %v5673_v2, %v31_v55  ;;  %v5680_v34 = vpop.f32.mrb[21].mxu0  ;;  %988 = vmax.xlane.f32.xlu0 %v987_v9  ;;  %991 = vmax.xlane.f32.xlu1 %v990_v1 }
 0x68f   :  { %6734 = vst [vmem:[#allocation19_spill] sm:$0xff] %v5680_v34  ;;  %v5683_v35 = vadd.f32 %v5680_v34, %v30_v62 }
 0x690   :  { %v996_v13 = vsel %vm421_vm3, %v5678_v27, -inf }
 0x691   :  { %v5693_v55 = vpop.f32.mrb[22].mxu0  ;;  %v993_v9 = vsel %vm421_vm3, %v5683_v35, -inf }
 0x692   :  { %6735 = vst [vmem:[#allocation20_spill] sm:$0xff] %v5693_v55  ;;  %v5698_v1 = vadd.f32 %v5693_v55, %v33_v43  ;;  %v5700_v62 = vpop.f32.mrb[23].mxu0  ;;  %994 = vmax.xlane.f32.xlu0 %v993_v9  ;;  %997 = vmax.xlane.f32.xlu1 %v996_v13 }
 0x693   :  { %6736 = vst [vmem:[#allocation21_spill] sm:$0xff] %v5700_v62  ;;  %v5703_v34 = vadd.f32 %v5700_v62, %v32_v5 }
 0x694   :  { %v1002_v2 = vsel %vm421_vm3, %v5698_v1, -inf }
 0x695   :  { %v999_v50 = vsel %vm421_vm3, %v5703_v34, -inf }
 0x696   :  { %1000 = vmax.xlane.f32.xlu0 %v999_v50  ;;  %1003 = vmax.xlane.f32.xlu1 %v1002_v2 }
 0x706   :  { %v962_v38 = vpop.xlane.xlu0 %961 }
 0x707   :  { %v1006_v20 = vsub.f32 %v5558_v11, %v962_v38  ;;  %v959_v43 = vpop.xlane.xlu1 %958 }
 0x708   :  { %v1005_v55 = vsub.f32 %v5563_v18, %v959_v43 }
 0x709   :  { %v1023_v6 = vmul.f32 1.442695, %v1006_v20 }
 0x70a   :  { %v1021_v9 = vmul.f32 1.442695, %v1005_v55 }
 0x70b   :  { %4976 = vpow2.f32 %v1023_v6  ;;  %v965_v13 = vpop.xlane.xlu0 %964  ;;  %v968_v5 = vpop.xlane.xlu1 %967 }
 0x70c   :  { %4978 = vpow2.f32 %v1021_v9  ;;  %v1007_v62 = vsub.f32 %v5583_v32, %v965_v13  ;;  %v1008_v57 = vsub.f32 %v5578_v28, %v968_v5 }
 0x70e   :  { %v1025_v54 = vmul.f32 1.442695, %v1007_v62  ;;  %v1027_v45 = vmul.f32 1.442695, %v1008_v57 }
 0x70f   :  { %v971_v50 = vpop.xlane.xlu0 %970  ;;  %v974_v2 = vpop.xlane.xlu1 %973 }
 0x710   :  { %4980 = vpow2.f32 %v1025_v54  ;;  %v1009_v11 = vsub.f32 %v5603_v48, %v971_v50  ;;  %v1010_v38 = vsub.f32 %v5598_v44, %v974_v2 }
 0x711   :  { %4982 = vpow2.f32 %v1027_v45 }
 0x712   :  { %v1029_v18 = vmul.f32 1.442695, %v1009_v11  ;;  %v1031_v20 = vmul.f32 1.442695, %v1010_v38 }
 0x713   :  { %v977_v6 = vpop.xlane.xlu0 %976  ;;  %v980_v55 = vpop.xlane.xlu1 %979 }
 0x714   :  { %4984 = vpow2.f32 %v1029_v18  ;;  %v1011_v43 = vsub.f32 %v5623_v61, %v977_v6  ;;  %v1012_v32 = vsub.f32 %v5618_v56, %v980_v55 }
 0x715   :  { %v5717_v28 = vpop.eup %4976  ;;  %4986 = vpow2.f32 %v1031_v20 }
 0x716   :  { %v5719_v57 = vpop.eup %4978  ;;  %v1033_v54 = vmul.f32 1.442695, %v1011_v43  ;;  %v1035_v62 = vmul.f32 1.442695, %v1012_v32  ;;  %v1056_v44 = vsel %vm421_vm3, %v5717_v28, 0.0 }
 0x717   :  { %v983_v45 = vpop.xlane.xlu0 %982  ;;  %1057 = vadd.xlane.f32.xlu1 %v1056_v44  ;;  %v986_v48 = vpop.xlane.xlu1 %985  ;;  %v1053_v9 = vsel %vm421_vm3, %v5719_v57, 0.0 }
 0x718   :  { %4988 = vpow2.f32 %v1033_v54  ;;  %v1013_v61 = vsub.f32 %v5643_v21, %v983_v45  ;;  %v1014_v56 = vsub.f32 %v5638_v19, %v986_v48  ;;  %1054 = vadd.xlane.f32.xlu0 %v1053_v9 }
 0x719   :  { %4990 = vpow2.f32 %v1035_v62 }
 0x71a   :  { %v5727_v13 = vpop.eup %4980  ;;  %v1037_v5 = vmul.f32 1.442695, %v1013_v61  ;;  %v1039_v50 = vmul.f32 1.442695, %v1014_v56 }
 0x71b   :  { %v5729_v2 = vpop.eup %4982  ;;  %v989_v11 = vpop.xlane.xlu0 %988  ;;  %v1059_v18 = vsel %vm421_vm3, %v5727_v13, 0.0 }
 0x71c   :  { %v992_v38 = vpop.xlane.xlu1 %991  ;;  %4992 = vpow2.f32 %v1037_v5  ;;  %v1015_v20 = vsub.f32 %v5663_v51, %v989_v11  ;;  %1060 = vadd.xlane.f32.xlu0 %v1059_v18  ;;  %v1062_v19 = vsel %vm421_vm3, %v5729_v2, 0.0 }
 0x71d   :  { %v1016_v21 = vsub.f32 %v5658_v49, %v992_v38  ;;  %4994 = vpow2.f32 %v1039_v50  ;;  %1063 = vadd.xlane.f32.xlu1 %v1062_v19 }
 0x71e   :  { %v5737_v6 = vpop.eup %4984  ;;  %v1041_v32 = vmul.f32 1.442695, %v1015_v20 }
 0x71f   :  { %v1043_v55 = vmul.f32 1.442695, %v1016_v21  ;;  %v5739_v43 = vpop.eup %4986  ;;  %v1065_v54 = vsel %vm421_vm3, %v5737_v6, 0.0  ;;  %v995_v18 = vpop.xlane.xlu0 %994 }
 0x720   :  { %1066 = vadd.xlane.f32.xlu0 %v1065_v54  ;;  %v1068_v51 = vsel %vm421_vm3, %v5739_v43, 0.0  ;;  %v998_v20 = vpop.xlane.xlu1 %997  ;;  %v1017_v21 = vsub.f32 %v5683_v35, %v995_v18 }
 0x721   :  { %4996 = vpow2.f32 %v1043_v55  ;;  %1069 = vadd.xlane.f32.xlu1 %v1068_v51 }
 0x722   :  { %v5745_v49 = vpop.eup %4988  ;;  %4998 = vpow2.f32 %v1041_v32  ;;  %v1045_v55 = vmul.f32 1.442695, %v1017_v21 }
 0x723   :  { %v5747_v62 = vpop.eup %4990  ;;  %v1071_v44 = vsel %vm421_vm3, %v5745_v49, 0.0  ;;  %v1001_v19 = vpop.xlane.xlu0 %1000 }
 0x724   :  { %1072 = vadd.xlane.f32.xlu0 %v1071_v44  ;;  %v1074_v45 = vsel %vm421_vm3, %v5747_v62, 0.0  ;;  %v1019_v32 = vsub.f32 %v5703_v34, %v1001_v19  ;;  %v1004_v54 = vpop.xlane.xlu1 %1003  ;;  %5000 = vpow2.f32 %v1045_v55 }
 0x725   :  { %1075 = vadd.xlane.f32.xlu1 %v1074_v45  ;;  %v1020_v44 = vsub.f32 %v5698_v1, %v1004_v54  ;;  %v1018_v45 = vsub.f32 %v5678_v27, %v998_v20 }
 0x726   :  { %v5753_v48 = vpop.eup %4992  ;;  %v1049_v51 = vmul.f32 1.442695, %v1019_v32 }
 0x727   :  { %v5755_v9 = vpop.eup %4994  ;;  %v1077_v61 = vsel %vm421_vm3, %v5753_v48, 0.0 }
 0x728   :  { %1078 = vadd.xlane.f32.xlu0 %v1077_v61  ;;  %v1080_v56 = vsel %vm421_vm3, %v5755_v9, 0.0  ;;  %5002 = vpow2.f32 %v1049_v51  ;;  %v1047_v61 = vmul.f32 1.442695, %v1018_v45 }
 0x729   :  { %1081 = vadd.xlane.f32.xlu1 %v1080_v56 }
 0x72b   :  { %v5761_v5 = vpop.eup %4996 }
 0x72c   :  { %v1086_v50 = vsel %vm421_vm3, %v5761_v5, 0.0  ;;  %v5765_v11 = vpop.eup %4998 }
 0x72d   :  { %1087 = vadd.xlane.f32.xlu1 %v1086_v50  ;;  %v1083_v38 = vsel %vm421_vm3, %v5765_v11, 0.0 }
 0x731   :  { %1084 = vadd.xlane.f32.xlu1 %v1083_v38 }
 0x73e   :  { %4882 = vrot.lane.b32.xlu0 %v5355_v33, %s5213_s1  ;;  %v1051_v33 = vmul.f32 1.442695, %v1020_v44 }
 0x740   :  { %5004 = vpow2.f32 %v1051_v33 }
 0x741   :  { %5006 = vpow2.f32 %v1047_v61 }
 0x742   :  { %4887 = vrot.lane.b32.xlu1 %v5359_v40, %s5213_s1  ;;  %v5777_v40 = vpop.eup %5000 }
 0x743   :  { %v1089_v35 = vsel %vm421_vm3, %v5777_v40, 0.0  ;;  %v5781_v56 = vpop.eup %5002 }
 0x744   :  { %v1095_v34 = vsel %vm421_vm3, %v5781_v56, 0.0 }
 0x74a   :  { %v5785_v50 = vpop.eup %5004 }
 0x74b   :  { %v5787_v27 = vpop.eup %5006  ;;  %v1098_v1 = vsel %vm421_vm3, %v5785_v50, 0.0 }
 0x74c   :  { %v1092_v38 = vsel %vm421_vm3, %v5787_v27, 0.0 }
 0x75d   :  { %1090 = vadd.xlane.f32.xlu0 %v1089_v35 }
 0x761   :  { %1096 = vadd.xlane.f32.xlu0 %v1095_v34 }
 0x765   :  { %1099 = vadd.xlane.f32.xlu0 %v1098_v1 }
 0x766   :  { %1093 = vadd.xlane.f32.xlu1 %v1092_v38 }
 0x7a4   :  { %v1058_v18 = vpop.xlane.xlu1 %1057 }
 0x7a5   :  { %v1055_v20 = vpop.xlane.xlu0 %1054 }
 0x7a6   :  { %5008 = vrcp.f32 %v1055_v20 }
 0x7a7   :  { %5010 = vrcp.f32 %v1058_v18 }
 0x7a9   :  { %v1061_v21 = vpop.xlane.xlu0 %1060 }
 0x7aa   :  { %v1064_v19 = vpop.xlane.xlu1 %1063  ;;  %5012 = vrcp.f32 %v1061_v21 }
 0x7ab   :  { %5014 = vrcp.f32 %v1064_v19 }
 0x7ad   :  { %v1067_v55 = vpop.xlane.xlu0 %1066 }
 0x7ae   :  { %v1070_v32 = vpop.xlane.xlu1 %1069  ;;  %5016 = vrcp.f32 %v1067_v55 }
 0x7af   :  { %5018 = vrcp.f32 %v1070_v32 }
 0x7b0   :  { %v5009_v54 = vpop.eup %5008 }
 0x7b1   :  { %v1073_v51 = vpop.xlane.xlu0 %1072  ;;  %v1117_v44 = vmul.f32 %v5009_v54, %v5719_v57 }
 0x7b2   :  { %v1076_v45 = vpop.xlane.xlu1 %1075  ;;  %5020 = vrcp.f32 %v1073_v51 }
 0x7b3   :  { %4278 = vmatprep.mubr.msk.f32.mxu1 %vm421_vm3, %v1117_v44  ;;  %v5011_v44 = vpop.eup %5010  ;;  %5022 = vrcp.f32 %v1076_v45 }
 0x7b4   :  { %v5013_v14 = vpop.eup %5012  ;;  %v1118_v18 = vmul.f32 %v5011_v44, %v5717_v28 }
 0x7b5   :  { %v1079_v33 = vpop.xlane.xlu0 %1078  ;;  %v5015_v21 = vpop.eup %5014 }
 0x7b6   :  { %v1082_v61 = vpop.xlane.xlu1 %1081  ;;  %5024 = vrcp.f32 %v1079_v33 }
 0x7b7   :  { %5026 = vrcp.f32 %v1082_v61 }
 0x7b9   :  { %v4883_v35 = vpop.permute.xlu0 %4882 }
 0x7ba   :  { %v4885_v34 = vunpack.i.h.bf16 %v4883_v35  ;;  %v4884_v1 = vunpack.i.l.bf16 %v4883_v35  ;;  %v1088_v38 = vpop.xlane.xlu1 %1087  ;;  %v1119_v35 = vmul.f32 %v5013_v14, %v5727_v13 }
 0x7bc   :  { %v4655_v42 = vpack.c.bf16 %v4885_v34, %v4884_v1 }
 0x7be   :  { %v1085_v20 = vpop.xlane.xlu1 %1084  ;;  %4656 = vmatprep.subr.bf16.mxu1 %v4655_v42 }
 0x7bf   :  { %4658 = vmatpush3.bf16.msra.mxu1 %v4655_v42  ;;  %v5017_v42 = vpop.eup %5016  ;;  %5028 = vrcp.f32 %v1085_v20 }
 0x7c0   :  { %v1121_v19 = vmul.f32 %v5017_v42, %v5737_v6  ;;  %5030 = vrcp.f32 %v1088_v38 }
 0x7c2   :  { %v4888_v29 = vpop.permute.xlu1 %4887 }
 0x7c3   :  { %v4890_v26 = vunpack.i.h.bf16 %v4888_v29  ;;  %v4889_v57 = vunpack.i.l.bf16 %v4888_v29  ;;  %v5019_v29 = vpop.eup %5018 }
 0x7c4   :  { %v5021_v55 = vpop.eup %5020  ;;  %v1122_v14 = vmul.f32 %v5019_v29, %v5739_v43 }
 0x7c5   :  { %v4659_v54 = vpack.c.bf16 %v4890_v26, %v4889_v57  ;;  %v1120_v26 = vmul.f32 %v5015_v21, %v5729_v2  ;;  %v5023_v28 = vpop.eup %5022  ;;  %v1123_v13 = vmul.f32 %v5021_v55, %v5745_v49 }
 0x7c6   :  { %v5025_v32 = vpop.eup %5024  ;;  %v1124_v2 = vmul.f32 %v5023_v28, %v5747_v62 }
 0x7c7   :  { %4660 = vmatprep.subr.bf16.mxu1 %v4659_v54  ;;  %v5027_v51 = vpop.eup %5026  ;;  %v1125_v6 = vmul.f32 %v5025_v32, %v5753_v48 }
 0x7c8   :  { %4662 = vmatpush3.bf16.msra.mxu1 %v4659_v54  ;;  %v1126_v43 = vmul.f32 %v5027_v51, %v5755_v9 }
 0x7c9   :  { %v5029_v45 = vpop.eup %5028 }
 0x7ca   :  { %v5031_v33 = vpop.eup %5030  ;;  %v1127_v49 = vmul.f32 %v5029_v45, %v5765_v11 }
 0x7cb   :  { %4279 = vmatmul.mubr.msk.f32.vlgmr.msra.gmra.mrb[20].mxu1 %vm421_vm3, %v1118_v18  ;;  %v1128_v61 = vmul.f32 %v5031_v33, %v5761_v5 }
 0x7cc   :  { %4281 = vmatprep.mubr.msk.f32.mxu1 %vm421_vm3, %v1119_v35 }
 0x7cf   :  { %4282 = vmatmul.mubr.msk.f32.gmra.mrb[22].mxu1 %vm421_vm3, %v1120_v26 }
 0x7d0   :  { %4284 = vmatprep.mubr.msk.f32.mxu1 %vm421_vm3, %v1121_v19 }
 0x7d3   :  { %4285 = vmatmul.mubr.msk.f32.gmra.mrb[24].mxu1 %vm421_vm3, %v1122_v14 }
 0x7d4   :  { %4287 = vmatprep.mubr.msk.f32.mxu1 %vm421_vm3, %v1123_v13 }
 0x7d7   :  { %4288 = vmatmul.mubr.msk.f32.gmra.mrb[26].mxu1 %vm421_vm3, %v1124_v2 }
 0x7d8   :  { %4290 = vmatprep.mubr.msk.f32.mxu1 %vm421_vm3, %v1125_v6 }
 0x7db   :  { %4291 = vmatmul.mubr.msk.f32.gmra.mrb[28].mxu1 %vm421_vm3, %v1126_v43 }
 0x7dc   :  { %4293 = vmatprep.mubr.msk.f32.mxu1 %vm421_vm3, %v1127_v49 }
 0x7df   :  { %4294 = vmatmul.mubr.msk.f32.gmra.mrb[30].mxu1 %vm421_vm3, %v1128_v61 }
 0x7ea   :  { %v1091_v62 = vpop.xlane.xlu0 %1090 }
 0x7eb   :  { %5032 = vrcp.f32 %v1091_v62 }
 0x7ee   :  { %v1097_v48 = vpop.xlane.xlu0 %1096 }
 0x7ef   :  { %5034 = vrcp.f32 %v1097_v48 }
 0x7f2   :  { %v1100_v34 = vpop.xlane.xlu0 %1099 }
 0x7f3   :  { %v1094_v1 = vpop.xlane.xlu1 %1093 }
 0x7f4   :  { %5036 = vrcp.f32 %v1094_v1 }
 0x7f5   :  { %v5033_v38 = vpop.eup %5032  ;;  %5038 = vrcp.f32 %v1100_v34 }
 0x7f6   :  { %v1129_v9 = vmul.f32 %v5033_v38, %v5777_v40  ;;  %v5828_v40 = vld [vmem:[%s6694_s2 + $0x180] sm:$0xff] }
 0x7f7   :  { %4334 = vmatprep.mubr.f32.mxu0 %v5828_v40 }
 0x7f8   :  { %4296 = vmatprep.mubr.msk.f32.mxu1 %vm421_vm3, %v1129_v9 }
 0x7f9   :  { %v5035_v11 = vpop.eup %5034 }
 0x7fa   :  { %v1131_v54 = vmul.f32 %v5035_v11, %v5781_v56  ;;  %v4896_v56 = vpack.i.bf16 %v5318_v0, %v5313_v63 }
 0x7fc   :  { %4897 = vrot.lane.b32.xlu1 %v4896_v56, %s5214_s18 }
 0x7fe   :  { %v5037_v20 = vpop.eup %5036 }
 0x7ff   :  { %v1130_v57 = vmul.f32 %v5037_v20, %v5787_v27  ;;  %v5039_v5 = vpop.eup %5038  ;;  %v4891_v27 = vpack.i.bf16 %v5300_v37, %v5295_v36 }
 0x800   :  { %v1132_v44 = vmul.f32 %v5039_v5, %v5785_v50  ;;  %v69_v5 = vld [vmem:[%s6694_s2 + $0x198] sm:$0xff] }
 0x801   :  { %4297 = vmatmul.mubr.msk.f32.gmra.mrb[32].mxu1 %vm421_vm3, %v1130_v57  ;;  %4892 = vrot.lane.b32.xlu0 %v4891_v27, %s5214_s18 }
 0x802   :  { %4299 = vmatprep.mubr.msk.f32.mxu1 %vm421_vm3, %v1131_v54 }
 0x805   :  { %4300 = vmatmul.mubr.msk.f32.gmra.mrb[34].mxu1 %vm421_vm3, %v1132_v44 }
 0x86e   :  { %v4898_v1 = vpop.permute.xlu1 %4897 }
 0x86f   :  { %v4900_v20 = vunpack.i.h.bf16 %v4898_v1  ;;  %v4899_v57 = vunpack.i.l.bf16 %v4898_v1 }
 0x89e   :  { %v4280_v50 = vpop.f32.mrb[20].mxu1 }
 0x89f   :  { %v1339_v18 = vmul.f32 %v4280_v50, %v5445_v8  ;;  %v1259_v21 = vpop.f32.mrb[21].mxu1  ;;  %v409_v50 = vld [vmem:[%s6695_s3 + $0x40] sm:$0xff] }
 0x8a0   :  { %v1338_v35 = vmul.f32 %v1259_v21, %v5440_v7 }
 0x8a2   :  { %v4663_v42 = vpack.c.bf16 %v1339_v18, %v1338_v35  ;;  %v4283_v26 = vpop.f32.mrb[22].mxu1  ;;  %v410_v18 = vld [vmem:[%s6695_s3 + $0x48] sm:$0xff]  ;;  %v411_v35 = vld [vmem:[%s6695_s3 + $0x50] sm:$0xff] }
 0x8a3   :  { %v1341_v29 = vmul.f32 %v4283_v26, %v5451_v12  ;;  %v1269_v19 = vpop.f32.mrb[23].mxu1  ;;  %v4703_v21 = vpack.c.bf16 %v410_v18, %v409_v50 }
 0x8a4   :  { %v1340_v36 = vmul.f32 %v1269_v19, %v5457_v16  ;;  %4664 = vmatprep.subr.bf16.mxu0 %v4663_v42 }
 0x8a5   :  { %4666 = vmatpush3.bf16.msra.mxu0 %v4663_v42  ;;  %v412_v42 = vld [vmem:[%s6695_s3 + $0x58] sm:$0xff] }
 0x8a6   :  { %v4667_v37 = vpack.c.bf16 %v1341_v29, %v1340_v36  ;;  %v4286_v63 = vpop.f32.mrb[24].mxu1  ;;  %v4707_v26 = vpack.c.bf16 %v412_v42, %v411_v35  ;;  %v4901_v29 = vpack.i.bf16 %v410_v18, %v409_v50  ;;  %v4906_v19 = vpack.i.bf16 %v412_v42, %v411_v35  ;;  %v413_v36 = vld [vmem:[%s6695_s3 + $0x60] sm:$0xff] }
 0x8a7   :  { %v1343_v0 = vmul.f32 %v4286_v63, %v5466_v22  ;;  %v1279_v55 = vpop.f32.mrb[25].mxu1  ;;  %v415_v63 = vld [vmem:[%s6695_s3 + $0x70] sm:$0xff] }
 0x8a8   :  { %v1342_v14 = vmul.f32 %v1279_v55, %v5471_v25  ;;  %4668 = vmatprep.subr.bf16.mxu0 %v4667_v37  ;;  %4902 = vrot.lane.b32.xlu1 %v4901_v29, %s5213_s1 }
 0x8a9   :  { %4670 = vmatpush3.bf16.msra.mxu0 %v4667_v37  ;;  %v414_v37 = vld [vmem:[%s6695_s3 + $0x68] sm:$0xff]  ;;  %4907 = vrot.lane.b32.xlu0 %v4906_v19, %s5213_s1 }
 0x8aa   :  { %v4671_v8 = vpack.c.bf16 %v1343_v0, %v1342_v14  ;;  %v4289_v7 = vpop.f32.mrb[26].mxu1  ;;  %v416_v0 = vld [vmem:[%s6695_s3 + $0x78] sm:$0xff]  ;;  %v4911_v55 = vpack.i.bf16 %v414_v37, %v413_v36 }
 0x8ab   :  { %v1345_v28 = vmul.f32 %v4289_v7, %v5480_v30  ;;  %v1289_v13 = vpop.f32.mrb[27].mxu1  ;;  %v4916_v14 = vpack.i.bf16 %v416_v0, %v415_v63  ;;  %v5900_v7 = vld [vmem:[%s6695_s3 + $0xc0] sm:$0xff]  ;;  %v6717_v63 = vsub.s32 3, %v5322_v3  ;;  %v1605_v0 = vsub.s32 2, %v5322_v3 }
 0x8ac   :  { %v1344_v12 = vmul.f32 %v1289_v13, %v5485_v31  ;;  %4672 = vmatprep.subr.bf16.mxu0 %v4671_v8  ;;  %4912 = vrot.lane.b32.xlu1 %v4911_v55, %s5213_s1 }
 0x8ad   :  { %4674 = vmatpush3.bf16.msra.mxu0 %v4671_v8  ;;  %4917 = vrot.lane.b32.xlu0 %v4916_v14, %s5213_s1  ;;  %v5895_v8 = vsub.s32 1, %v5322_v3 }
 0x8ae   :  { %v4675_v16 = vpack.c.bf16 %v1345_v28, %v1344_v12  ;;  %v4292_v32 = vpop.f32.mrb[28].mxu1 }
 0x8af   :  { %v1347_v2 = vmul.f32 %v4292_v32, %v5494_v39  ;;  %v1299_v51 = vpop.f32.mrb[29].mxu1  ;;  %v1442_v28 = vrot.slane %v5900_v7, %v5895_v8 }
 0x8b0   :  { %v1346_v22 = vmul.f32 %v1299_v51, %v5499_v41  ;;  %4676 = vmatprep.subr.bf16.mxu0 %v4675_v16 }
 0x8b1   :  { %4678 = vmatpush3.bf16.msra.mxu0 %v4675_v16 }
 0x8b2   :  { %v4679_v25 = vpack.c.bf16 %v1347_v2, %v1346_v22  ;;  %v4295_v6 = vpop.f32.mrb[30].mxu1 }
 0x8b3   :  { %v1349_v45 = vmul.f32 %v4295_v6, %v5508_v46  ;;  %v1309_v43 = vpop.f32.mrb[31].mxu1 }
 0x8b4   :  { %v1348_v30 = vmul.f32 %v1309_v43, %v5513_v47  ;;  %4680 = vmatprep.subr.bf16.mxu0 %v4679_v25  ;;  %v4893_v47 = vpop.permute.xlu0 %4892 }
 0x8b5   :  { %4682 = vmatpush3.bf16.msra.mxu0 %v4679_v25  ;;  %v4895_v38 = vunpack.i.h.bf16 %v4893_v47  ;;  %v4894_v9 = vunpack.i.l.bf16 %v4893_v47 }
 0x8b6   :  { %v4683_v31 = vpack.c.bf16 %v1349_v45, %v1348_v30 }
 0x8b8   :  { %4684 = vmatprep.subr.bf16.mxu0 %v4683_v31 }
 0x8b9   :  { %4686 = vmatpush3.bf16.msra.mxu0 %v4683_v31 }
 0x8d4   :  { %v4298_v33 = vpop.f32.mrb[32].mxu1 }
 0x8d5   :  { %v1351_v39 = vmul.f32 %v4298_v33, %v5522_v52  ;;  %v1319_v49 = vpop.f32.mrb[33].mxu1  ;;  %v4695_v52 = vpack.c.bf16 %v4895_v38, %v4894_v9 }
 0x8d6   :  { %v1350_v41 = vmul.f32 %v1319_v49, %v5527_v53  ;;  %v67_v53 = vld [vmem:[%s6694_s2 + $0x188] sm:$0xff] }
 0x8d8   :  { %v4687_v61 = vpack.c.bf16 %v1351_v39, %v1350_v41  ;;  %v4301_v62 = vpop.f32.mrb[34].mxu1 }
 0x8d9   :  { %v1353_v48 = vmul.f32 %v4301_v62, %v5536_v58  ;;  %v1329_v34 = vpop.f32.mrb[35].mxu1  ;;  %v68_v58 = vld [vmem:[%s6694_s2 + $0x190] sm:$0xff] }
 0x8da   :  { %v1352_v46 = vmul.f32 %v1329_v34, %v5541_v59  ;;  %4688 = vmatprep.subr.bf16.mxu0 %v4687_v61  ;;  %v4699_v59 = vpack.c.bf16 %v4900_v20, %v4899_v57 }
 0x8db   :  { %4690 = vmatpush3.bf16.msra.mxu0 %v4687_v61 }
 0x8dc   :  { %v4691_v11 = vpack.c.bf16 %v1353_v48, %v1352_v46 }
 0x8de   :  { %4692 = vmatprep.subr.bf16.mxu0 %v4691_v11 }
 0x8df   :  { %4694 = vmatpush3.bf16.msra.mxu0 %v4691_v11 }
 0x8e0   :  { %4696 = vmatprep.subr.bf16.mxu0 %v4695_v52 }
 0x8e2   :  { %4335 = vmatmul.mubr.f32.vlgmr.msra.gmra.mrb[24].mxu0 %v67_v53 }
 0x8e3   :  { %4337 = vmatprep.mubr.f32.mxu0 %v68_v58  ;;  %4698 = vmatpush3.bf16.msra.mxu0 %v4695_v52 }
 0x8e4   :  { %4700 = vmatprep.subr.bf16.mxu0 %v4699_v59 }
 0x8e6   :  { %4338 = vmatmul.mubr.f32.gmra.mrb[26].mxu0 %v69_v5 }
 0x8e7   :  { %4702 = vmatpush3.bf16.msra.mxu0 %v4699_v59 }
 0x8e8   :  { %4704 = vmatprep.subr.bf16.mxu0 %v4703_v21 }
 0x9b5   :  { %v4336_v54 = vpop.f32.mrb[24].mxu0 }
 0x9b6   :  { %v1420_v44 = vpop.f32.mrb[25].mxu0 }
 0x9b7   :  { %4348 = vmatprep.mubr.msk.f32.mxu0 %vm421_vm3, %v1420_v44 }
 0x9b8   :  { %4349 = vmatmul.mubr.msk.f32.vlgmr.msra.gmra.mrb[28].mxu0 %vm421_vm3, %v4336_v54 }
 0x9b9   :  { %v4339_v27 = vpop.f32.mrb[26].mxu0  ;;  %4706 = vmatpush3.bf16.msra.mxu0 %v4703_v21 }
 0x9ba   :  { %v1430_v56 = vpop.f32.mrb[27].mxu0  ;;  %4708 = vmatprep.subr.bf16.mxu0 %v4707_v26 }
 0x9bb   :  { %4351 = vmatprep.mubr.msk.f32.mxu0 %vm421_vm3, %v1430_v56 }
 0x9bc   :  { %4352 = vmatmul.mubr.msk.f32.gmra.mrb[30].mxu0 %vm421_vm3, %v4339_v27 }
 0x9bd   :  { %4710 = vmatpush3.bf16.msra.mxu0 %v4707_v26 }
 0xa8b   :  { %v4350_v13 = vpop.f32.mrb[28].mxu0 }
 0xa8c   :  { %v1543_v12 = vadd.f32 %v4350_v13, %v1442_v28  ;;  %v1537_v16 = vpop.f32.mrb[29].mxu0  ;;  %v4903_v13 = vpop.permute.xlu1 %4902 }
 0xa8d   :  { %v1538_v32 = vadd.f32 %v1537_v16, %v1442_v28 }
 0xa8e   :  { %v5905_v2 = vadd.f32 %v1543_v12, %v5333_v17  ;;  %v4908_v12 = vpop.permute.xlu0 %4907 }
 0xa8f   :  { %v1556_v51 = vadd.f32 %v1538_v32, %v5331_v15  ;;  %v4353_v22 = vpop.f32.mrb[30].mxu0  ;;  %v4905_v32 = vunpack.i.h.bf16 %v4903_v13 }
 0xa90   :  { %v1561_v25 = vsel %vm421_vm3, %v5905_v2, 0.0  ;;  %v1576_v6 = vmul.f32 %v5905_v2, %v5905_v2  ;;  %v1553_v45 = vadd.f32 %v4353_v22, %v1442_v28  ;;  %v1547_v43 = vpop.f32.mrb[31].mxu0  ;;  %v4909_v22 = vunpack.i.l.bf16 %v4908_v12 }
 0xa91   :  { %v1560_v30 = vsel %vm421_vm3, %v1556_v51, 0.0  ;;  %v1575_v31 = vmul.f32 %v1556_v51, %v1556_v51  ;;  %v1548_v33 = vadd.f32 %v1547_v43, %v1442_v28  ;;  %v1614_v28 = vrot.slane %v5900_v7, %v6717_v63 }
 0xa92   :  { %v1580_v39 = vsel %vm421_vm3, %v1576_v6, 0.0  ;;  %v1562_v49 = vadd.f32 %v1561_v25, %v1560_v30  ;;  %v1559_v17 = vadd.f32 %v1553_v45, %v5341_v24 }
 0xa93   :  { %v1579_v15 = vsel %vm421_vm3, %v1575_v31, 0.0  ;;  %v1558_v41 = vadd.f32 %v1548_v33, %v5339_v23 }
 0xa94   :  { %v1581_v61 = vadd.f32 %v1580_v39, %v1579_v15  ;;  %v1578_v62 = vmul.f32 %v1559_v17, %v1559_v17  ;;  %v1565_v47 = vsel %vm421_vm3, %v1559_v17, 0.0  ;;  %v4913_v15 = vpop.permute.xlu1 %4912 }
 0xa95   :  { %v1563_v48 = vsel %vm421_vm3, %v1558_v41, 0.0  ;;  %v1577_v34 = vmul.f32 %v1558_v41, %v1558_v41 }
 0xa96   :  { %v1564_v46 = vadd.f32 %v1563_v48, %v1562_v49  ;;  %v1584_v11 = vsel %vm421_vm3, %v1578_v62, 0.0  ;;  %v4918_v48 = vpop.permute.xlu0 %4917 }
 0xa97   :  { %v1582_v1 = vsel %vm421_vm3, %v1577_v34, 0.0  ;;  %v4920_v34 = vunpack.i.h.bf16 %v4918_v48 }
 0xa98   :  { %v1566_v38 = vadd.f32 %v1565_v47, %v1564_v46  ;;  %v1583_v9 = vadd.f32 %v1582_v1, %v1581_v61  ;;  %v4914_v61 = vunpack.i.l.bf16 %v4913_v15  ;;  %v4919_v46 = vunpack.i.l.bf16 %v4918_v48  ;;  %v5961_v48 = vld [vmem:[%s6695_s3 + $0x20] sm:$0xff] }
 0xa99   :  { %v6716_v1 = vsub.s32 4, %v5322_v3 }
 0xa9a   :  { %v1567_v20 = vrot.slane %v1566_v38, 4  ;;  %v1585_v24 = vadd.f32 %v1584_v11, %v1583_v9  ;;  %v4723_v47 = vpack.c.bf16 %v4920_v34, %v4919_v46  ;;  %v5966_v34 = vld [vmem:[%s6695_s3 + $0x28] sm:$0xff] }
 0xa9b   :  { %v4727_v46 = vpack.c.bf16 %v5966_v34, %v5961_v48 }
 0xa9c   :  { %v1568_v57 = vadd.f32 %v1567_v20, %v1566_v38  ;;  %v1586_v52 = vrot.slane %v1585_v24, 4  ;;  %v1622_v38 = vrot.slane %v5900_v7, %v6716_v1 }
 0xa9d   :  { %4728 = vmatprep.subr.bf16.mxu0 %v4727_v46 }
 0xa9e   :  { %v1569_v53 = vrot.slane %v1568_v57, 2  ;;  %v1587_v23 = vadd.f32 %v1586_v52, %v1585_v24 }
 0xaa0   :  { %v1570_v58 = vadd.f32 %v1569_v53, %v1568_v57  ;;  %v1588_v59 = vrot.slane %v1587_v23, 2 }
 0xaa2   :  { %v1571_v5 = vrot.slane %v1570_v58, 1  ;;  %v1589_v54 = vadd.f32 %v1588_v59, %v1587_v23 }
 0xaa4   :  { %v1572_v44 = vadd.f32 %v1571_v5, %v1570_v58  ;;  %v1590_v27 = vrot.slane %v1589_v54, 1 }
 0xaa6   :  { %v1574_v56 = vmul.f32 0.03125, %v1572_v44  ;;  %v1591_v50 = vadd.f32 %v1590_v27, %v1589_v54 }
 0xaa8   :  { %v1592_v18 = vmul.f32 0.03125, %v1591_v50  ;;  %v1593_v21 = vmul.f32 %v1574_v56, %v1574_v56  ;;  %v1598_v35 = vsub.f32 %v1558_v41, %v1574_v56  ;;  %v1596_v42 = vsub.f32 %v1556_v51, %v1574_v56 }
 0xaa9   :  { %v1597_v26 = vsub.f32 %v5905_v2, %v1574_v56  ;;  %v1599_v29 = vsub.f32 %v1559_v17, %v1574_v56  ;;  %v4904_v2 = vunpack.i.l.bf16 %v4903_v13  ;;  %v4910_v51 = vunpack.i.h.bf16 %v4908_v12 }
 0xaaa   :  { %v1594_v19 = vsub.f32 %v1592_v18, %v1593_v21  ;;  %v4915_v41 = vunpack.i.h.bf16 %v4913_v15 }
 0xaab   :  { %v4711_v30 = vpack.c.bf16 %v4905_v32, %v4904_v2  ;;  %v4715_v31 = vpack.c.bf16 %v4910_v51, %v4909_v22 }
 0xaac   :  { %v1595_v36 = vmax.f32 %v1594_v19, 0.0  ;;  %v4719_v62 = vpack.c.bf16 %v4915_v41, %v4914_v61 }
 0xaad   :  { %4712 = vmatprep.subr.bf16.mxu1 %v4711_v30 }
 0xaae   :  { %v1600_v37 = vadd.f32 1e-05, %v1595_v36  ;;  %4714 = vmatpush3.bf16.msra.mxu1 %v4711_v30 }
 0xaaf   :  { %4716 = vmatprep.subr.bf16.mxu1 %v4715_v31 }
 0xab0   :  { %5040 = vrsqrt.f32 %v1600_v37 }
 0xab2   :  { %4718 = vmatpush3.bf16.msra.mxu1 %v4715_v31 }
 0xab3   :  { %4720 = vmatprep.subr.bf16.mxu1 %v4719_v62 }
 0xab6   :  { %4722 = vmatpush3.bf16.msra.mxu1 %v4719_v62  ;;  %v5129_v62 = vld [vmem:[%s6694_s2 + $0x100] sm:$0xff] }
 0xab7   :  { %4724 = vmatprep.subr.bf16.mxu1 %v4723_v47 }
 0xaba   :  { %v5041_v55 = vpop.eup %5040  ;;  %4726 = vmatpush3.bf16.msra.mxu1 %v4723_v47  ;;  %v5973_v47 = vld [vmem:[%s6695_s3 + $0x30] sm:$0xff] }
 0xabb   :  { %v1602_v14 = vmul.f32 %v5900_v7, %v5041_v55 }
 0xabd   :  { %v1606_v16 = vrot.slane %v1602_v14, %v1605_v0 }
 0xabf   :  { %v1609_v25 = vmul.f32 %v1606_v16, %v1598_v35  ;;  %v1607_v6 = vmul.f32 %v1606_v16, %v1596_v42  ;;  %v1608_v45 = vmul.f32 %v1606_v16, %v1597_v26  ;;  %v1610_v43 = vmul.f32 %v1606_v16, %v1599_v29 }
 0xac1   :  { %v5930_v33 = vadd.f32 %v1614_v28, %v1607_v6  ;;  %v5932_v39 = vadd.f32 %v1614_v28, %v1608_v45  ;;  %v5936_v49 = vadd.f32 %v1614_v28, %v1609_v25  ;;  %v5942_v17 = vadd.f32 %v1614_v28, %v1610_v43 }
 0xac3   :  { %4362 = vmatprep.mubr.msk.f32.mxu0 %vm421_vm3, %v5930_v33 }
 0xac4   :  { %4363 = vmatmul.mubr.msk.f32.vlgmr.msra.gmra.mrb[32].mxu0 %vm421_vm3, %v5932_v39 }
 0xac5   :  { %4365 = vmatprep.mubr.msk.f32.mxu0 %vm421_vm3, %v5936_v49  ;;  %4730 = vmatpush3.bf16.msra.mxu0 %v4727_v46 }
 0xac8   :  { %4366 = vmatmul.mubr.msk.f32.gmra.mrb[34].mxu0 %vm421_vm3, %v5942_v17 }
 0xb97   :  { %v4364_v9 = vpop.f32.mrb[32].mxu0 }
 0xb98   :  { %v1707_v11 = vadd.f32 %v4364_v9, %v1622_v38  ;;  %v1701_v20 = vpop.f32.mrb[33].mxu0 }
 0xb99   :  { %v1702_v24 = vadd.f32 %v1701_v20, %v1622_v38  ;;  %v6715_v20 = vsub.s32 5, %v5322_v3 }
 0xb9a   :  { %v1725_v57 = vmul.f32 0.044715, %v1707_v11  ;;  %v1721_v51 = vmul.f32 0.5, %v1707_v11 }
 0xb9b   :  { %v1724_v52 = vmul.f32 0.044715, %v1702_v24  ;;  %v4367_v53 = vpop.f32.mrb[34].mxu0  ;;  %v1720_v32 = vmul.f32 0.5, %v1702_v24 }
 0xb9c   :  { %v1729_v23 = vmul.f32 %v1725_v57, %v1707_v11  ;;  %v1717_v58 = vadd.f32 %v4367_v53, %v1622_v38  ;;  %v1711_v59 = vpop.f32.mrb[35].mxu0 }
 0xb9d   :  { %v1728_v5 = vmul.f32 %v1724_v52, %v1702_v24  ;;  %v1712_v54 = vadd.f32 %v1711_v59, %v1622_v38  ;;  %v5978_v38 = vld [vmem:[%s6695_s3 + $0x38] sm:$0xff] }
 0xb9e   :  { %v1733_v44 = vmul.f32 %v1729_v23, %v1707_v11  ;;  %v1727_v27 = vmul.f32 0.044715, %v1717_v58  ;;  %v1723_v15 = vmul.f32 0.5, %v1717_v58  ;;  %v4946_v9 = vpack.i.bf16 %v5978_v38, %v5973_v47 }
 0xb9f   :  { %v1732_v56 = vmul.f32 %v1728_v5, %v1702_v24  ;;  %v1726_v50 = vmul.f32 0.044715, %v1712_v54  ;;  %v1722_v30 = vmul.f32 0.5, %v1712_v54 }
 0xba0   :  { %v1737_v18 = vadd.f32 %v1733_v44, %v1707_v11  ;;  %v1731_v21 = vmul.f32 %v1727_v27, %v1717_v58  ;;  %v4731_v11 = vpack.c.bf16 %v5978_v38, %v5973_v47  ;;  %v6461_v47 = vld [vmem:[%s6695_s3 + $0x98] sm:$0xff] }
 0xba1   :  { %v1736_v35 = vadd.f32 %v1732_v56, %v1702_v24  ;;  %v1730_v42 = vmul.f32 %v1726_v50, %v1712_v54  ;;  %v1759_v24 = vrot.slane %v5900_v7, %v6715_v20 }
 0xba2   :  { %v1741_v26 = vmul.f32 0.7978846, %v1737_v18  ;;  %v1735_v29 = vmul.f32 %v1731_v21, %v1717_v58  ;;  %4732 = vmatprep.subr.bf16.mxu0 %v4731_v11 }
 0xba3   :  { %v1734_v19 = vmul.f32 %v1730_v42, %v1712_v54  ;;  %v1740_v36 = vmul.f32 0.7978846, %v1736_v35  ;;  %4734 = vmatpush3.bf16.msra.mxu0 %v4731_v11 }
 0xba4   :  { %5042 = vtanh.f32 %v1741_v26  ;;  %v1739_v37 = vadd.f32 %v1735_v29, %v1717_v58 }
 0xba5   :  { %v1738_v55 = vadd.f32 %v1734_v19, %v1712_v54  ;;  %5044 = vtanh.f32 %v1740_v36 }
 0xba6   :  { %v1743_v14 = vmul.f32 0.7978846, %v1739_v37 }
 0xba7   :  { %v1742_v28 = vmul.f32 0.7978846, %v1738_v55 }
 0xba8   :  { %5046 = vtanh.f32 %v1743_v14 }
 0xba9   :  { %5048 = vtanh.f32 %v1742_v28 }
 0xbae   :  { %v5043_v13 = vpop.eup %5042 }
 0xbaf   :  { %v5045_v12 = vpop.eup %5044  ;;  %v1749_v16 = vadd.f32 1.0, %v5043_v13 }
 0xbb0   :  { %v1748_v2 = vadd.f32 1.0, %v5045_v12 }
 0xbb1   :  { %v1753_v45 = vmul.f32 %v1749_v16, %v1721_v51 }
 0xbb2   :  { %v5047_v22 = vpop.eup %5046  ;;  %v1752_v25 = vmul.f32 %v1748_v2, %v1720_v32 }
 0xbb3   :  { %v5049_v6 = vpop.eup %5048  ;;  %v1751_v43 = vadd.f32 1.0, %v5047_v22 }
 0xbb4   :  { %4384 = vmatprep.mubr.msk.f32.mxu1 %vm1792_vm5, %v1752_v25  ;;  %v1750_v31 = vadd.f32 1.0, %v5049_v6 }
 0xbb5   :  { %4385 = vmatmul.mubr.msk.f32.vlgmr.msra.gmra.mrb[36].mxu1 %vm1792_vm5, %v1753_v45  ;;  %v1755_v61 = vmul.f32 %v1751_v43, %v1723_v15 }
 0xbb6   :  { %v1754_v41 = vmul.f32 %v1750_v31, %v1722_v30 }
 0xbb8   :  { %4387 = vmatprep.mubr.msk.f32.mxu1 %vm1792_vm5, %v1754_v41 }
 0xbb9   :  { %4388 = vmatmul.mubr.msk.f32.gmra.mrb[38].mxu1 %vm1792_vm5, %v1755_v61 }
 0xbba   :  { %4412 = vmatprep.mubr.msk.f32.mxu1 %vm421_vm3, %v5129_v62 }
 0xc88   :  { %v4386_v57 = vpop.f32.mrb[36].mxu1 }
 0xc89   :  { %v1877_v52 = vadd.f32 %v4386_v57, %v1759_v24  ;;  %v1871_v53 = vpop.f32.mrb[37].mxu1 }
 0xc8a   :  { %v1872_v23 = vadd.f32 %v1871_v53, %v1759_v24 }
 0xc8b   :  { %v1891_v58 = vadd.f32 %v1877_v52, %v5932_v39 }
 0xc8c   :  { %v1890_v59 = vadd.f32 %v1872_v23, %v5930_v33  ;;  %v4389_v5 = vpop.f32.mrb[38].mxu1 }
 0xc8d   :  { %v1895_v54 = vsel %vm421_vm3, %v1891_v58, 0.0  ;;  %v1909_v44 = vmul.f32 %v1891_v58, %v1891_v58  ;;  %v1887_v27 = vadd.f32 %v4389_v5, %v1759_v24  ;;  %v1881_v56 = vpop.f32.mrb[39].mxu1  ;;  %v6714_v5 = vsub.s32 6, %v5322_v3 }
 0xc8e   :  { %v1894_v50 = vsel %vm421_vm3, %v1890_v59, 0.0  ;;  %v1908_v18 = vmul.f32 %v1890_v59, %v1890_v59  ;;  %v1882_v21 = vadd.f32 %v1881_v56, %v1759_v24 }
 0xc8f   :  { %v1913_v35 = vsel %vm421_vm3, %v1909_v44, 0.0  ;;  %v1896_v42 = vadd.f32 %v1895_v54, %v1894_v50  ;;  %v1893_v26 = vadd.f32 %v1887_v27, %v5942_v17  ;;  %v6713_v54 = vsub.s32 7, %v5322_v3 }
 0xc90   :  { %v1912_v29 = vsel %vm421_vm3, %v1908_v18, 0.0  ;;  %v1892_v39 = vadd.f32 %v1882_v21, %v5936_v49 }
 0xc91   :  { %v1914_v33 = vadd.f32 %v1913_v35, %v1912_v29  ;;  %v1911_v19 = vmul.f32 %v1893_v26, %v1893_v26  ;;  %v1899_v14 = vsel %vm421_vm3, %v1893_v26, 0.0  ;;  %v84_v29 = vld [vmem:[%s6695_s3 + $0xc8] sm:$0xff] }
 0xc92   :  { %v1897_v36 = vsel %vm421_vm3, %v1892_v39, 0.0  ;;  %v1910_v37 = vmul.f32 %v1892_v39, %v1892_v39 }
 0xc93   :  { %v1898_v55 = vadd.f32 %v1897_v36, %v1896_v42  ;;  %v1917_v16 = vsel %vm421_vm3, %v1911_v19, 0.0 }
 0xc94   :  { %v1915_v28 = vsel %vm421_vm3, %v1910_v37, 0.0 }
 0xc95   :  { %v1900_v13 = vadd.f32 %v1899_v14, %v1898_v55  ;;  %v1916_v12 = vadd.f32 %v1915_v28, %v1914_v33 }
 0xc97   :  { %v1901_v32 = vrot.slane %v1900_v13, 4  ;;  %v1918_v17 = vadd.f32 %v1917_v16, %v1916_v12 }
 0xc99   :  { %v1902_v2 = vadd.f32 %v1901_v32, %v1900_v13  ;;  %v1919_v51 = vrot.slane %v1918_v17, 4 }
 0xc9b   :  { %v1903_v22 = vrot.slane %v1902_v2, 2  ;;  %v1920_v49 = vadd.f32 %v1919_v51, %v1918_v17  ;;  %v5132_v51 = vld [vmem:[%s6694_s2 + $0x118] sm:$0xff] }
 0xc9d   :  { %v1904_v25 = vadd.f32 %v1903_v22, %v1902_v2  ;;  %v1921_v6 = vrot.slane %v1920_v49, 2  ;;  %v5131_v2 = vld [vmem:[%s6694_s2 + $0x110] sm:$0xff]  ;;  %v5133_v22 = vld [vmem:[%s6694_s2 + $0x120] sm:$0xff] }
 0xc9f   :  { %v1905_v45 = vrot.slane %v1904_v25, 1  ;;  %v1922_v43 = vadd.f32 %v1921_v6, %v1920_v49  ;;  %v5134_v49 = vld [vmem:[%s6694_s2 + $0x128] sm:$0xff]  ;;  %v5136_v6 = vld [vmem:[%s6694_s2 + $0x138] sm:$0xff] }
 0xca1   :  { %v1906_v30 = vadd.f32 %v1905_v45, %v1904_v25  ;;  %v1923_v31 = vrot.slane %v1922_v43, 1  ;;  %v5135_v25 = vld [vmem:[%s6694_s2 + $0x130] sm:$0xff]  ;;  %v5137_v45 = vld [vmem:[%s6694_s2 + $0x140] sm:$0xff] }
 0xca3   :  { %v1907_v15 = vmul.f32 0.03125, %v1906_v30  ;;  %v1924_v41 = vadd.f32 %v1923_v31, %v1922_v43  ;;  %v5138_v43 = vld [vmem:[%s6694_s2 + $0x148] sm:$0xff]  ;;  %v5139_v30 = vld [vmem:[%s6694_s2 + $0x150] sm:$0xff]  ;;  %v5140_v31 = vld [vmem:[%s6694_s2 + $0x158] sm:$0xff] }
 0xca5   :  { %v1925_v61 = vmul.f32 0.03125, %v1924_v41  ;;  %v1926_v62 = vmul.f32 %v1907_v15, %v1907_v15  ;;  %v1931_v46 = vsub.f32 %v1892_v39, %v1907_v15  ;;  %v1929_v11 = vsub.f32 %v1890_v59, %v1907_v15  ;;  %v5142_v41 = vld [vmem:[%s6694_s2 + $0x168] sm:$0xff] }
 0xca6   :  { %v1930_v24 = vsub.f32 %v1891_v58, %v1907_v15  ;;  %v1932_v57 = vsub.f32 %v1893_v26, %v1907_v15  ;;  %v1947_v59 = vrot.slane %v5900_v7, %v6713_v54  ;;  %v1967_v39 = vrot.slane %v84_v29, %v5325_v4  ;;  %v5130_v4 = vld [vmem:[%s6694_s2 + $0x108] sm:$0xff]  ;;  %v5141_v15 = vld [vmem:[%s6694_s2 + $0x160] sm:$0xff] }
 0xca7   :  { %v1927_v52 = vsub.f32 %v1925_v61, %v1926_v62  ;;  %v5143_v61 = vld [vmem:[%s6694_s2 + $0x170] sm:$0xff]  ;;  %v5144_v62 = vld [vmem:[%s6694_s2 + $0x178] sm:$0xff] }
 0xca9   :  { %v1928_v53 = vmax.f32 %v1927_v52, 0.0 }
 0xcab   :  { %v1933_v23 = vadd.f32 1e-05, %v1928_v53 }
 0xcad   :  { %5050 = vrsqrt.f32 %v1933_v23 }
 0xcb7   :  { %v5051_v44 = vpop.eup %5050 }
 0xcb8   :  { %v1935_v27 = vmul.f32 %v5900_v7, %v5051_v44 }
 0xcba   :  { %v1939_v56 = vrot.slane %v1935_v27, %v6714_v5 }
 0xcbc   :  { %v1942_v58 = vmul.f32 %v1939_v56, %v1931_v46  ;;  %v1940_v50 = vmul.f32 %v1939_v56, %v1929_v11  ;;  %v1941_v18 = vmul.f32 %v1939_v56, %v1930_v24  ;;  %v1943_v21 = vmul.f32 %v1939_v56, %v1932_v57 }
 0xcbe   :  { %v6008_v35 = vadd.f32 %v1947_v59, %v1940_v50  ;;  %v6010_v42 = vadd.f32 %v1947_v59, %v1941_v18  ;;  %v6014_v26 = vadd.f32 %v1947_v59, %v1942_v58  ;;  %v6020_v7 = vadd.f32 %v1947_v59, %v1943_v21  ;;  %v6107_v59 = vld [vmem:[%s6694_s2 + $0x80] sm:$0xff]  ;;  %v6113_v50 = vld [vmem:[%s6694_s2 + $0x88] sm:$0xff] }
 0xcc0   :  { %4398 = vmatprep.mubr.msk.f32.mxu0 %vm421_vm3, %v6008_v35 }
 0xcc1   :  { %4399 = vmatmul.mubr.msk.f32.vlgmr.msra.gmra.mrb[36].mxu0 %vm421_vm3, %v6010_v42 }
 0xcc2   :  { %4401 = vmatprep.mubr.msk.f32.mxu0 %vm421_vm3, %v6014_v26 }
 0xcc5   :  { %4402 = vmatmul.mubr.msk.f32.gmra.mrb[38].mxu0 %vm421_vm3, %v6020_v7 }
 0xd94   :  { %v4400_v33 = vpop.f32.mrb[36].mxu0 }
 0xd95   :  { %v2052_v19 = vadd.f32 %v4400_v33, %v1967_v39  ;;  %v2046_v36 = vpop.f32.mrb[37].mxu0  ;;  %v6127_v33 = vld [vmem:[%s6694_s2 + $0x90] sm:$0xff] }
 0xd96   :  { %v2047_v37 = vadd.f32 %v2046_v36, %v1967_v39 }
 0xd98   :  { %v4403_v55 = vpop.f32.mrb[38].mxu0  ;;  %v6028_v14 = vpack.i.bf16 %v2052_v19, %v2047_v37  ;;  %v4735_v28 = vpack.c.bf16 %v2052_v19, %v2047_v37  ;;  %v6134_v37 = vld [vmem:[%s6694_s2 + $0xa8] sm:$0xff] }
 0xd99   :  { %v2062_v13 = vadd.f32 %v4403_v55, %v1967_v39  ;;  %v2056_v12 = vpop.f32.mrb[39].mxu0 }
 0xd9a   :  { %v2057_v16 = vadd.f32 %v2056_v12, %v1967_v39  ;;  %4922 = vrot.lane.b32.xlu1 %v6028_v14, %s5212_s25  ;;  %4736 = vmatprep.subr.bf16.mxu1 %v4735_v28 }
 0xd9b   :  { %4738 = vmatpush3.bf16.msra.mxu1 %v4735_v28 }
 0xd9c   :  { %v6032_v32 = vpack.i.bf16 %v2062_v13, %v2057_v16  ;;  %v4739_v17 = vpack.c.bf16 %v2062_v13, %v2057_v16  ;;  %v6141_v13 = vld [vmem:[%s6694_s2 + $0xa0] sm:$0xff] }
 0xd9e   :  { %4927 = vrot.lane.b32.xlu0 %v6032_v32, %s5212_s25  ;;  %4740 = vmatprep.subr.bf16.mxu1 %v4739_v17 }
 0xd9f   :  { %4742 = vmatpush3.bf16.msra.mxu1 %v4739_v17  ;;  %v6148_v17 = vld [vmem:[%s6694_s2 + $0xb8] sm:$0xff] }
 0xda2   :  { %4413 = vmatmul.mubr.msk.f32.vlgmr.msra.gmra.mrb[40].mxu1 %vm421_vm3, %v5130_v4 }
 0xda3   :  { %4415 = vmatprep.mubr.msk.f32.mxu1 %vm421_vm3, %v5131_v2 }
 0xda6   :  { %4416 = vmatmul.mubr.msk.f32.gmra.mrb[42].mxu1 %vm421_vm3, %v5132_v51  ;;  %v6155_v51 = vld [vmem:[%s6694_s2 + $0xb0] sm:$0xff] }
 0xda7   :  { %4418 = vmatprep.mubr.msk.f32.mxu1 %vm421_vm3, %v5133_v22 }
 0xdaa   :  { %4419 = vmatmul.mubr.msk.f32.gmra.mrb[44].mxu1 %vm421_vm3, %v5134_v49 }
 0xdab   :  { %4421 = vmatprep.mubr.msk.f32.mxu1 %vm421_vm3, %v5135_v25  ;;  %v6162_v25 = vld [vmem:[%s6694_s2 + $0xc8] sm:$0xff] }
 0xdae   :  { %4422 = vmatmul.mubr.msk.f32.gmra.mrb[46].mxu1 %vm421_vm3, %v5136_v6 }
 0xdaf   :  { %4424 = vmatprep.mubr.msk.f32.mxu1 %vm421_vm3, %v5137_v45 }
 0xdb2   :  { %4425 = vmatmul.mubr.msk.f32.gmra.mrb[48].mxu1 %vm421_vm3, %v5138_v43  ;;  %v6169_v43 = vld [vmem:[%s6694_s2 + $0xc0] sm:$0xff] }
 0xdb3   :  { %4427 = vmatprep.mubr.msk.f32.mxu1 %vm421_vm3, %v5139_v30 }
 0xdb6   :  { %4428 = vmatmul.mubr.msk.f32.gmra.mrb[50].mxu1 %vm421_vm3, %v5140_v31 }
 0xdb7   :  { %4430 = vmatprep.mubr.msk.f32.mxu1 %vm421_vm3, %v5141_v15  ;;  %v6176_v15 = vld [vmem:[%s6694_s2 + $0xd8] sm:$0xff] }
 0xdba   :  { %4431 = vmatmul.mubr.msk.f32.gmra.mrb[52].mxu1 %vm421_vm3, %v5142_v41 }
 0xdbb   :  { %4433 = vmatprep.mubr.msk.f32.mxu1 %vm421_vm3, %v5143_v61 }
 0xdbe   :  { %4434 = vmatmul.mubr.msk.f32.gmra.mrb[54].mxu1 %vm421_vm3, %v5144_v62  ;;  %v6183_v62 = vld [vmem:[%s6694_s2 + $0xd0] sm:$0xff] }
 0xe0c   :  { %v4923_v46 = vpop.permute.xlu1 %4922 }
 0xe0d   :  { %v4925_v11 = vunpack.i.h.bf16 %v4923_v46  ;;  %v4924_v24 = vunpack.i.l.bf16 %v4923_v46 }
 0xe0f   :  { %v4743_v57 = vpack.c.bf16 %v4925_v11, %v4924_v24  ;;  %v6190_v24 = vld [vmem:[%s6694_s2 + $0xe8] sm:$0xff] }
 0xe10   :  { %v4928_v52 = vpop.permute.xlu0 %4927 }
 0xe11   :  { %v4930_v53 = vunpack.i.h.bf16 %v4928_v52  ;;  %v4929_v23 = vunpack.i.l.bf16 %v4928_v52  ;;  %4745 = vmatprep.subr.msk.bf16.mxu0 %vm5425_vm4, %v4743_v57 }
 0xe12   :  { %4748 = vmatpush3.bf16.xpose.msk.msra.mxu0 %vm5425_vm4, %v4743_v57 }
 0xe13   :  { %v4749_v44 = vpack.c.bf16 %v4930_v53, %v4929_v23  ;;  %v6197_v53 = vld [vmem:[%s6694_s2 + $0xe0] sm:$0xff] }
 0xe15   :  { %4751 = vmatprep.subr.msk.bf16.mxu0 %vm5425_vm4, %v4749_v44 }
 0xe1a   :  { %4754 = vmatpush3.bf16.xpose.msk.msra.mxu0 %vm5425_vm4, %v4749_v44 }
 0xe75   :  { %v4414_v27 = vpop.f32.mrb[40].mxu1 }
 0xe76   :  { %v2131_v56 = vpop.f32.mrb[41].mxu1  ;;  %v2211_v18 = vmul.f32 %v6113_v50, %v4414_v27  ;;  %v6204_v27 = vld [vmem:[%s6694_s2 + $0xf8] sm:$0xff] }
 0xe77   :  { %v2210_v58 = vmul.f32 %v6107_v59, %v2131_v56 }
 0xe79   :  { %v4417_v21 = vpop.f32.mrb[42].mxu1  ;;  %4444 = vmatprep.mubr.msk.f32.mxu0 %vm421_vm3, %v2210_v58 }
 0xe7a   :  { %v2213_v29 = vmul.f32 %v6120_v60, %v4417_v21  ;;  %v2141_v39 = vpop.f32.mrb[43].mxu1  ;;  %4445 = vmatmul.mubr.msk.f32.vlgmr.msra.gmra.mrb[40].mxu0 %vm421_vm3, %v2211_v18  ;;  %v6211_v18 = vld [vmem:[%s6694_s2 + $0xf0] sm:$0xff] }
 0xe7b   :  { %v2212_v19 = vmul.f32 %v6127_v33, %v2141_v39 }
 0xe7d   :  { %v4420_v36 = vpop.f32.mrb[44].mxu1  ;;  %4447 = vmatprep.mubr.msk.f32.mxu0 %vm421_vm3, %v2212_v19 }
 0xe7e   :  { %v2215_v55 = vmul.f32 %v6134_v37, %v4420_v36  ;;  %v2151_v28 = vpop.f32.mrb[45].mxu1  ;;  %4448 = vmatmul.mubr.msk.f32.gmra.mrb[42].mxu0 %vm421_vm3, %v2213_v29  ;;  %v6737_v36 = vld [vmem:[#allocation7_spill] sm:$0xff] }
 0xe7f   :  { %v2214_v12 = vmul.f32 %v6141_v13, %v2151_v28  ;;  %v5161_v28 = vld [vmem:[%s6694_s2 + $0x8] sm:$0xff] }
 0xe81   :  { %v4423_v16 = vpop.f32.mrb[46].mxu1  ;;  %4450 = vmatprep.mubr.msk.f32.mxu0 %vm421_vm3, %v2214_v12 }
 0xe82   :  { %v2217_v4 = vmul.f32 %v6148_v17, %v4423_v16  ;;  %v2161_v2 = vpop.f32.mrb[47].mxu1  ;;  %4451 = vmatmul.mubr.msk.f32.gmra.mrb[44].mxu0 %vm421_vm3, %v2215_v55 }
 0xe83   :  { %v2216_v22 = vmul.f32 %v6155_v51, %v2161_v2 }
 0xe85   :  { %v4426_v49 = vpop.f32.mrb[48].mxu1  ;;  %4453 = vmatprep.mubr.msk.f32.mxu0 %vm421_vm3, %v2216_v22 }
 0xe86   :  { %v2219_v6 = vmul.f32 %v6162_v25, %v4426_v49  ;;  %v2171_v45 = vpop.f32.mrb[49].mxu1  ;;  %4454 = vmatmul.mubr.msk.f32.gmra.mrb[46].mxu0 %vm421_vm3, %v2217_v4  ;;  %v5162_v4 = vld [vmem:[%s6694_s2] sm:$0xff] }
 0xe87   :  { %v2218_v30 = vmul.f32 %v6169_v43, %v2171_v45 }
 0xe89   :  { %v4429_v31 = vpop.f32.mrb[50].mxu1  ;;  %4456 = vmatprep.mubr.msk.f32.mxu0 %vm421_vm3, %v2218_v30 }
 0xe8a   :  { %v2221_v41 = vmul.f32 %v6176_v15, %v4429_v31  ;;  %v2181_v61 = vpop.f32.mrb[51].mxu1  ;;  %4457 = vmatmul.mubr.msk.f32.gmra.mrb[48].mxu0 %vm421_vm3, %v2219_v6  ;;  %v6739_v6 = vld [vmem:[#allocation9_spill] sm:$0xff]  ;;  %v5163_v31 = vld [vmem:[%s6694_s2 + $0x18] sm:$0xff] }
 0xe8b   :  { %v2220_v46 = vmul.f32 %v6183_v62, %v2181_v61 }
 0xe8d   :  { %v4432_v11 = vpop.f32.mrb[52].mxu1  ;;  %4459 = vmatprep.mubr.msk.f32.mxu0 %vm421_vm3, %v2220_v46  ;;  %v5164_v46 = vld [vmem:[%s6694_s2 + $0x10] sm:$0xff] }
 0xe8e   :  { %v2223_v57 = vmul.f32 %v6190_v24, %v4432_v11  ;;  %v2191_v52 = vpop.f32.mrb[53].mxu1  ;;  %4460 = vmatmul.mubr.msk.f32.gmra.mrb[50].mxu0 %vm421_vm3, %v2221_v41 }
 0xe8f   :  { %v2222_v23 = vmul.f32 %v6197_v53, %v2191_v52 }
 0xe91   :  { %v4435_v44 = vpop.f32.mrb[54].mxu1  ;;  %4462 = vmatprep.mubr.msk.f32.mxu0 %vm421_vm3, %v2222_v23 }
 0xe92   :  { %v2225_v56 = vmul.f32 %v6204_v27, %v4435_v44  ;;  %v2201_v58 = vpop.f32.mrb[55].mxu1  ;;  %4463 = vmatmul.mubr.msk.f32.gmra.mrb[52].mxu0 %vm421_vm3, %v2223_v57  ;;  %v6740_v57 = vld [vmem:[#allocation10_spill] sm:$0xff] }
 0xe93   :  { %v2224_v21 = vmul.f32 %v6211_v18, %v2201_v58 }
 0xe95   :  { %4465 = vmatprep.mubr.msk.f32.mxu0 %vm421_vm3, %v2224_v21 }
 0xe96   :  { %4466 = vmatmul.mubr.msk.f32.gmra.mrb[54].mxu0 %vm421_vm3, %v2225_v56  ;;  %v6741_v56 = vld [vmem:[#allocation11_spill] sm:$0xff] }
 0xe97   :  { %4532 = vmatprep.mubr.f32.mxu0 %v5828_v40  ;;  %v6738_v40 = vld [vmem:[#allocation8_spill] sm:$0xff] }
 0xf4d   :  { %v4446_v29 = vpop.f32.mrb[40].mxu0 }
 0xf4e   :  { %v2366_v39 = vadd.f32 %v4446_v29, %v5555_v10  ;;  %v2360_v19 = vpop.f32.mrb[41].mxu0  ;;  %v5165_v29 = vld [vmem:[%s6694_s2 + $0x28] sm:$0xff] }
 0xf4f   :  { %v2361_v55 = vadd.f32 %v2360_v19, %v6737_v36  ;;  %v5166_v36 = vld [vmem:[%s6694_s2 + $0x20] sm:$0xff] }
 0xf50   :  { %v6222_v12 = vadd.f32 %v5161_v28, %v2366_v39  ;;  %v6742_v28 = vld [vmem:[#allocation12_spill] sm:$0xff] }
 0xf51   :  { %v4449_v16 = vpop.f32.mrb[42].mxu0  ;;  %v6227_v2 = vadd.f32 %v5162_v4, %v2361_v55 }
 0xf52   :  { %v2376_v22 = vadd.f32 %v4449_v16, %v6738_v40  ;;  %v2370_v49 = vpop.f32.mrb[43].mxu0  ;;  %v2458_v10 = vsel %vm421_vm3, %v6222_v12, -inf }
 0xf53   :  { %v2371_v45 = vadd.f32 %v2370_v49, %v6739_v6  ;;  %2459 = vmax.xlane.f32.xlu0 %v2458_v10  ;;  %v2455_v30 = vsel %vm421_vm3, %v6227_v2, -inf  ;;  %v5167_v6 = vld [vmem:[%s6694_s2 + $0x38] sm:$0xff] }
 0xf54   :  { %2456 = vmax.xlane.f32.xlu1 %v2455_v30  ;;  %v6238_v41 = vadd.f32 %v5163_v31, %v2376_v22  ;;  %v6743_v22 = vld [vmem:[#allocation13_spill] sm:$0xff]  ;;  %v5168_v31 = vld [vmem:[%s6694_s2 + $0x30] sm:$0xff] }
 0xf55   :  { %v4452_v61 = vpop.f32.mrb[44].mxu0  ;;  %v6243_v11 = vadd.f32 %v5164_v46, %v2371_v45  ;;  %v6744_v46 = vld [vmem:[#allocation14_spill] sm:$0xff] }
 0xf56   :  { %v2386_v52 = vadd.f32 %v4452_v61, %v6740_v57  ;;  %v2380_v23 = vpop.f32.mrb[45].mxu0  ;;  %v2464_v44 = vsel %vm421_vm3, %v6238_v41, -inf }
 0xf57   :  { %v2381_v58 = vadd.f32 %v2380_v23, %v6741_v56  ;;  %v2461_v21 = vsel %vm421_vm3, %v6243_v11, -inf }
 0xf58   :  { %2465 = vmax.xlane.f32.xlu1 %v2464_v44  ;;  %2462 = vmax.xlane.f32.xlu0 %v2461_v21  ;;  %v6254_v39 = vadd.f32 %v5165_v29, %v2386_v52  ;;  %v6745_v44 = vld [vmem:[#allocation15_spill] sm:$0xff]  ;;  %v5169_v21 = vld [vmem:[%s6694_s2 + $0x48] sm:$0xff] }
 0xf59   :  { %v4455_v19 = vpop.f32.mrb[46].mxu0  ;;  %v6259_v55 = vadd.f32 %v5166_v36, %v2381_v58  ;;  %v5170_v36 = vld [vmem:[%s6694_s2 + $0x40] sm:$0xff] }
 0xf5a   :  { %v2396_v16 = vadd.f32 %v4455_v19, %v6742_v28  ;;  %v2390_v4 = vpop.f32.mrb[47].mxu0  ;;  %v2470_v40 = vsel %vm421_vm3, %v6254_v39, -inf }
 0xf5b   :  { %v2391_v49 = vadd.f32 %v2390_v4, %v6743_v22  ;;  %v2467_v10 = vsel %vm421_vm3, %v6259_v55, -inf }
 0xf5c   :  { %2471 = vmax.xlane.f32.xlu1 %v2470_v40  ;;  %2468 = vmax.xlane.f32.xlu0 %v2467_v10  ;;  %v6270_v45 = vadd.f32 %v5167_v6, %v2396_v16  ;;  %v6746_v16 = vld [vmem:[#allocation16_spill] sm:$0xff] }
 0xf5d   :  { %v4458_v30 = vpop.f32.mrb[48].mxu0  ;;  %v6275_v61 = vadd.f32 %v5168_v31, %v2391_v49  ;;  %v6747_v49 = vld [vmem:[#allocation17_spill] sm:$0xff] }
 0xf5e   :  { %v2406_v57 = vadd.f32 %v4458_v30, %v6744_v46  ;;  %v2400_v52 = vpop.f32.mrb[49].mxu0  ;;  %v2476_v23 = vsel %vm421_vm3, %v6270_v45, -inf  ;;  %v5171_v30 = vld [vmem:[%s6694_s2 + $0x58] sm:$0xff] }
 0xf5f   :  { %v2401_v56 = vadd.f32 %v2400_v52, %v6745_v44  ;;  %v2473_v58 = vsel %vm421_vm3, %v6275_v61, -inf }
 0xf60   :  { %2477 = vmax.xlane.f32.xlu1 %v2476_v23  ;;  %2474 = vmax.xlane.f32.xlu0 %v2473_v58  ;;  %v6286_v29 = vadd.f32 %v5169_v21, %v2406_v57  ;;  %v5172_v57 = vld [vmem:[%s6694_s2 + $0x50] sm:$0xff]  ;;  %v6749_v21 = vld [vmem:[#allocation19_spill] sm:$0xff] }
 0xf61   :  { %v4461_v19 = vpop.f32.mrb[50].mxu0  ;;  %v6291_v28 = vadd.f32 %v5170_v36, %v2401_v56  ;;  %v6748_v23 = vld [vmem:[#allocation18_spill] sm:$0xff] }
 0xf62   :  { %v2416_v4 = vadd.f32 %v4461_v19, %v6746_v16  ;;  %v2410_v40 = vpop.f32.mrb[51].mxu0  ;;  %v2482_v22 = vsel %vm421_vm3, %v6286_v29, -inf  ;;  %v5173_v16 = vld [vmem:[%s6694_s2 + $0x68] sm:$0xff] }
 0xf63   :  { %v2411_v10 = vadd.f32 %v2410_v40, %v6747_v49  ;;  %v2479_v6 = vsel %vm421_vm3, %v6291_v28, -inf }
 0xf64   :  { %2483 = vmax.xlane.f32.xlu1 %v2482_v22  ;;  %2480 = vmax.xlane.f32.xlu0 %v2479_v6  ;;  %v6302_v31 = vadd.f32 %v5171_v30, %v2416_v4  ;;  %v5174_v22 = vld [vmem:[%s6694_s2 + $0x60] sm:$0xff] }
 0xf65   :  { %v4464_v46 = vpop.f32.mrb[52].mxu0  ;;  %v6307_v52 = vadd.f32 %v5172_v57, %v2411_v10  ;;  %v6750_v10 = vld [vmem:[#allocation20_spill] sm:$0xff]  ;;  %v6751_v57 = vld [vmem:[#allocation21_spill] sm:$0xff] }
 0xf66   :  { %v2426_v44 = vadd.f32 %v4464_v46, %v6748_v23  ;;  %v2420_v56 = vpop.f32.mrb[53].mxu0  ;;  %v2488_v58 = vsel %vm421_vm3, %v6302_v31, -inf }
 0xf67   :  { %v2421_v19 = vadd.f32 %v2420_v56, %v6749_v21  ;;  %v2485_v36 = vsel %vm421_vm3, %v6307_v52, -inf  ;;  %v5176_v21 = vld [vmem:[%s6694_s2 + $0x70] sm:$0xff] }
 0xf68   :  { %2489 = vmax.xlane.f32.xlu1 %v2488_v58  ;;  %2486 = vmax.xlane.f32.xlu0 %v2485_v36  ;;  %v6318_v4 = vadd.f32 %v5173_v16, %v2426_v44  ;;  %v5175_v44 = vld [vmem:[%s6694_s2 + $0x78] sm:$0xff] }
 0xf69   :  { %v4467_v40 = vpop.f32.mrb[54].mxu0  ;;  %v6323_v49 = vadd.f32 %v5174_v22, %v2421_v19 }
 0xf6a   :  { %v2436_v6 = vadd.f32 %v4467_v40, %v6750_v10  ;;  %v2430_v30 = vpop.f32.mrb[55].mxu0  ;;  %v2494_v46 = vsel %vm421_vm3, %v6318_v4, -inf  ;;  %v5215_v40 = vmov 18  }
 0xf6b   :  { %v2431_v23 = vadd.f32 %v2430_v30, %v6751_v57  ;;  %v2491_v56 = vsel %vm421_vm3, %v6323_v49, -inf  ;;  %4971 = vset.pattern.permute.xlu0 %v5215_v40 }
 0xf6c   :  { %2495 = vmax.xlane.f32.xlu1 %v2494_v46  ;;  %2492 = vmax.xlane.f32.xlu0 %v2491_v56  ;;  %v6334_v58 = vadd.f32 %v5175_v44, %v2436_v6 }
 0xf6d   :  { %v6339_v19 = vadd.f32 %v5176_v21, %v2431_v23 }
 0xf6e   :  { %v2500_v36 = vsel %vm421_vm3, %v6334_v58, -inf }
 0xf6f   :  { %v2497_v16 = vsel %vm421_vm3, %v6339_v19, -inf }
 0xf70   :  { %2501 = vmax.xlane.f32.xlu1 %v2500_v36  ;;  %2498 = vmax.xlane.f32.xlu0 %v2497_v16 }
 0xfe0   :  { %v2460_v22 = vpop.xlane.xlu0 %2459 }
 0xfe1   :  { %v2504_v10 = vsub.f32 %v6222_v12, %v2460_v22  ;;  %v2457_v6 = vpop.xlane.xlu1 %2456 }
 0xfe2   :  { %v2503_v30 = vsub.f32 %v6227_v2, %v2457_v6 }
 0xfe3   :  { %v2521_v46 = vmul.f32 1.442695, %v2504_v10 }
 0xfe4   :  { %v2519_v57 = vmul.f32 1.442695, %v2503_v30 }
 0xfe5   :  { %5052 = vpow2.f32 %v2521_v46  ;;  %v2466_v23 = vpop.xlane.xlu1 %2465  ;;  %v2463_v56 = vpop.xlane.xlu0 %2462 }
 0xfe6   :  { %5054 = vpow2.f32 %v2519_v57  ;;  %v2506_v44 = vsub.f32 %v6238_v41, %v2466_v23  ;;  %v2505_v21 = vsub.f32 %v6243_v11, %v2463_v56 }
 0xfe8   :  { %v2525_v36 = vmul.f32 1.442695, %v2506_v44  ;;  %v2523_v16 = vmul.f32 1.442695, %v2505_v21 }
 0xfe9   :  { %v2472_v54 = vpop.xlane.xlu1 %2471  ;;  %v2469_v40 = vpop.xlane.xlu0 %2468 }
 0xfea   :  { %5056 = vpow2.f32 %v2525_v36  ;;  %v2508_v12 = vsub.f32 %v6254_v39, %v2472_v54  ;;  %v2507_v22 = vsub.f32 %v6259_v55, %v2469_v40 }
 0xfeb   :  { %5058 = vpow2.f32 %v2523_v16 }
 0xfec   :  { %v2529_v2 = vmul.f32 1.442695, %v2508_v12  ;;  %v2527_v10 = vmul.f32 1.442695, %v2507_v22 }
 0xfed   :  { %v2478_v6 = vpop.xlane.xlu1 %2477  ;;  %v2475_v30 = vpop.xlane.xlu0 %2474 }
 0xfee   :  { %5060 = vpow2.f32 %v2529_v2  ;;  %v2510_v46 = vsub.f32 %v6270_v45, %v2478_v6  ;;  %v2509_v41 = vsub.f32 %v6275_v61, %v2475_v30 }
 0xfef   :  { %v6353_v11 = vpop.eup %5052  ;;  %5062 = vpow2.f32 %v2527_v10 }
 0xff0   :  { %v6355_v57 = vpop.eup %5054  ;;  %v2533_v23 = vmul.f32 1.442695, %v2510_v46  ;;  %v2531_v56 = vmul.f32 1.442695, %v2509_v41  ;;  %v2554_v54 = vsel %vm421_vm3, %v6353_v11, 0.0 }
 0xff1   :  { %v2484_v39 = vpop.xlane.xlu1 %2483  ;;  %v2481_v55 = vpop.xlane.xlu0 %2480  ;;  %2555 = vadd.xlane.f32.xlu1 %v2554_v54  ;;  %v2551_v44 = vsel %vm421_vm3, %v6355_v57, 0.0 }
 0xff2   :  { %5064 = vpow2.f32 %v2533_v23  ;;  %v2512_v45 = vsub.f32 %v6286_v29, %v2484_v39  ;;  %v2511_v61 = vsub.f32 %v6291_v28, %v2481_v55  ;;  %2552 = vadd.xlane.f32.xlu0 %v2551_v44 }
 0xff3   :  { %5066 = vpow2.f32 %v2531_v56 }
 0xff4   :  { %v6363_v21 = vpop.eup %5056  ;;  %v2537_v36 = vmul.f32 1.442695, %v2512_v45  ;;  %v2535_v16 = vmul.f32 1.442695, %v2511_v61 }
 0xff5   :  { %v6365_v40 = vpop.eup %5058  ;;  %v2490_v12 = vpop.xlane.xlu1 %2489  ;;  %v2560_v2 = vsel %vm421_vm3, %v6363_v21, 0.0 }
 0xff6   :  { %v2487_v22 = vpop.xlane.xlu0 %2486  ;;  %5068 = vpow2.f32 %v2537_v36  ;;  %v2514_v10 = vsub.f32 %v6302_v31, %v2490_v12  ;;  %2561 = vadd.xlane.f32.xlu1 %v2560_v2  ;;  %v2557_v28 = vsel %vm421_vm3, %v6365_v40, 0.0 }
 0xff7   :  { %v2513_v29 = vsub.f32 %v6307_v52, %v2487_v22  ;;  %5070 = vpow2.f32 %v2535_v16  ;;  %2558 = vadd.xlane.f32.xlu0 %v2557_v28 }
 0xff8   :  { %v6373_v6 = vpop.eup %5060  ;;  %v2541_v30 = vmul.f32 1.442695, %v2514_v10 }
 0xff9   :  { %v2539_v46 = vmul.f32 1.442695, %v2513_v29  ;;  %v6375_v41 = vpop.eup %5062  ;;  %v2566_v23 = vsel %vm421_vm3, %v6373_v6, 0.0  ;;  %v2496_v10 = vpop.xlane.xlu1 %2495 }
 0xffa   :  { %5072 = vpow2.f32 %v2541_v30  ;;  %2567 = vadd.xlane.f32.xlu1 %v2566_v23  ;;  %v2563_v31 = vsel %vm421_vm3, %v6375_v41, 0.0  ;;  %v2493_v2 = vpop.xlane.xlu0 %2492 }
 0xffb   :  { %2564 = vadd.xlane.f32.xlu0 %v2563_v31  ;;  %5074 = vpow2.f32 %v2539_v46  ;;  %v2515_v29 = vsub.f32 %v6323_v49, %v2493_v2  ;;  %v2516_v31 = vsub.f32 %v6318_v4, %v2496_v10  ;;  %v6432_v2 = vld [vmem:[%s6695_s3 + $0x80] sm:$0xff]  ;;  %v6437_v10 = vld [vmem:[%s6695_s3 + $0x88] sm:$0xff] }
 0xffc   :  { %v6381_v52 = vpop.eup %5064 }
 0xffd   :  { %v6383_v56 = vpop.eup %5066  ;;  %v2572_v54 = vsel %vm421_vm3, %v6381_v52, 0.0  ;;  %v2543_v30 = vmul.f32 1.442695, %v2515_v29  ;;  %v2502_v23 = vpop.xlane.xlu1 %2501  ;;  %v4951_v29 = vpack.i.bf16 %v6437_v10, %v6432_v2 }
 0xffe   :  { %2573 = vadd.xlane.f32.xlu1 %v2572_v54  ;;  %v2569_v39 = vsel %vm421_vm3, %v6383_v56, 0.0  ;;  %v2499_v28 = vpop.xlane.xlu0 %2498  ;;  %v2518_v54 = vsub.f32 %v6334_v58, %v2502_v23  ;;  %v6456_v23 = vld [vmem:[%s6695_s3 + $0x90] sm:$0xff] }
 0xfff   :  { %2570 = vadd.xlane.f32.xlu0 %v2569_v39  ;;  %v2517_v46 = vsub.f32 %v6339_v19, %v2499_v28  ;;  %5076 = vpow2.f32 %v2543_v30  ;;  %v1960_v28 = vld [vmem:[%s6695_s3 + $0xa0] sm:$0xff]  ;;  %v1961_v30 = vld [vmem:[%s6695_s3 + $0xa8] sm:$0xff] }
0x1000   :  { %v6389_v55 = vpop.eup %5068  ;;  %v4961_v38 = vpack.i.bf16 %v1961_v30, %v1960_v28 }
0x1001   :  { %v6391_v44 = vpop.eup %5070  ;;  %v2578_v45 = vsel %vm421_vm3, %v6389_v55, 0.0  ;;  %v2547_v39 = vmul.f32 1.442695, %v2517_v46  ;;  %v4941_v46 = vpack.i.bf16 %v5966_v34, %v5961_v48  ;;  %v1962_v48 = vld [vmem:[%s6695_s3 + $0xb0] sm:$0xff]  ;;  %v1963_v34 = vld [vmem:[%s6695_s3 + $0xb8] sm:$0xff] }
0x1002   :  { %2579 = vadd.xlane.f32.xlu1 %v2578_v45  ;;  %v2575_v61 = vsel %vm421_vm3, %v6391_v44, 0.0  ;;  %v2545_v45 = vmul.f32 1.442695, %v2516_v31  ;;  %v6478_v31 = vld [vmem:[%s6692_s0] sm:$0xff] }
0x1003   :  { %2576 = vadd.xlane.f32.xlu0 %v2575_v61  ;;  %5078 = vpow2.f32 %v2547_v39 }
0x1004   :  { %v6397_v36 = vpop.eup %5072  ;;  %5080 = vpow2.f32 %v2545_v45  ;;  %v4966_v45 = vpack.i.bf16 %v1963_v34, %v1962_v48 }
0x1005   :  { %v2584_v16 = vsel %vm421_vm3, %v6397_v36, 0.0  ;;  %v6401_v12 = vpop.eup %5074 }
0x1006   :  { %2585 = vadd.xlane.f32.xlu1 %v2584_v16  ;;  %v2581_v22 = vsel %vm421_vm3, %v6401_v12, 0.0 }
0x100a   :  { %2582 = vadd.xlane.f32.xlu1 %v2581_v22 }
0x1019   :  { %4932 = vrot.lane.b32.xlu0 %v6028_v14, %s5213_s1  ;;  %v2549_v14 = vmul.f32 1.442695, %v2518_v54  ;;  %v6752_v54 = vld [vmem:[#allocation6_spill] sm:$0xff] }
0x101a   :  { %v3727_v39 = vmul.f32 %v6478_v31, %v6752_v54 }
0x101b   :  { %4937 = vrot.lane.b32.xlu1 %v6032_v32, %s5213_s1  ;;  %5082 = vpow2.f32 %v2549_v14  ;;  %v6413_v32 = vpop.eup %5076  ;;  %v5217_v14 = vmov 17  }
0x101c   :  { %v2587_v49 = vsel %vm421_vm3, %v6413_v32, 0.0  ;;  %v6417_v61 = vpop.eup %5078  ;;  %4972 = vset.pattern.permute.xlu1 %v5217_v14 }
0x101d   :  { %v6419_v19 = vpop.eup %5080  ;;  %v2593_v4 = vsel %vm421_vm3, %v6417_v61, 0.0 }
0x101e   :  { %v2590_v16 = vsel %vm421_vm3, %v6419_v19, 0.0 }
0x1025   :  { %v6423_v58 = vpop.eup %5082 }
0x1026   :  { %v2596_v22 = vsel %vm421_vm3, %v6423_v58, 0.0 }
0x1038   :  { %2588 = vadd.xlane.f32.xlu0 %v2587_v49 }
0x103c   :  { %2594 = vadd.xlane.f32.xlu0 %v2593_v4 }
0x103f   :  { %2591 = vadd.xlane.f32.xlu1 %v2590_v16 }
0x1040   :  { %2597 = vadd.xlane.f32.xlu0 %v2596_v22 }
0x1050   :  { %4947 = vrot.lane.b32.xlu1 %v4946_v9, %s5214_s18  ;;  %v4956_v9 = vpack.i.bf16 %v6461_v47, %v6456_v23 }
0x1054   :  { %4952 = vrot.lane.b32.xlu1 %v4951_v29, %s5213_s1 }
0x1056   :  { %4942 = vrot.lane.b32.xlu0 %v4941_v46, %s5214_s18  ;;  %s5216_s18 = smov 127  }
0x1058   :  { %4962 = vrot.lane.b32.xlu1 %v4961_v38, %s5213_s1 }
0x105a   :  { %4957 = vrot.lane.b32.xlu0 %v4956_v9, %s5213_s1 }
0x105c   :  { %3729 = vrot.lane.b32.xlu1 %v3727_v39, %s5216_s18 }
0x105e   :  { %4967 = vrot.lane.b32.xlu0 %v4966_v45, %s5213_s1 }
0x1062   :  { %3735 = vperm.xlu0 %4971, %v3727_v39  }
0x1066   :  { %4973 = vset.pattern.permute.xlu0 %v5217_v14 }
0x107e   :  { %v2556_v49 = vpop.xlane.xlu1 %2555 }
0x107f   :  { %v2553_v4 = vpop.xlane.xlu0 %2552 }
0x1080   :  { %5084 = vrcp.f32 %v2553_v4 }
0x1081   :  { %5086 = vrcp.f32 %v2556_v49 }
0x1083   :  { %v2562_v16 = vpop.xlane.xlu1 %2561 }
0x1084   :  { %v2559_v22 = vpop.xlane.xlu0 %2558 }
0x1085   :  { %5088 = vrcp.f32 %v2559_v22 }
0x1086   :  { %5090 = vrcp.f32 %v2562_v16 }
0x1087   :  { %v2568_v29 = vpop.xlane.xlu1 %2567 }
0x1088   :  { %v2565_v28 = vpop.xlane.xlu0 %2564 }
0x1089   :  { %5092 = vrcp.f32 %v2565_v28 }
0x108a   :  { %v5085_v30 = vpop.eup %5084  ;;  %5094 = vrcp.f32 %v2568_v29 }
0x108b   :  { %v2574_v46 = vpop.xlane.xlu1 %2573  ;;  %v2615_v38 = vmul.f32 %v5085_v30, %v6355_v57 }
0x108c   :  { %v2571_v9 = vpop.xlane.xlu0 %2570 }
0x108d   :  { %4476 = vmatprep.mubr.msk.f32.mxu1 %vm421_vm3, %v2615_v38  ;;  %5096 = vrcp.f32 %v2571_v9  ;;  %v5087_v38 = vpop.eup %5086 }
0x108e   :  { %5098 = vrcp.f32 %v2574_v46  ;;  %v2616_v49 = vmul.f32 %v5087_v38, %v6353_v11 }
0x108f   :  { %v2580_v48 = vpop.xlane.xlu1 %2579  ;;  %v5089_v63 = vpop.eup %5088 }
0x1090   :  { %v2577_v34 = vpop.xlane.xlu0 %2576  ;;  %v5091_v22 = vpop.eup %5090  ;;  %v2617_v16 = vmul.f32 %v5089_v63, %v6365_v40 }
0x1091   :  { %5100 = vrcp.f32 %v2577_v34 }
0x1092   :  { %5102 = vrcp.f32 %v2580_v48 }
0x1093   :  { %v2586_v54 = vpop.xlane.xlu1 %2585 }
0x1094   :  { %v4933_v45 = vpop.permute.xlu0 %4932 }
0x1095   :  { %v4935_v39 = vunpack.i.h.bf16 %v4933_v45  ;;  %v4934_v14 = vunpack.i.l.bf16 %v4933_v45  ;;  %v5093_v45 = vpop.eup %5092 }
0x1096   :  { %v2619_v29 = vmul.f32 %v5093_v45, %v6375_v41 }
0x1097   :  { %v4755_v4 = vpack.c.bf16 %v4935_v39, %v4934_v14  ;;  %v2583_v5 = vpop.xlane.xlu1 %2582 }
0x1098   :  { %5104 = vrcp.f32 %v2583_v5 }
0x1099   :  { %4756 = vmatprep.subr.bf16.mxu1 %v4755_v4  ;;  %5106 = vrcp.f32 %v2586_v54 }
0x109a   :  { %4758 = vmatpush3.bf16.msra.mxu1 %v4755_v4 }
0x109b   :  { %v4938_v20 = vpop.permute.xlu1 %4937 }
0x109c   :  { %v4940_v1 = vunpack.i.h.bf16 %v4938_v20  ;;  %v4939_v57 = vunpack.i.l.bf16 %v4938_v20  ;;  %v5095_v20 = vpop.eup %5094 }
0x109d   :  { %v5097_v28 = vpop.eup %5096  ;;  %v2620_v63 = vmul.f32 %v5095_v20, %v6373_v6 }
0x109e   :  { %v4759_v30 = vpack.c.bf16 %v4940_v1, %v4939_v57  ;;  %v2618_v1 = vmul.f32 %v5091_v22, %v6363_v21  ;;  %v5099_v11 = vpop.eup %5098  ;;  %v2621_v40 = vmul.f32 %v5097_v28, %v6383_v56 }
0x109f   :  { %v5101_v46 = vpop.eup %5100  ;;  %v2622_v5 = vmul.f32 %v5099_v11, %v6381_v52 }
0x10a0   :  { %4760 = vmatprep.subr.bf16.mxu1 %v4759_v30  ;;  %v5103_v21 = vpop.eup %5102  ;;  %v2623_v41 = vmul.f32 %v5101_v46, %v6391_v44 }
0x10a1   :  { %4762 = vmatpush3.bf16.msra.mxu1 %v4759_v30  ;;  %v2624_v6 = vmul.f32 %v5103_v21, %v6389_v55 }
0x10a2   :  { %v5105_v9 = vpop.eup %5104 }
0x10a3   :  { %v5107_v48 = vpop.eup %5106  ;;  %v2625_v56 = vmul.f32 %v5105_v9, %v6401_v12 }
0x10a4   :  { %4477 = vmatmul.mubr.msk.f32.vlgmr.msra.gmra.mrb[56].mxu1 %vm421_vm3, %v2616_v49  ;;  %v2626_v34 = vmul.f32 %v5107_v48, %v6397_v36  ;;  %v6753_v48 = vld [vmem:[#allocation5_spill] sm:$0xff] }
0x10a5   :  { %4479 = vmatprep.mubr.msk.f32.mxu1 %vm421_vm3, %v2617_v16 }
0x10a8   :  { %4480 = vmatmul.mubr.msk.f32.gmra.mrb[58].mxu1 %vm421_vm3, %v2618_v1 }
0x10a9   :  { %4482 = vmatprep.mubr.msk.f32.mxu1 %vm421_vm3, %v2619_v29 }
0x10ac   :  { %4483 = vmatmul.mubr.msk.f32.gmra.mrb[60].mxu1 %vm421_vm3, %v2620_v63 }
0x10ad   :  { %4485 = vmatprep.mubr.msk.f32.mxu1 %vm421_vm3, %v2621_v40 }
0x10b0   :  { %4486 = vmatmul.mubr.msk.f32.gmra.mrb[62].mxu1 %vm421_vm3, %v2622_v5 }
0x10b1   :  { %4488 = vmatprep.mubr.msk.f32.mxu1 %vm421_vm3, %v2623_v41 }
0x10b4   :  { %4489 = vmatmul.mubr.msk.f32.gmra.mrb[64].mxu1 %vm421_vm3, %v2624_v6 }
0x10b5   :  { %4491 = vmatprep.mubr.msk.f32.mxu1 %vm421_vm3, %v2625_v56 }
0x10b8   :  { %4492 = vmatmul.mubr.msk.f32.gmra.mrb[66].mxu1 %vm421_vm3, %v2626_v34 }
0x10c5   :  { %v2589_v52 = vpop.xlane.xlu0 %2588 }
0x10c6   :  { %5108 = vrcp.f32 %v2589_v52 }
0x10c9   :  { %v2595_v44 = vpop.xlane.xlu0 %2594 }
0x10ca   :  { %5110 = vrcp.f32 %v2595_v44 }
0x10cc   :  { %v2592_v54 = vpop.xlane.xlu1 %2591 }
0x10cd   :  { %5112 = vrcp.f32 %v2592_v54  ;;  %v2598_v39 = vpop.xlane.xlu0 %2597 }
0x10ce   :  { %5114 = vrcp.f32 %v2598_v39 }
0x10d0   :  { %v5109_v55 = vpop.eup %5108  ;;  %v6507_v14 = vpop.permute.xlu1 %4947 }
0x10d1   :  { %v2627_v12 = vmul.f32 %v5109_v55, %v6413_v32  ;;  %v6510_v4 = vpop.permute.xlu0 %4942 }
0x10d3   :  { %4494 = vmatprep.mubr.msk.f32.mxu1 %vm421_vm3, %v2627_v12 }
0x10d4   :  { %v4953_v36 = vpop.permute.xlu1 %4952  ;;  %v5111_v49 = vpop.eup %5110 }
0x10d5   :  { %v4955_v57 = vunpack.i.h.bf16 %v4953_v36  ;;  %v4954_v30 = vunpack.i.l.bf16 %v4953_v36  ;;  %v4958_v38 = vpop.permute.xlu0 %4957  ;;  %v2629_v40 = vmul.f32 %v5111_v49, %v6417_v61 }
0x10d6   :  { %v4960_v22 = vunpack.i.h.bf16 %v4958_v38  ;;  %v4959_v16 = vunpack.i.l.bf16 %v4958_v38 }
0x10d7   :  { %v5113_v45 = vpop.eup %5112  ;;  %v4811_v1 = vpack.c.bf16 %v4955_v57, %v4954_v30 }
0x10d8   :  { %v4963_v20 = vpop.permute.xlu1 %4962  ;;  %v4815_v29 = vpack.c.bf16 %v4960_v22, %v4959_v16  ;;  %v2628_v28 = vmul.f32 %v5113_v45, %v6419_v19  ;;  %v5115_v63 = vpop.eup %5114 }
0x10d9   :  { %v4965_v11 = vunpack.i.h.bf16 %v4963_v20  ;;  %v4964_v32 = vunpack.i.l.bf16 %v4963_v20  ;;  %4812 = vmatprep.subr.bf16.mxu1 %v4811_v1  ;;  %v4968_v46 = vpop.permute.xlu0 %4967  ;;  %v2630_v6 = vmul.f32 %v5115_v63, %v6423_v58 }
0x10da   :  { %4495 = vmatmul.mubr.msk.f32.gmra.mrb[68].mxu1 %vm421_vm3, %v2628_v28  ;;  %v4970_v41 = vunpack.i.h.bf16 %v4968_v46  ;;  %v4969_v9 = vunpack.i.l.bf16 %v4968_v46  ;;  %v4944_v46 = vunpack.i.l.bf16 %v6510_v4 }
0x10db   :  { %4497 = vmatprep.mubr.msk.f32.mxu1 %vm421_vm3, %v2629_v40  ;;  %4814 = vmatpush3.bf16.msra.mxu1 %v4811_v1  ;;  %v4819_v5 = vpack.c.bf16 %v4965_v11, %v4964_v32  ;;  %v4945_v40 = vunpack.i.h.bf16 %v6510_v4  ;;  %v5178_v4 = vld [vmem:[%s6694_s2 + $0x188] sm:$0xff] }
0x10dc   :  { %v3730_v21 = vpop.permute.xlu1 %3729  ;;  %4816 = vmatprep.subr.bf16.mxu1 %v4815_v29  ;;  %v4823_v56 = vpack.c.bf16 %v4970_v41, %v4969_v9  ;;  %v4950_v9 = vunpack.i.h.bf16 %v6507_v14 }
0x10dd   :  { %v3732_v19 = vmul.f32 %v6478_v31, %v3730_v21 }
0x10de   :  { %4498 = vmatmul.mubr.msk.f32.gmra.mrb[70].mxu1 %vm421_vm3, %v2630_v6  ;;  %v4795_v6 = vpack.c.bf16 %v4945_v40, %v4944_v46 }
0x10df   :  { %v3733_v61 = vsub.f32 %v6753_v48, %v3732_v19  ;;  %4818 = vmatpush3.bf16.msra.mxu1 %v4815_v29 }
0x10e0   :  { %4820 = vmatprep.subr.bf16.mxu1 %v4819_v5 }
0x10e1   :  { %3741 = vperm.xlu1 %4972, %v3733_v61  }
0x10e3   :  { %4822 = vmatpush3.bf16.msra.mxu1 %v4819_v5 }
0x10e4   :  { %4824 = vmatprep.subr.bf16.mxu1 %v4823_v56 }
0x10e7   :  { %4826 = vmatpush3.bf16.msra.mxu1 %v4823_v56 }
0x1177   :  { %v4478_v34 = vpop.f32.mrb[56].mxu1 }
0x1178   :  { %v2837_v52 = vmul.f32 %v6113_v50, %v4478_v34  ;;  %v2757_v44 = vpop.f32.mrb[57].mxu1  ;;  %v4803_v34 = vpack.c.bf16 %v6437_v10, %v6432_v2 }
0x1179   :  { %v2836_v58 = vmul.f32 %v6107_v59, %v2757_v44  ;;  %v6561_v44 = vld [vmem:[%s6695_s3 + $0xc8] sm:$0xff] }
0x117b   :  { %v4763_v54 = vpack.c.bf16 %v2837_v52, %v2836_v58  ;;  %v4481_v39 = vpop.f32.mrb[58].mxu1  ;;  %v4807_v52 = vpack.c.bf16 %v6461_v47, %v6456_v23  ;;  %v2940_v58 = vrot.slane %v6561_v44, %v5895_v8 }
0x117c   :  { %v2839_v31 = vmul.f32 %v6120_v60, %v4481_v39  ;;  %v2767_v55 = vpop.f32.mrb[59].mxu1 }
0x117d   :  { %v2838_v12 = vmul.f32 %v6127_v33, %v2767_v55  ;;  %4764 = vmatprep.subr.bf16.mxu0 %v4763_v54 }
0x117e   :  { %4766 = vmatpush3.bf16.msra.mxu0 %v4763_v54 }
0x117f   :  { %v4767_v36 = vpack.c.bf16 %v2839_v31, %v2838_v12  ;;  %v4484_v57 = vpop.f32.mrb[60].mxu1 }
0x1180   :  { %v2841_v30 = vmul.f32 %v6134_v37, %v4484_v57  ;;  %v2777_v38 = vpop.f32.mrb[61].mxu1 }
0x1181   :  { %v2840_v49 = vmul.f32 %v6141_v13, %v2777_v38  ;;  %4768 = vmatprep.subr.bf16.mxu0 %v4767_v36 }
0x1182   :  { %4770 = vmatpush3.bf16.msra.mxu0 %v4767_v36 }
0x1183   :  { %v4771_v50 = vpack.c.bf16 %v2841_v30, %v2840_v49  ;;  %v4487_v59 = vpop.f32.mrb[62].mxu1 }
0x1184   :  { %v2843_v22 = vmul.f32 %v6148_v17, %v4487_v59  ;;  %v2787_v16 = vpop.f32.mrb[63].mxu1 }
0x1185   :  { %v2842_v60 = vmul.f32 %v6155_v51, %v2787_v16  ;;  %4772 = vmatprep.subr.bf16.mxu0 %v4771_v50 }
0x1186   :  { %4774 = vmatpush3.bf16.msra.mxu0 %v4771_v50 }
0x1187   :  { %v4775_v33 = vpack.c.bf16 %v2843_v22, %v2842_v60  ;;  %v4490_v45 = vpop.f32.mrb[64].mxu1 }
0x1188   :  { %v2845_v1 = vmul.f32 %v6162_v25, %v4490_v45  ;;  %v2797_v20 = vpop.f32.mrb[65].mxu1 }
0x1189   :  { %v2844_v37 = vmul.f32 %v6169_v43, %v2797_v20  ;;  %4776 = vmatprep.subr.bf16.mxu0 %v4775_v33 }
0x118a   :  { %4778 = vmatpush3.bf16.msra.mxu0 %v4775_v33 }
0x118b   :  { %v4779_v13 = vpack.c.bf16 %v2845_v1, %v2844_v37  ;;  %v4493_v29 = vpop.f32.mrb[66].mxu1 }
0x118c   :  { %v2847_v28 = vmul.f32 %v6176_v15, %v4493_v29  ;;  %v2807_v63 = vpop.f32.mrb[67].mxu1 }
0x118d   :  { %v2846_v17 = vmul.f32 %v6183_v62, %v2807_v63  ;;  %4780 = vmatprep.subr.bf16.mxu0 %v4779_v13 }
0x118e   :  { %4782 = vmatpush3.bf16.msra.mxu0 %v4779_v13 }
0x118f   :  { %v4783_v51 = vpack.c.bf16 %v2847_v28, %v2846_v17 }
0x1191   :  { %4784 = vmatprep.subr.bf16.mxu0 %v4783_v51 }
0x1192   :  { %4786 = vmatpush3.bf16.msra.mxu0 %v4783_v51 }
0x11ad   :  { %v4496_v11 = vpop.f32.mrb[68].mxu1 }
0x11ae   :  { %v2849_v25 = vmul.f32 %v6190_v24, %v4496_v11  ;;  %v2817_v32 = vpop.f32.mrb[69].mxu1  ;;  %v4949_v24 = vunpack.i.l.bf16 %v6507_v14 }
0x11af   :  { %v2848_v43 = vmul.f32 %v6197_v53, %v2817_v32 }
0x11b0   :  { %v4799_v53 = vpack.c.bf16 %v4950_v9, %v4949_v24 }
0x11b1   :  { %v4787_v5 = vpack.c.bf16 %v2849_v25, %v2848_v43  ;;  %v4499_v15 = vpop.f32.mrb[70].mxu1 }
0x11b2   :  { %v2851_v21 = vmul.f32 %v6204_v27, %v4499_v15  ;;  %v2827_v62 = vpop.f32.mrb[71].mxu1  ;;  %v5179_v27 = vld [vmem:[%s6694_s2 + $0x190] sm:$0xff] }
0x11b3   :  { %v2850_v41 = vmul.f32 %v6211_v18, %v2827_v62  ;;  %4788 = vmatprep.subr.bf16.mxu0 %v4787_v5  ;;  %v5180_v18 = vld [vmem:[%s6694_s2 + $0x198] sm:$0xff] }
0x11b4   :  { %4790 = vmatpush3.bf16.msra.mxu0 %v4787_v5 }
0x11b5   :  { %v4791_v19 = vpack.c.bf16 %v2851_v21, %v2850_v41 }
0x11b7   :  { %4792 = vmatprep.subr.bf16.mxu0 %v4791_v19 }
0x11b8   :  { %4794 = vmatpush3.bf16.msra.mxu0 %v4791_v19 }
0x11b9   :  { %4796 = vmatprep.subr.bf16.mxu0 %v4795_v6 }
0x11bb   :  { %4533 = vmatmul.mubr.f32.vlgmr.msra.gmra.mrb[56].mxu0 %v5178_v4 }
0x11bc   :  { %4535 = vmatprep.mubr.f32.mxu0 %v5179_v27  ;;  %4798 = vmatpush3.bf16.msra.mxu0 %v4795_v6 }
0x11bd   :  { %4800 = vmatprep.subr.bf16.mxu0 %v4799_v53 }
0x11bf   :  { %4536 = vmatmul.mubr.f32.gmra.mrb[58].mxu0 %v5180_v18 }
0x11c0   :  { %4802 = vmatpush3.bf16.msra.mxu0 %v4799_v53 }
0x11c1   :  { %4804 = vmatprep.subr.bf16.mxu0 %v4803_v34 }
0x128e   :  { %v4534_v14 = vpop.f32.mrb[56].mxu0 }
0x128f   :  { %v2918_v48 = vpop.f32.mrb[57].mxu0 }
0x1290   :  { %4546 = vmatprep.mubr.msk.f32.mxu0 %vm421_vm3, %v2918_v48 }
0x1291   :  { %4547 = vmatmul.mubr.msk.f32.vlgmr.msra.gmra.mrb[60].mxu0 %vm421_vm3, %v4534_v14 }
0x1292   :  { %v4537_v61 = vpop.f32.mrb[58].mxu0  ;;  %4806 = vmatpush3.bf16.msra.mxu0 %v4803_v34 }
0x1293   :  { %v2928_v56 = vpop.f32.mrb[59].mxu0  ;;  %4808 = vmatprep.subr.bf16.mxu0 %v4807_v52 }
0x1294   :  { %4549 = vmatprep.mubr.msk.f32.mxu0 %vm421_vm3, %v2928_v56 }
0x1295   :  { %4550 = vmatmul.mubr.msk.f32.gmra.mrb[62].mxu0 %vm421_vm3, %v4537_v61  ;;  %v6754_v61 = vsub.s32 3, %v5322_v3 }
0x1296   :  { %4810 = vmatpush3.bf16.msra.mxu0 %v4807_v52 }
0x1297   :  { %v3111_v56 = vrot.slane %v6561_v44, %v6754_v61 }
0x1364   :  { %v4548_v54 = vpop.f32.mrb[60].mxu0 }
0x1365   :  { %v3041_v39 = vadd.f32 %v4548_v54, %v2940_v58  ;;  %v3035_v31 = vpop.f32.mrb[61].mxu0 }
0x1366   :  { %v3036_v55 = vadd.f32 %v3035_v31, %v2940_v58 }
0x1367   :  { %v3055_v2 = vadd.f32 %v3041_v39, %v6010_v42 }
0x1368   :  { %v3054_v10 = vadd.f32 %v3036_v55, %v6008_v35  ;;  %v4551_v12 = vpop.f32.mrb[62].mxu0 }
0x1369   :  { %v3059_v23 = vsel %vm421_vm3, %v3055_v2, 0.0  ;;  %v3073_v47 = vmul.f32 %v3055_v2, %v3055_v2  ;;  %v3051_v36 = vadd.f32 %v4551_v12, %v2940_v58  ;;  %v3045_v57 = vpop.f32.mrb[63].mxu0 }
0x136a   :  { %v3058_v30 = vsel %vm421_vm3, %v3054_v10, 0.0  ;;  %v3072_v38 = vmul.f32 %v3054_v10, %v3054_v10  ;;  %v3046_v49 = vadd.f32 %v3045_v57, %v2940_v58 }
0x136b   :  { %v3077_v50 = vsel %vm421_vm3, %v3073_v47, 0.0  ;;  %v3060_v59 = vadd.f32 %v3059_v23, %v3058_v30  ;;  %v3057_v22 = vadd.f32 %v3051_v36, %v6020_v7 }
0x136c   :  { %v3076_v16 = vsel %vm421_vm3, %v3072_v38, 0.0  ;;  %v3056_v42 = vadd.f32 %v3046_v49, %v6014_v26 }
0x136d   :  { %v3078_v35 = vadd.f32 %v3077_v50, %v3076_v16  ;;  %v3075_v60 = vmul.f32 %v3057_v22, %v3057_v22  ;;  %v3063_v20 = vsel %vm421_vm3, %v3057_v22, 0.0 }
0x136e   :  { %v3061_v33 = vsel %vm421_vm3, %v3056_v42, 0.0  ;;  %v3074_v45 = vmul.f32 %v3056_v42, %v3056_v42 }
0x136f   :  { %v3062_v1 = vadd.f32 %v3061_v33, %v3060_v59  ;;  %v3081_v28 = vsel %vm421_vm3, %v3075_v60, 0.0 }
0x1370   :  { %v3079_v37 = vsel %vm421_vm3, %v3074_v45, 0.0 }
0x1371   :  { %v3064_v13 = vadd.f32 %v3063_v20, %v3062_v1  ;;  %v3080_v29 = vadd.f32 %v3079_v37, %v3078_v35 }
0x1373   :  { %v3065_v63 = vrot.slane %v3064_v13, 4  ;;  %v3082_v7 = vadd.f32 %v3081_v28, %v3080_v29 }
0x1375   :  { %v3066_v17 = vadd.f32 %v3065_v63, %v3064_v13  ;;  %v3083_v51 = vrot.slane %v3082_v7, 4 }
0x1377   :  { %v3067_v11 = vrot.slane %v3066_v17, 2  ;;  %v3084_v26 = vadd.f32 %v3083_v51, %v3082_v7 }
0x1379   :  { %v3068_v25 = vadd.f32 %v3067_v11, %v3066_v17  ;;  %v3085_v32 = vrot.slane %v3084_v26, 2 }
0x137b   :  { %v3069_v43 = vrot.slane %v3068_v25, 1  ;;  %v3086_v40 = vadd.f32 %v3085_v32, %v3084_v26 }
0x137d   :  { %v3070_v46 = vadd.f32 %v3069_v43, %v3068_v25  ;;  %v3087_v5 = vrot.slane %v3086_v40, 1 }
0x137f   :  { %v3071_v15 = vmul.f32 0.03125, %v3070_v46  ;;  %v3088_v21 = vadd.f32 %v3087_v5, %v3086_v40 }
0x1381   :  { %v3089_v62 = vmul.f32 0.03125, %v3088_v21  ;;  %v3090_v41 = vmul.f32 %v3071_v15, %v3071_v15  ;;  %v3095_v9 = vsub.f32 %v3056_v42, %v3071_v15  ;;  %v3093_v24 = vsub.f32 %v3054_v10, %v3071_v15 }
0x1382   :  { %v3094_v6 = vsub.f32 %v3055_v2, %v3071_v15  ;;  %v3096_v19 = vsub.f32 %v3057_v22, %v3071_v15  ;;  %v6755_v2 = vsub.s32 4, %v5322_v3 }
0x1383   :  { %v3091_v53 = vsub.f32 %v3089_v62, %v3090_v41 }
0x1384   :  { %v3119_v10 = vrot.slane %v6561_v44, %v6755_v2 }
0x1385   :  { %v3092_v4 = vmax.f32 %v3091_v53, 0.0 }
0x1387   :  { %v3097_v27 = vadd.f32 1e-05, %v3092_v4  ;;  %v3448_v4 = vld [vmem:[%s6695_s3 + $0xe0] sm:$0xff] }
0x1389   :  { %5116 = vrsqrt.f32 %v3097_v27  ;;  %v3449_v27 = vld [vmem:[%s6695_s3 + $0xe8] sm:$0xff] }
0x1393   :  { %v5117_v18 = vpop.eup %5116 }
0x1394   :  { %v3099_v14 = vmul.f32 %v6561_v44, %v5117_v18  ;;  %v4827_v18 = vpack.c.bf16 %v3449_v27, %v3448_v4 }
0x1396   :  { %v3103_v48 = vrot.slane %v3099_v14, %v1605_v0  ;;  %4828 = vmatprep.subr.bf16.mxu0 %v4827_v18  ;;  %v3450_v14 = vld [vmem:[%s6695_s3 + $0xf0] sm:$0xff] }
0x1398   :  { %v3106_v34 = vmul.f32 %v3103_v48, %v3095_v9  ;;  %v3104_v52 = vmul.f32 %v3103_v48, %v3093_v24  ;;  %v3105_v58 = vmul.f32 %v3103_v48, %v3094_v6  ;;  %v3107_v54 = vmul.f32 %v3103_v48, %v3096_v19  ;;  %v3451_v48 = vld [vmem:[%s6695_s3 + $0xf8] sm:$0xff] }
0x1399   :  { %v4831_v61 = vpack.c.bf16 %v3451_v48, %v3450_v14  ;;  %v6757_v48 = vsub.s32 6, %v5322_v3 }
0x139a   :  { %v6583_v39 = vadd.f32 %v3111_v56, %v3104_v52  ;;  %v6585_v31 = vadd.f32 %v3111_v56, %v3105_v58  ;;  %v6589_v55 = vadd.f32 %v3111_v56, %v3106_v34  ;;  %v6595_v0 = vadd.f32 %v3111_v56, %v3107_v54  ;;  %v79_v56 = vld [vmem:[%s6694_s2 + $0x1e8] sm:$0xff]  ;;  %v80_v34 = vld [vmem:[%s6694_s2 + $0x1f0] sm:$0xff] }
0x139b   :  { %v4835_v52 = vpack.c.bf16 %v80_v34, %v79_v56  ;;  %v6756_v58 = vsub.s32 5, %v5322_v3  ;;  %v6758_v56 = vsub.s32 7, %v5322_v3  ;;  %v81_v3 = vld [vmem:[%s6694_s2 + $0x1f8] sm:$0xff] }
0x139c   :  { %4560 = vmatprep.mubr.msk.f32.mxu0 %vm421_vm3, %v6583_v39 }
0x139d   :  { %4561 = vmatmul.mubr.msk.f32.vlgmr.msra.gmra.mrb[64].mxu0 %vm421_vm3, %v6585_v31  ;;  %4836 = vmatprep.subr.bf16.mxu1 %v4835_v52  ;;  %v3256_v54 = vrot.slane %v6561_v44, %v6756_v58  ;;  %v3443_v34 = vrot.slane %v6561_v44, %v6758_v56 }
0x139e   :  { %4563 = vmatprep.mubr.msk.f32.mxu0 %vm421_vm3, %v6589_v55  ;;  %4830 = vmatpush3.bf16.msra.mxu0 %v4827_v18 }
0x139f   :  { %4832 = vmatprep.subr.bf16.mxu0 %v4831_v61 }
0x13a1   :  { %4564 = vmatmul.mubr.msk.f32.gmra.mrb[66].mxu0 %vm421_vm3, %v6595_v0 }
0x13a2   :  { %4834 = vmatpush3.bf16.msra.mxu0 %v4831_v61 }
0x1470   :  { %v4562_v12 = vpop.f32.mrb[64].mxu0 }
0x1471   :  { %v3204_v23 = vadd.f32 %v4562_v12, %v3119_v10  ;;  %v3198_v47 = vpop.f32.mrb[65].mxu0 }
0x1472   :  { %v3199_v36 = vadd.f32 %v3198_v47, %v3119_v10 }
0x1473   :  { %v3222_v57 = vmul.f32 0.044715, %v3204_v23  ;;  %v3218_v46 = vmul.f32 0.5, %v3204_v23 }
0x1474   :  { %v3221_v30 = vmul.f32 0.044715, %v3199_v36  ;;  %v4565_v38 = vpop.f32.mrb[66].mxu0  ;;  %v3217_v43 = vmul.f32 0.5, %v3199_v36 }
0x1475   :  { %v3226_v49 = vmul.f32 %v3222_v57, %v3204_v23  ;;  %v3214_v50 = vadd.f32 %v4565_v38, %v3119_v10  ;;  %v3208_v59 = vpop.f32.mrb[67].mxu0 }
0x1476   :  { %v3225_v22 = vmul.f32 %v3221_v30, %v3199_v36  ;;  %v3209_v16 = vadd.f32 %v3208_v59, %v3119_v10 }
0x1477   :  { %v3230_v42 = vmul.f32 %v3226_v49, %v3204_v23  ;;  %v3224_v35 = vmul.f32 0.044715, %v3214_v50  ;;  %v3220_v6 = vmul.f32 0.5, %v3214_v50 }
0x1478   :  { %v3229_v60 = vmul.f32 %v3225_v22, %v3199_v36  ;;  %v3223_v33 = vmul.f32 0.044715, %v3209_v16  ;;  %v3219_v9 = vmul.f32 0.5, %v3209_v16 }
0x1479   :  { %v3234_v45 = vadd.f32 %v3230_v42, %v3204_v23  ;;  %v3228_v1 = vmul.f32 %v3224_v35, %v3214_v50 }
0x147a   :  { %v3233_v20 = vadd.f32 %v3229_v60, %v3199_v36  ;;  %v3227_v37 = vmul.f32 %v3223_v33, %v3209_v16 }
0x147b   :  { %v3238_v13 = vmul.f32 0.7978846, %v3234_v45  ;;  %v3232_v29 = vmul.f32 %v3228_v1, %v3214_v50 }
0x147c   :  { %v3231_v28 = vmul.f32 %v3227_v37, %v3209_v16  ;;  %v3237_v63 = vmul.f32 0.7978846, %v3233_v20 }
0x147d   :  { %5118 = vtanh.f32 %v3238_v13  ;;  %v3236_v7 = vadd.f32 %v3232_v29, %v3214_v50 }
0x147e   :  { %v3235_v17 = vadd.f32 %v3231_v28, %v3209_v16  ;;  %5120 = vtanh.f32 %v3237_v63 }
0x147f   :  { %v3240_v51 = vmul.f32 0.7978846, %v3236_v7 }
0x1480   :  { %v3239_v11 = vmul.f32 0.7978846, %v3235_v17 }
0x1481   :  { %5122 = vtanh.f32 %v3240_v51 }
0x1482   :  { %5124 = vtanh.f32 %v3239_v11 }
0x1487   :  { %v5119_v26 = vpop.eup %5118 }
0x1488   :  { %v5121_v25 = vpop.eup %5120  ;;  %v3246_v32 = vadd.f32 1.0, %v5119_v26 }
0x1489   :  { %v3245_v40 = vadd.f32 1.0, %v5121_v25 }
0x148a   :  { %v3250_v62 = vmul.f32 %v3246_v32, %v3218_v46 }
0x148b   :  { %v5123_v5 = vpop.eup %5122  ;;  %v3249_v15 = vmul.f32 %v3245_v40, %v3217_v43 }
0x148c   :  { %v5125_v21 = vpop.eup %5124  ;;  %v3248_v41 = vadd.f32 1.0, %v5123_v5 }
0x148d   :  { %4582 = vmatprep.mubr.msk.f32.mxu1 %vm1792_vm5, %v3249_v15  ;;  %v3247_v24 = vadd.f32 1.0, %v5125_v21 }
0x148e   :  { %4583 = vmatmul.mubr.msk.f32.vlgmr.msra.gmra.mrb[72].mxu1 %vm1792_vm5, %v3250_v62  ;;  %v3252_v53 = vmul.f32 %v3248_v41, %v3220_v6 }
0x148f   :  { %v3251_v19 = vmul.f32 %v3247_v24, %v3219_v9  ;;  %4838 = vmatpush3.bf16.msra.mxu1 %v4835_v52 }
0x1491   :  { %4585 = vmatprep.mubr.msk.f32.mxu1 %vm1792_vm5, %v3251_v19 }
0x1492   :  { %4586 = vmatmul.mubr.msk.f32.gmra.mrb[74].mxu1 %vm1792_vm5, %v3252_v53 }
0x1561   :  { %v4584_v2 = vpop.f32.mrb[72].mxu1 }
0x1562   :  { %v3373_v10 = vadd.f32 %v4584_v2, %v3256_v54  ;;  %v3367_v12 = vpop.f32.mrb[73].mxu1 }
0x1563   :  { %v3368_v23 = vadd.f32 %v3367_v12, %v3256_v54 }
0x1564   :  { %v3387_v47 = vadd.f32 %v3373_v10, %v6585_v31 }
0x1565   :  { %v3386_v36 = vadd.f32 %v3368_v23, %v6583_v39  ;;  %v4587_v57 = vpop.f32.mrb[74].mxu1 }
0x1566   :  { %v3391_v30 = vsel %vm421_vm3, %v3387_v47, 0.0  ;;  %v3405_v38 = vmul.f32 %v3387_v47, %v3387_v47  ;;  %v3383_v49 = vadd.f32 %v4587_v57, %v3256_v54  ;;  %v3377_v50 = vpop.f32.mrb[75].mxu1  ;;  %v70_v57 = vld [vmem:[%s6694_s2 + $0x1a0] sm:$0xff] }
0x1567   :  { %v3390_v59 = vsel %vm421_vm3, %v3386_v36, 0.0  ;;  %v3404_v22 = vmul.f32 %v3386_v36, %v3386_v36  ;;  %v3378_v16 = vadd.f32 %v3377_v50, %v3256_v54 }
0x1568   :  { %v3409_v42 = vsel %vm421_vm3, %v3405_v38, 0.0  ;;  %v3392_v35 = vadd.f32 %v3391_v30, %v3390_v59  ;;  %v3389_v60 = vadd.f32 %v3383_v49, %v6595_v0  ;;  %v71_v30 = vld [vmem:[%s6694_s2 + $0x1a8] sm:$0xff] }
0x1569   :  { %v3408_v33 = vsel %vm421_vm3, %v3404_v22, 0.0  ;;  %v3388_v31 = vadd.f32 %v3378_v16, %v6589_v55  ;;  %v72_v22 = vld [vmem:[%s6694_s2 + $0x1b0] sm:$0xff]  ;;  %v73_v16 = vld [vmem:[%s6694_s2 + $0x1b8] sm:$0xff] }
0x156a   :  { %v3410_v39 = vadd.f32 %v3409_v42, %v3408_v33  ;;  %v3407_v45 = vmul.f32 %v3389_v60, %v3389_v60  ;;  %v3395_v13 = vsel %vm421_vm3, %v3389_v60, 0.0 }
0x156b   :  { %v3393_v1 = vsel %vm421_vm3, %v3388_v31, 0.0  ;;  %v3406_v20 = vmul.f32 %v3388_v31, %v3388_v31 }
0x156c   :  { %v3394_v37 = vadd.f32 %v3393_v1, %v3392_v35  ;;  %v3413_v7 = vsel %vm421_vm3, %v3407_v45, 0.0 }
0x156d   :  { %v3411_v29 = vsel %vm421_vm3, %v3406_v20, 0.0 }
0x156e   :  { %v3396_v28 = vadd.f32 %v3395_v13, %v3394_v37  ;;  %v3412_v63 = vadd.f32 %v3411_v29, %v3410_v39  ;;  %v5220_v39 = vmov 0.0  }
0x1570   :  { %v3397_v17 = vrot.slane %v3396_v28, 4  ;;  %v3414_v0 = vadd.f32 %v3413_v7, %v3412_v63  ;;  %v5182_v63 = vld [vmem:[%s6695_s3 + $0xd0] sm:$0xff] }
0x1571   :  { %v3653_v7 = vrot.slane %v5182_v63, %v5895_v8 }
0x1572   :  { %v3398_v51 = vadd.f32 %v3397_v17, %v3396_v28  ;;  %v3415_v11 = vrot.slane %v3414_v0, 4  ;;  %v78_v28 = vld [vmem:[%s6694_s2 + $0x1e0] sm:$0xff] }
0x1574   :  { %v3399_v26 = vrot.slane %v3398_v51, 2  ;;  %v3416_v55 = vadd.f32 %v3415_v11, %v3414_v0  ;;  %v3736_v11 = vpop.permute.xlu0 %3735 }
0x1576   :  { %v3400_v25 = vadd.f32 %v3399_v26, %v3398_v51  ;;  %v3417_v32 = vrot.slane %v3416_v55, 2 }
0x1578   :  { %v3401_v43 = vrot.slane %v3400_v25, 1  ;;  %v3418_v40 = vadd.f32 %v3417_v32, %v3416_v55  ;;  %v3742_v55 = vpop.permute.xlu1 %3741 }
0x157a   :  { %v3402_v46 = vadd.f32 %v3401_v43, %v3400_v25  ;;  %v3419_v5 = vrot.slane %v3418_v40, 1 }
0x157c   :  { %v3403_v15 = vmul.f32 0.03125, %v3402_v46  ;;  %v3420_v21 = vadd.f32 %v3419_v5, %v3418_v40 }
0x157e   :  { %v3421_v62 = vmul.f32 0.03125, %v3420_v21  ;;  %v3422_v41 = vmul.f32 %v3403_v15, %v3403_v15  ;;  %v3427_v9 = vsub.f32 %v3388_v31, %v3403_v15  ;;  %v3425_v24 = vsub.f32 %v3386_v36, %v3403_v15 }
0x157f   :  { %v3426_v6 = vsub.f32 %v3387_v47, %v3403_v15  ;;  %v3428_v19 = vsub.f32 %v3389_v60, %v3403_v15  ;;  %v5218_v31 = vmov 0.0|0.0  }
0x1580   :  { %v3423_v53 = vsub.f32 %v3421_v62, %v3422_v41  ;;  %4843 = vmatprep.subr.bf16.mxu0 %v5218_v31 }
0x1582   :  { %v3424_v4 = vmax.f32 %v3423_v53, 0.0 }
0x1584   :  { %v3429_v27 = vadd.f32 1e-05, %v3424_v4 }
0x1586   :  { %5126 = vrsqrt.f32 %v3429_v27 }
0x1590   :  { %v5127_v18 = vpop.eup %5126 }
0x1591   :  { %v3431_v14 = vmul.f32 %v6561_v44, %v5127_v18  ;;  %v82_v44 = vld [vmem:[%s6694_s2 + $0x200] sm:$0xff]  ;;  %s5183_s2 = scalar_lea.vmem %s3753_s26, 128 }
0x1592   :  { %v4839_v36 = vpack.c.bf16 %v82_v44, %v81_v3  ;;  %p5184_p0 = scmp.ne.s32.totalorder %s3753_s26, %s5183_s2  ;;  %p5189_p2 = scmp.lt.s32.totalorder %s5183_s2, %s5183_s2 }
0x1593   :  { %v3435_v61 = vrot.slane %v3431_v14, %v6757_v48 }
0x1594   :  { %4840 = vmatprep.subr.bf16.mxu1 %v4839_v36  ;;  %p5190_p3 = por %p5189_p2, %p5188_p1 }
0x1595   :  { %v3438_v52 = vmul.f32 %v3435_v61, %v3427_v9  ;;  %v3436_v58 = vmul.f32 %v3435_v61, %v3425_v24  ;;  %v3437_v54 = vmul.f32 %v3435_v61, %v3426_v6  ;;  %v3439_v2 = vmul.f32 %v3435_v61, %v3428_v19  ;;  %4842 = vmatpush3.bf16.msra.mxu1 %v4839_v36 }
0x1596   :  { %p5191_p4 = pnand %p5190_p3, %p5184_p0 }
0x1597   :  { %v3444_v10 = vadd.f32 %v3443_v34, %v3436_v58  ;;  %v3445_v12 = vadd.f32 %v3443_v34, %v3437_v54  ;;  %v3446_v23 = vadd.f32 %v3443_v34, %v3438_v52  ;;  %v3447_v47 = vadd.f32 %v3443_v34, %v3439_v2 }
0x1599   :  { %4596 = vmatprep.mubr.msk.f32.mxu0 %vm421_vm3, %v3444_v10 }
0x159a   :  { %4597 = vmatmul.mubr.msk.f32.vlgmr.msra.gmra.mrb[68].mxu0 %vm421_vm3, %v3445_v12 }
0x159b   :  { %4599 = vmatprep.mubr.msk.f32.mxu0 %vm421_vm3, %v3446_v23 }
0x159e   :  { %4600 = vmatmul.mubr.msk.f32.gmra.mrb[70].mxu0 %vm421_vm3, %v3447_v47 }
0x159f   :  { %4624 = vmatprep.mubr.msk.f32.mxu0 %vm5219_vm6, %v5220_v39 }
0x166d   :  { %v4598_v38 = vpop.f32.mrb[68].mxu0 }
0x166e   :  { %v3530_v49 = vpop.f32.mrb[69].mxu0  ;;  %v3550_v59 = vmul.f32 %v4598_v38, %v71_v30 }
0x166f   :  { %v3549_v50 = vmul.f32 %v3530_v49, %v70_v57 }
0x1671   :  { %v4601_v42 = vpop.f32.mrb[70].mxu0  ;;  %4610 = vmatprep.mubr.msk.f32.mxu1 %vm421_vm3, %v3549_v50 }
0x1672   :  { %v3540_v35 = vpop.f32.mrb[71].mxu0  ;;  %4611 = vmatmul.mubr.msk.f32.vlgmr.msra.gmra.mrb[76].mxu1 %vm421_vm3, %v3550_v59  ;;  %v3552_v33 = vmul.f32 %v4601_v42, %v73_v16 }
0x1673   :  { %v3551_v60 = vmul.f32 %v3540_v35, %v72_v22 }
0x1675   :  { %4613 = vmatprep.mubr.msk.f32.mxu1 %vm421_vm3, %v3551_v60 }
0x1676   :  { %4614 = vmatmul.mubr.msk.f32.gmra.mrb[78].mxu1 %vm421_vm3, %v3552_v33 }
0x1745   :  { %v4612_v45 = vpop.f32.mrb[76].mxu1 }
0x1746   :  { %v3631_v1 = vpop.f32.mrb[77].mxu1 }
0x1747   :  { %v4844_v20 = vpack.c.bf16 %v4612_v45, %v3631_v1 }
0x1749   :  { %v4615_v37 = vpop.f32.mrb[78].mxu1  ;;  %4845 = vmatpush3.bf16.msra.mxu0 %v4844_v20 }
0x174a   :  { %v3641_v13 = vpop.f32.mrb[79].mxu1  ;;  %4846 = vmatprep.subr.bf16.mxu0 %v5218_v31 }
0x174b   :  { %v4847_v29 = vpack.c.bf16 %v4615_v37, %v3641_v13 }
0x174d   :  { %4848 = vmatpush3.bf16.msra.mxu0 %v4847_v29 }
0x1750   :  { %4625 = vmatmul.mubr.msk.f32.vlgmr.msra.gmra.mrb[72].mxu0 %vm421_vm3, %v78_v28 }
0x1823   :  { %v3723_v17 = vpop.f32.mrb[72].mxu0 }
0x1824   :  { %v3724_v0 = vadd.f32 %v3723_v17, %v3653_v7  ;;  %v4626_v51 = vpop.f32.mrb[73].mxu0 }
0x1826   :  { %v3738_v26 = vmul.f32 %v3736_v11, %v3724_v0 }
0x1828   :  { %v3744_v25 = vadd.f32 %v3742_v55, %v3738_v26 }
0x182a   :  { %3745 = vst.msk [vmem:[#allocation2] sm:$0xff] %vm121_vm1, %v3744_v25 }
0x182b   :  { %5194 = shalt.err (!%p5191_p4)
}
0x182c   :  { %s5195_s28 = scalar_lea.hbm %s6696_s4, 128 }
0x182d   :  { %p5196_p5 = scmp.ne.s32.totalorder %s6696_s4, %s5195_s28  ;;  %p5199_p6 = scmp.lt.u32.totalorder %s5195_s28, %s6696_s4 }
0x182f   :  { %p5201_p7 = pnand %p5199_p6, %p5196_p5 }
0x1831   :  { %5204 = shalt.err (!%p5201_p7)
}
0x1832   :  { %3755 = dma.vmem_to_hbm [thread:$0]  %s3753_s26, 128, %s6696_s4, [#allocation3]  }
0x1833   :  { %5205 = dma.done.wait [#allocation3], 128  }
0x1834   :  { %5206 = vsyncadd [#allocation3], 4294967168 }
0x1835   :  { %3759 = vsyncpa [#allocation3], 1 }

</bundles_post_ra>
